<compile_context>
chip_gen: v7x
topology: tpu7x:2x2x1
jax: 0.10.0
libtpu: 0.0.40
codegen_flags: <defaults>
</compile_context>

<pallas_src>
import functools

import jax
import jax.numpy as jnp
from jax.experimental import pallas as pl
from jax.experimental.pallas import tpu as pltpu


# ----------------------------- Pallas kernel ------------------------------ #
def _make_edesc_kernel(n_clusters, d, eta, n_input, n_z, n_dec_1, out_lanes):
    shift = eta * float(d)
    inv_scale = 1.0 / ((eta + 1.0) * float(d))
    pad_lanes = out_lanes - (n_input + n_z + n_clusters)

    def kernel(x_ref,
               we1, be1, we2, be2, we3, be3, wz, bz,
               wdec1_d, bd1, wd2, bd2, wd3, bd3, wxb, bxb,
               mask_ref,
               packed_ref):
        def linear(h_bf16, w_ref, b_ref):
            # bf16 MXU operands, f32 accumulation; bias add stays f32.
            return jnp.dot(h_bf16, w_ref[...],
                           preferred_element_type=jnp.float32) + b_ref[...]

        def relu_bf16(y_f32):
            # ReLU in f32 (v5e-safe), single cast to bf16 for the next dot.
            return jnp.maximum(y_f32, 0.0).astype(jnp.bfloat16)

        x = x_ref[...]                      # already bf16 (cast in wrapper)

        # ---- AE encoder ----
        h1 = relu_bf16(linear(x, we1, be1))
        h2 = relu_bf16(linear(h1, we2, be2))
        h3 = relu_bf16(linear(h2, we3, be3))
        z = linear(h3, wz, bz)              # f32, returned to the caller
        z_bf16 = z.astype(jnp.bfloat16)

        # ---- Fused decoder layer 1 + subspace projection: z @ [Wd1 | D] ----
        zf = jnp.dot(z_bf16, wdec1_d[...], preferred_element_type=jnp.float32)
        g1 = relu_bf16(zf[:, :n_dec_1] + bd1[...])
        zd = zf[:, n_dec_1:]                # z @ D, f32, (tm, n_clusters*d)

        # ---- rest of AE decoder ----
        g2 = relu_bf16(linear(g1, wd2, bd2))
        g3 = relu_bf16(linear(g2, wd3, bd3))
        x_bar = linear(g3, wxb, bxb)        # f32

        # ---- Subspace affinity ----
        # s_i = sum((z @ D[:, i*d:(i+1)*d])**2, axis=1), implemented as one
        # bf16 matmul (zd^2) @ M with a precomputed block-indicator matrix M.
        sq = (zd * zd).astype(jnp.bfloat16)
        s = jnp.dot(sq, mask_ref[...], preferred_element_type=jnp.float32)

        # (s + eta*d)/((eta+1)*d), then per-row normalization (exact).
        s = (s + shift) * inv_scale
        s = s / jnp.sum(s, axis=1, keepdims=True)

        # ---- Single lane-dense packed store: [x_bar | z | s | 0-pad] ----
        parts = [x_bar, z, s]
        if pad_lanes:
            parts.append(jnp.zeros((x.shape[0], pad_lanes), jnp.float32))
        packed_ref[...] = jnp.concatenate(parts, axis=-1)

    return kernel


# --------------------------------- wrapper --------------------------------- #
def edesc_forward(x, enc_dec_params, D, *, n_clusters, d, eta, tm=256):
    """enc_dec_params: list of (W(in,out), b(1,out)) f32 arrays for the 8
    Linear layers in order enc1, enc2, enc3, z, dec1, dec2, dec3, x_bar."""
    N, n_input = x.shape
    n_z, kd = D.shape
    assert kd == n_clusters * d
    n_dec_1 = enc_dec_params[4][0].shape[1]

    # ---- batch tile (multiple of 8 sublanes), pad N up to a multiple of it.
    # tm=256 keeps grid divisible by 2 for v7x megacore; on v5e/v6e a larger
    # tm (fewer serial steps) is also fine for an overhead-bound kernel.
    tm = min(tm, ((N + 7) // 8) * 8)
    n_pad = pl.cdiv(N, tm) * tm
    x_pad = x.astype(jnp.bfloat16)          # halve x HBM->VMEM DMA bytes
    if n_pad != N:
        x_pad = jnp.pad(x_pad, ((0, n_pad - N), (0, 0)))
    grid = (n_pad // tm,)

    # ---- host-side precompute: bf16 weights, fused [Wd1|D], indicator mask.
    # TODO(synk): at real EDESC sizes (n_input~784, hidden 500/1000/2000) add
    # pipeline_mode=pl.Buffered(1) to the constant specs to avoid 2x-buffering
    # multi-MB resident weights (matters on v7x's 64 MiB VMEM).
    def const_spec(shape):
        return pl.BlockSpec(shape, lambda i: (0, 0))

    flat = [x_pad]
    specs = [pl.BlockSpec((tm, n_input), lambda i: (i, 0))]

    for w, b in enc_dec_params[:4]:                     # enc1..3, z
        wb = w.astype(jnp.bfloat16)
        flat += [wb, b]
        specs += [const_spec(wb.shape), const_spec(b.shape)]

    wd1, bd1 = enc_dec_params[4]                        # fused dec1 || D
    w_fused = jnp.concatenate([wd1, D], axis=1).astype(jnp.bfloat16)
    flat += [w_fused, bd1]
    specs += [const_spec(w_fused.shape), const_spec(bd1.shape)]

    for w, b in enc_dec_params[5:]:                     # dec2, dec3, x_bar
        wb = w.astype(jnp.bfloat16)
        flat += [wb, b]
        specs += [const_spec(wb.shape), const_spec(b.shape)]

    mask = (jnp.arange(kd)[:, None] // d
            == jnp.arange(n_clusters)[None, :]).astype(jnp.bfloat16)
    flat += [mask]
    specs += [const_spec(mask.shape)]

    # ---- single lane-dense packed output (x_bar | z | s | pad).
    out_lanes = pl.cdiv(n_input + n_z + n_clusters, 128) * 128
    out_shape = jax.ShapeDtypeStruct((n_pad, out_lanes), jnp.float32)
    out_specs = pl.BlockSpec((tm, out_lanes), lambda i: (i, 0))

    # ---- cost estimate (advisory).
    layer_flops = sum(2 * w.shape[0] * w.shape[1] for w, _ in enc_dec_params)
    flops = n_pad * (layer_flops + 2 * n_z * kd + 2 * kd * n_clusters)
    bytes_in = sum(int(a.size) * a.dtype.itemsize for a in flat)
    bytes_out = n_pad * out_lanes * 4
    cost = pl.CostEstimate(flops=int(flops),
                           transcendentals=int(n_pad),
                           bytes_accessed=int(bytes_in + bytes_out))

    kernel = _make_edesc_kernel(n_clusters, d, eta, n_input, n_z, n_dec_1,
                                out_lanes)
    packed = pl.pallas_call(
        kernel,
        grid=grid,
        in_specs=specs,
        out_specs=out_specs,
        out_shape=out_shape,
        compiler_params=pltpu.CompilerParams(
            dimension_semantics=("parallel",),
            vmem_limit_bytes=16 * 1024 * 1024),
        cost_estimate=cost,
    )(*flat)

    x_bar = packed[:N, :n_input]
    z = packed[:N, n_input:n_input + n_z]
    s = packed[:N, n_input + n_z:n_input + n_z + n_clusters]
    return x_bar, s, z


# --------------------------- pure-JAX reference ---------------------------- #
def edesc_reference(x, enc_dec_params, D, *, n_clusters, d, eta):
    def linear(h, wb):
        w, b = wb
        return h @ w + b

    h = jax.nn.relu(linear(x, enc_dec_params[0]))
    h = jax.nn.relu(linear(h, enc_dec_params[1]))
    h = jax.nn.relu(linear(h, enc_dec_params[2]))
    z = linear(h, enc_dec_params[3])
    g = jax.nn.relu(linear(z, enc_dec_params[4]))
    g = jax.nn.relu(linear(g, enc_dec_params[5]))
    g = jax.nn.relu(linear(g, enc_dec_params[6]))
    x_bar = linear(g, enc_dec_params[7])

    cols = []
    for i in range(n_clusters):
        zi = z @ D[:, i * d:(i + 1) * d]
        cols.append(jnp.sum(zi ** 2, axis=1, keepdims=True))
    s = jnp.concatenate(cols, axis=1)
    s = (s + eta * d) / ((eta + 1.0) * d)
    s = s / jnp.sum(s, axis=1, keepdims=True)
    return x_bar, s, z


# --------------------------------- main ------------------------------------ #
if __name__ == "__main__":
    # Small, forward-consistent shapes; N=512 with TM=256 exercises the batch
    # grid (2 steps, megacore-divisible) and fills MXU rows.
    N = 512
    n_input = 64
    n_enc_1 = n_enc_2 = n_enc_3 = 128
    n_dec_1 = n_dec_2 = n_dec_3 = 128
    n_z = 32
    n_clusters = 4
    d = 8            # args.d : subspace dimension (n_clusters * d == n_z)
    eta = 5.0        # args.eta

    layer_dims = [
        (n_input, n_enc_1), (n_enc_1, n_enc_2), (n_enc_2, n_enc_3),
        (n_enc_3, n_z),
        (n_z, n_dec_1), (n_dec_1, n_dec_2), (n_dec_2, n_dec_3),
        (n_dec_3, n_input),
    ]

    key = jax.random.PRNGKey(0)
    keys = jax.random.split(key, 2 * len(layer_dims) + 2)

    params = []
    for li, (fin, fout) in enumerate(layer_dims):
        w = 0.05 * jax.random.normal(keys[2 * li], (fin, fout), jnp.float32)
        b = 0.05 * jax.random.normal(keys[2 * li + 1], (1, fout), jnp.float32)
        params.append((w, b))

    D = 0.05 * jax.random.normal(keys[-2], (n_z, n_clusters * d), jnp.float32)
    x = jax.random.normal(keys[-1], (N, n_input), jnp.float32)

    run = functools.partial(edesc_forward, n_clusters=n_clusters, d=d, eta=eta,
                            tm=256)
    x_bar, s, z = run(x, params, D)
    jax.block_until_ready((x_bar, s, z))

    # Correctness check against the f32 pure-JAX reference (bf16 MXU operands
    # in the kernel => widened tolerance).
    rx, rs, rz = edesc_reference(x, params, D, n_clusters=n_clusters, d=d,
                                 eta=eta)
    assert jnp.allclose(x_bar, rx, rtol=1e-2, atol=1e-2)
    assert jnp.allclose(s, rs, rtol=1e-2, atol=1e-2)
    assert jnp.allclose(z, rz, rtol=1e-2, atol=1e-2)

    # TODO(synk): pretrain()/total_loss() are training-time (Adam optimizer,
    # KL divergence, D-constraints) and are intentionally not part of the
    # forward kernel.

    print("KERNEL_OK")
</pallas_src>

<mosaic_0001>
module attributes {stable_mosaic.version = 11 : i64} {
  func.func @kernel(%arg0: i32, %arg1: memref<256x64xbf16, #tpu.memory_space<vmem>>, %arg2: memref<64x128xbf16, #tpu.memory_space<vmem>>, %arg3: memref<1x128xf32, #tpu.memory_space<vmem>>, %arg4: memref<128x128xbf16, #tpu.memory_space<vmem>>, %arg5: memref<1x128xf32, #tpu.memory_space<vmem>>, %arg6: memref<128x128xbf16, #tpu.memory_space<vmem>>, %arg7: memref<1x128xf32, #tpu.memory_space<vmem>>, %arg8: memref<128x32xbf16, #tpu.memory_space<vmem>>, %arg9: memref<1x32xf32, #tpu.memory_space<vmem>>, %arg10: memref<32x160xbf16, #tpu.memory_space<vmem>>, %arg11: memref<1x128xf32, #tpu.memory_space<vmem>>, %arg12: memref<128x128xbf16, #tpu.memory_space<vmem>>, %arg13: memref<1x128xf32, #tpu.memory_space<vmem>>, %arg14: memref<128x128xbf16, #tpu.memory_space<vmem>>, %arg15: memref<1x128xf32, #tpu.memory_space<vmem>>, %arg16: memref<128x64xbf16, #tpu.memory_space<vmem>>, %arg17: memref<1x64xf32, #tpu.memory_space<vmem>>, %arg18: memref<32x4xbf16, #tpu.memory_space<vmem>>, %arg19: memref<256x128xf32, #tpu.memory_space<vmem>>) attributes {dimension_semantics = [#tpu.dimension_semantics<parallel>], iteration_bounds = array<i64: 2>, scalar_prefetch = 0 : i64, scratch_operands = 0 : i64, tpu.core_type = #tpu.core_type<tc>, window_params = [{transform_indices = @transform_0, window_bounds = array<i64: 256, 64>}, {pipeline_mode = #tpu.pipeline_mode<synchronous>, transform_indices = @transform_1, window_bounds = array<i64: 64, 128>}, {pipeline_mode = #tpu.pipeline_mode<synchronous>, transform_indices = @transform_2, window_bounds = array<i64: 1, 128>}, {pipeline_mode = #tpu.pipeline_mode<synchronous>, transform_indices = @transform_3, window_bounds = array<i64: 128, 128>}, {pipeline_mode = #tpu.pipeline_mode<synchronous>, transform_indices = @transform_4, window_bounds = array<i64: 1, 128>}, {pipeline_mode = #tpu.pipeline_mode<synchronous>, transform_indices = @transform_5, window_bounds = array<i64: 128, 128>}, {pipeline_mode = #tpu.pipeline_mode<synchronous>, transform_indices = @transform_6, window_bounds = array<i64: 1, 128>}, {pipeline_mode = #tpu.pipeline_mode<synchronous>, transform_indices = @transform_7, window_bounds = array<i64: 128, 32>}, {pipeline_mode = #tpu.pipeline_mode<synchronous>, transform_indices = @transform_8, window_bounds = array<i64: 1, 32>}, {pipeline_mode = #tpu.pipeline_mode<synchronous>, transform_indices = @transform_9, window_bounds = array<i64: 32, 160>}, {pipeline_mode = #tpu.pipeline_mode<synchronous>, transform_indices = @transform_10, window_bounds = array<i64: 1, 128>}, {pipeline_mode = #tpu.pipeline_mode<synchronous>, transform_indices = @transform_11, window_bounds = array<i64: 128, 128>}, {pipeline_mode = #tpu.pipeline_mode<synchronous>, transform_indices = @transform_12, window_bounds = array<i64: 1, 128>}, {pipeline_mode = #tpu.pipeline_mode<synchronous>, transform_indices = @transform_13, window_bounds = array<i64: 128, 128>}, {pipeline_mode = #tpu.pipeline_mode<synchronous>, transform_indices = @transform_14, window_bounds = array<i64: 1, 128>}, {pipeline_mode = #tpu.pipeline_mode<synchronous>, transform_indices = @transform_15, window_bounds = array<i64: 128, 64>}, {pipeline_mode = #tpu.pipeline_mode<synchronous>, transform_indices = @transform_16, window_bounds = array<i64: 1, 64>}, {pipeline_mode = #tpu.pipeline_mode<synchronous>, transform_indices = @transform_17, window_bounds = array<i64: 32, 4>}, {transform_indices = @transform_18, window_bounds = array<i64: 256, 128>}]} {
    %c0 = arith.constant 0 : index
    %c0_0 = arith.constant 0 : index
    %0 = vector.load %arg1[%c0, %c0_0] : memref<256x64xbf16, #tpu.memory_space<vmem>>, vector<256x64xbf16>
    %c0_1 = arith.constant 0 : index
    %c0_2 = arith.constant 0 : index
    %1 = vector.load %arg2[%c0_1, %c0_2] : memref<64x128xbf16, #tpu.memory_space<vmem>>, vector<64x128xbf16>
    %cst = arith.constant dense<0.000000e+00> : vector<256x128xf32>
    %2 = tpu.matmul %0, %1, %cst {dimension_numbers = #tpu.dot_dimension_numbers<[1], [0], [0], [1], [0, 0, 1, 1], [], []>} : vector<256x64xbf16>, vector<64x128xbf16>, vector<256x128xf32> -> vector<256x128xf32>
    %c0_3 = arith.constant 0 : index
    %c0_4 = arith.constant 0 : index
    %3 = vector.load %arg3[%c0_3, %c0_4] : memref<1x128xf32, #tpu.memory_space<vmem>>, vector<1x128xf32>
    %4 = vector.broadcast %3 : vector<1x128xf32> to vector<256x128xf32>
    %5 = arith.addf %2, %4 : vector<256x128xf32>
    %cst_5 = arith.constant 0.000000e+00 : f32
    %6 = vector.broadcast %cst_5 : f32 to vector<256x128xf32>
    %7 = arith.maximumf %5, %6 : vector<256x128xf32>
    %8 = arith.truncf %7 : vector<256x128xf32> to vector<256x128xbf16>
    %c0_6 = arith.constant 0 : index
    %c0_7 = arith.constant 0 : index
    %9 = vector.load %arg4[%c0_6, %c0_7] : memref<128x128xbf16, #tpu.memory_space<vmem>>, vector<128x128xbf16>
    %cst_8 = arith.constant dense<0.000000e+00> : vector<256x128xf32>
    %10 = tpu.matmul %8, %9, %cst_8 {dimension_numbers = #tpu.dot_dimension_numbers<[1], [0], [0], [1], [0, 0, 1, 1], [], []>} : vector<256x128xbf16>, vector<128x128xbf16>, vector<256x128xf32> -> vector<256x128xf32>
    %c0_9 = arith.constant 0 : index
    %c0_10 = arith.constant 0 : index
    %11 = vector.load %arg5[%c0_9, %c0_10] : memref<1x128xf32, #tpu.memory_space<vmem>>, vector<1x128xf32>
    %12 = vector.broadcast %11 : vector<1x128xf32> to vector<256x128xf32>
    %13 = arith.addf %10, %12 : vector<256x128xf32>
    %cst_11 = arith.constant 0.000000e+00 : f32
    %14 = vector.broadcast %cst_11 : f32 to vector<256x128xf32>
    %15 = arith.maximumf %13, %14 : vector<256x128xf32>
    %16 = arith.truncf %15 : vector<256x128xf32> to vector<256x128xbf16>
    %c0_12 = arith.constant 0 : index
    %c0_13 = arith.constant 0 : index
    %17 = vector.load %arg6[%c0_12, %c0_13] : memref<128x128xbf16, #tpu.memory_space<vmem>>, vector<128x128xbf16>
    %cst_14 = arith.constant dense<0.000000e+00> : vector<256x128xf32>
    %18 = tpu.matmul %16, %17, %cst_14 {dimension_numbers = #tpu.dot_dimension_numbers<[1], [0], [0], [1], [0, 0, 1, 1], [], []>} : vector<256x128xbf16>, vector<128x128xbf16>, vector<256x128xf32> -> vector<256x128xf32>
    %c0_15 = arith.constant 0 : index
    %c0_16 = arith.constant 0 : index
    %19 = vector.load %arg7[%c0_15, %c0_16] : memref<1x128xf32, #tpu.memory_space<vmem>>, vector<1x128xf32>
    %20 = vector.broadcast %19 : vector<1x128xf32> to vector<256x128xf32>
    %21 = arith.addf %18, %20 : vector<256x128xf32>
    %cst_17 = arith.constant 0.000000e+00 : f32
    %22 = vector.broadcast %cst_17 : f32 to vector<256x128xf32>
    %23 = arith.maximumf %21, %22 : vector<256x128xf32>
    %24 = arith.truncf %23 : vector<256x128xf32> to vector<256x128xbf16>
    %c0_18 = arith.constant 0 : index
    %c0_19 = arith.constant 0 : index
    %25 = vector.load %arg8[%c0_18, %c0_19] : memref<128x32xbf16, #tpu.memory_space<vmem>>, vector<128x32xbf16>
    %cst_20 = arith.constant dense<0.000000e+00> : vector<256x32xf32>
    %26 = tpu.matmul %24, %25, %cst_20 {dimension_numbers = #tpu.dot_dimension_numbers<[1], [0], [0], [1], [0, 0, 1, 1], [], []>} : vector<256x128xbf16>, vector<128x32xbf16>, vector<256x32xf32> -> vector<256x32xf32>
    %c0_21 = arith.constant 0 : index
    %c0_22 = arith.constant 0 : index
    %27 = vector.load %arg9[%c0_21, %c0_22] : memref<1x32xf32, #tpu.memory_space<vmem>>, vector<1x32xf32>
    %28 = vector.broadcast %27 : vector<1x32xf32> to vector<256x32xf32>
    %29 = arith.addf %26, %28 : vector<256x32xf32>
    %30 = arith.truncf %29 : vector<256x32xf32> to vector<256x32xbf16>
    %c0_23 = arith.constant 0 : index
    %c0_24 = arith.constant 0 : index
    %31 = vector.load %arg10[%c0_23, %c0_24] : memref<32x160xbf16, #tpu.memory_space<vmem>>, vector<32x160xbf16>
    %cst_25 = arith.constant dense<0.000000e+00> : vector<256x160xf32>
    %32 = tpu.matmul %30, %31, %cst_25 {dimension_numbers = #tpu.dot_dimension_numbers<[1], [0], [0], [1], [0, 0, 1, 1], [], []>} : vector<256x32xbf16>, vector<32x160xbf16>, vector<256x160xf32> -> vector<256x160xf32>
    %33 = vector.extract_strided_slice %32 {offsets = [0, 0], sizes = [256, 128], strides = [1, 1]} : vector<256x160xf32> to vector<256x128xf32>
    %c0_26 = arith.constant 0 : index
    %c0_27 = arith.constant 0 : index
    %34 = vector.load %arg11[%c0_26, %c0_27] : memref<1x128xf32, #tpu.memory_space<vmem>>, vector<1x128xf32>
    %35 = vector.broadcast %34 : vector<1x128xf32> to vector<256x128xf32>
    %36 = arith.addf %33, %35 : vector<256x128xf32>
    %cst_28 = arith.constant 0.000000e+00 : f32
    %37 = vector.broadcast %cst_28 : f32 to vector<256x128xf32>
    %38 = arith.maximumf %36, %37 : vector<256x128xf32>
    %39 = arith.truncf %38 : vector<256x128xf32> to vector<256x128xbf16>
    %40 = vector.extract_strided_slice %32 {offsets = [0, 128], sizes = [256, 32], strides = [1, 1]} : vector<256x160xf32> to vector<256x32xf32>
    %c0_29 = arith.constant 0 : index
    %c0_30 = arith.constant 0 : index
    %41 = vector.load %arg12[%c0_29, %c0_30] : memref<128x128xbf16, #tpu.memory_space<vmem>>, vector<128x128xbf16>
    %cst_31 = arith.constant dense<0.000000e+00> : vector<256x128xf32>
    %42 = tpu.matmul %39, %41, %cst_31 {dimension_numbers = #tpu.dot_dimension_numbers<[1], [0], [0], [1], [0, 0, 1, 1], [], []>} : vector<256x128xbf16>, vector<128x128xbf16>, vector<256x128xf32> -> vector<256x128xf32>
    %c0_32 = arith.constant 0 : index
    %c0_33 = arith.constant 0 : index
    %43 = vector.load %arg13[%c0_32, %c0_33] : memref<1x128xf32, #tpu.memory_space<vmem>>, vector<1x128xf32>
    %44 = vector.broadcast %43 : vector<1x128xf32> to vector<256x128xf32>
    %45 = arith.addf %42, %44 : vector<256x128xf32>
    %cst_34 = arith.constant 0.000000e+00 : f32
    %46 = vector.broadcast %cst_34 : f32 to vector<256x128xf32>
    %47 = arith.maximumf %45, %46 : vector<256x128xf32>
    %48 = arith.truncf %47 : vector<256x128xf32> to vector<256x128xbf16>
    %c0_35 = arith.constant 0 : index
    %c0_36 = arith.constant 0 : index
    %49 = vector.load %arg14[%c0_35, %c0_36] : memref<128x128xbf16, #tpu.memory_space<vmem>>, vector<128x128xbf16>
    %cst_37 = arith.constant dense<0.000000e+00> : vector<256x128xf32>
    %50 = tpu.matmul %48, %49, %cst_37 {dimension_numbers = #tpu.dot_dimension_numbers<[1], [0], [0], [1], [0, 0, 1, 1], [], []>} : vector<256x128xbf16>, vector<128x128xbf16>, vector<256x128xf32> -> vector<256x128xf32>
    %c0_38 = arith.constant 0 : index
    %c0_39 = arith.constant 0 : index
    %51 = vector.load %arg15[%c0_38, %c0_39] : memref<1x128xf32, #tpu.memory_space<vmem>>, vector<1x128xf32>
    %52 = vector.broadcast %51 : vector<1x128xf32> to vector<256x128xf32>
    %53 = arith.addf %50, %52 : vector<256x128xf32>
    %cst_40 = arith.constant 0.000000e+00 : f32
    %54 = vector.broadcast %cst_40 : f32 to vector<256x128xf32>
    %55 = arith.maximumf %53, %54 : vector<256x128xf32>
    %56 = arith.truncf %55 : vector<256x128xf32> to vector<256x128xbf16>
    %c0_41 = arith.constant 0 : index
    %c0_42 = arith.constant 0 : index
    %57 = vector.load %arg16[%c0_41, %c0_42] : memref<128x64xbf16, #tpu.memory_space<vmem>>, vector<128x64xbf16>
    %cst_43 = arith.constant dense<0.000000e+00> : vector<256x64xf32>
    %58 = tpu.matmul %56, %57, %cst_43 {dimension_numbers = #tpu.dot_dimension_numbers<[1], [0], [0], [1], [0, 0, 1, 1], [], []>} : vector<256x128xbf16>, vector<128x64xbf16>, vector<256x64xf32> -> vector<256x64xf32>
    %c0_44 = arith.constant 0 : index
    %c0_45 = arith.constant 0 : index
    %59 = vector.load %arg17[%c0_44, %c0_45] : memref<1x64xf32, #tpu.memory_space<vmem>>, vector<1x64xf32>
    %60 = vector.broadcast %59 : vector<1x64xf32> to vector<256x64xf32>
    %61 = arith.addf %58, %60 : vector<256x64xf32>
    %62 = arith.mulf %40, %40 : vector<256x32xf32>
    %63 = arith.truncf %62 : vector<256x32xf32> to vector<256x32xbf16>
    %c0_46 = arith.constant 0 : index
    %c0_47 = arith.constant 0 : index
    %64 = vector.load %arg18[%c0_46, %c0_47] : memref<32x4xbf16, #tpu.memory_space<vmem>>, vector<32x4xbf16>
    %cst_48 = arith.constant dense<0.000000e+00> : vector<256x4xf32>
    %65 = tpu.matmul %63, %64, %cst_48 {dimension_numbers = #tpu.dot_dimension_numbers<[1], [0], [0], [1], [0, 0, 1, 1], [], []>} : vector<256x32xbf16>, vector<32x4xbf16>, vector<256x4xf32> -> vector<256x4xf32>
    %cst_49 = arith.constant 4.000000e+01 : f32
    %66 = vector.broadcast %cst_49 : f32 to vector<256x4xf32>
    %67 = arith.addf %65, %66 : vector<256x4xf32>
    %cst_50 = arith.constant 0.020833334 : f32
    %68 = vector.broadcast %cst_50 : f32 to vector<256x4xf32>
    %69 = arith.mulf %67, %68 : vector<256x4xf32>
    %cst_51 = arith.constant dense<0.000000e+00> : vector<256xf32>
    %70 = vector.multi_reduction <add>, %69, %cst_51 [1] : vector<256x4xf32> to vector<256xf32>
    %71 = vector.shape_cast %70 : vector<256xf32> to vector<256x1xf32>
    %72 = vector.broadcast %71 : vector<256x1xf32> to vector<256x4xf32>
    %73 = arith.divf %69, %72 : vector<256x4xf32>
    %cst_52 = arith.constant 0.000000e+00 : f32
    %74 = vector.broadcast %cst_52 : f32 to vector<256x28xf32>
    %75 = tpu.concatenate %61, %29, %73, %74 in 1 : vector<256x64xf32>, vector<256x32xf32>, vector<256x4xf32>, vector<256x28xf32> -> vector<256x128xf32>
    %c0_53 = arith.constant 0 : index
    %c0_54 = arith.constant 0 : index
    %76 = vector.load %arg19[%c0_53, %c0_54] : memref<256x128xf32, #tpu.memory_space<vmem>>, vector<256x128xf32>
    tpu.vector_store %arg19[%c0_53, %c0_54], %75 {strides = array<i32>} : memref<256x128xf32, #tpu.memory_space<vmem>>, vector<256x128xf32>,
    return
  }
  func.func @transform_0(%arg0: i32) -> (i32, i32) {
    %c0_i32 = arith.constant 0 : i32
    %c0_i32_0 = arith.constant 0 : i32
    return %arg0, %c0_i32 : i32, i32
  }
  func.func @transform_1(%arg0: i32) -> (i32, i32) {
    %c0_i32 = arith.constant 0 : i32
    %c0_i32_0 = arith.constant 0 : i32
    %c0_i32_1 = arith.constant 0 : i32
    return %c0_i32, %c0_i32_0 : i32, i32
  }
  func.func @transform_2(%arg0: i32) -> (i32, i32) {
    %c0_i32 = arith.constant 0 : i32
    %c0_i32_0 = arith.constant 0 : i32
    %c0_i32_1 = arith.constant 0 : i32
    return %c0_i32, %c0_i32_0 : i32, i32
  }
  func.func @transform_3(%arg0: i32) -> (i32, i32) {
    %c0_i32 = arith.constant 0 : i32
    %c0_i32_0 = arith.constant 0 : i32
    %c0_i32_1 = arith.constant 0 : i32
    return %c0_i32, %c0_i32_0 : i32, i32
  }
  func.func @transform_4(%arg0: i32) -> (i32, i32) {
    %c0_i32 = arith.constant 0 : i32
    %c0_i32_0 = arith.constant 0 : i32
    %c0_i32_1 = arith.constant 0 : i32
    return %c0_i32, %c0_i32_0 : i32, i32
  }
  func.func @transform_5(%arg0: i32) -> (i32, i32) {
    %c0_i32 = arith.constant 0 : i32
    %c0_i32_0 = arith.constant 0 : i32
    %c0_i32_1 = arith.constant 0 : i32
    return %c0_i32, %c0_i32_0 : i32, i32
  }
  func.func @transform_6(%arg0: i32) -> (i32, i32) {
    %c0_i32 = arith.constant 0 : i32
    %c0_i32_0 = arith.constant 0 : i32
    %c0_i32_1 = arith.constant 0 : i32
    return %c0_i32, %c0_i32_0 : i32, i32
  }
  func.func @transform_7(%arg0: i32) -> (i32, i32) {
    %c0_i32 = arith.constant 0 : i32
    %c0_i32_0 = arith.constant 0 : i32
    %c0_i32_1 = arith.constant 0 : i32
    return %c0_i32, %c0_i32_0 : i32, i32
  }
  func.func @transform_8(%arg0: i32) -> (i32, i32) {
    %c0_i32 = arith.constant 0 : i32
    %c0_i32_0 = arith.constant 0 : i32
    %c0_i32_1 = arith.constant 0 : i32
    return %c0_i32, %c0_i32_0 : i32, i32
  }
  func.func @transform_9(%arg0: i32) -> (i32, i32) {
    %c0_i32 = arith.constant 0 : i32
    %c0_i32_0 = arith.constant 0 : i32
    %c0_i32_1 = arith.constant 0 : i32
    return %c0_i32, %c0_i32_0 : i32, i32
  }
  func.func @transform_10(%arg0: i32) -> (i32, i32) {
    %c0_i32 = arith.constant 0 : i32
    %c0_i32_0 = arith.constant 0 : i32
    %c0_i32_1 = arith.constant 0 : i32
    return %c0_i32, %c0_i32_0 : i32, i32
  }
  func.func @transform_11(%arg0: i32) -> (i32, i32) {
    %c0_i32 = arith.constant 0 : i32
    %c0_i32_0 = arith.constant 0 : i32
    %c0_i32_1 = arith.constant 0 : i32
    return %c0_i32, %c0_i32_0 : i32, i32
  }
  func.func @transform_12(%arg0: i32) -> (i32, i32) {
    %c0_i32 = arith.constant 0 : i32
    %c0_i32_0 = arith.constant 0 : i32
    %c0_i32_1 = arith.constant 0 : i32
    return %c0_i32, %c0_i32_0 : i32, i32
  }
  func.func @transform_13(%arg0: i32) -> (i32, i32) {
    %c0_i32 = arith.constant 0 : i32
    %c0_i32_0 = arith.constant 0 : i32
    %c0_i32_1 = arith.constant 0 : i32
    return %c0_i32, %c0_i32_0 : i32, i32
  }
  func.func @transform_14(%arg0: i32) -> (i32, i32) {
    %c0_i32 = arith.constant 0 : i32
    %c0_i32_0 = arith.constant 0 : i32
    %c0_i32_1 = arith.constant 0 : i32
    return %c0_i32, %c0_i32_0 : i32, i32
  }
  func.func @transform_15(%arg0: i32) -> (i32, i32) {
    %c0_i32 = arith.constant 0 : i32
    %c0_i32_0 = arith.constant 0 : i32
    %c0_i32_1 = arith.constant 0 : i32
    return %c0_i32, %c0_i32_0 : i32, i32
  }
  func.func @transform_16(%arg0: i32) -> (i32, i32) {
    %c0_i32 = arith.constant 0 : i32
    %c0_i32_0 = arith.constant 0 : i32
    %c0_i32_1 = arith.constant 0 : i32
    return %c0_i32, %c0_i32_0 : i32, i32
  }
  func.func @transform_17(%arg0: i32) -> (i32, i32) {
    %c0_i32 = arith.constant 0 : i32
    %c0_i32_0 = arith.constant 0 : i32
    %c0_i32_1 = arith.constant 0 : i32
    return %c0_i32, %c0_i32_0 : i32, i32
  }
  func.func @transform_18(%arg0: i32) -> (i32, i32) {
    %c0_i32 = arith.constant 0 : i32
    %c0_i32_0 = arith.constant 0 : i32
    return %arg0, %c0_i32 : i32, i32
  }
}

</mosaic_0001>

<bundles_post_ra>
// kernel: tpu_custom_call.1
= control target key start
LH: loop header
LB: loop body
LE: loop exit
PB: predicated region body
PF: predicated region fallthrough
CT: control target
= control target key end

     0   :  { %s6362_s0 = inlined_call_operand.vmem [shape: bf16[512,64], index: 0, kind: input, shape index: {}]   ;;  %s6363_s1 = inlined_call_operand.vmem [shape: bf16[64,128], index: 1, kind: input, shape index: {}]   ;;  %s6364_s2 = inlined_call_operand.vmem [shape: f32[1,128], index: 2, kind: input, shape index: {}]   ;;  %s6365_s3 = inlined_call_operand.vmem [shape: bf16[128,128], index: 3, kind: input, shape index: {}]   ;;  %s6366_s4 = inlined_call_operand.vmem [shape: f32[1,128], index: 4, kind: input, shape index: {}]   ;;  %s6367_s5 = inlined_call_operand.vmem [shape: bf16[128,128], index: 5, kind: input, shape index: {}]   ;;  %s6368_s6 = inlined_call_operand.vmem [shape: f32[1,128], index: 6, kind: input, shape index: {}]   ;;  %s6369_s7 = inlined_call_operand.vmem [shape: bf16[128,32], index: 7, kind: input, shape index: {}]   ;;  %s6370_s8 = inlined_call_operand.vmem [shape: f32[1,32], index: 8, kind: input, shape index: {}]   ;;  %s6371_s9 = inlined_call_operand.vmem [shape: bf16[32,160], index: 9, kind: input, shape index: {}]   ;;  %s6372_s10 = inlined_call_operand.vmem [shape: f32[1,128], index: 10, kind: input, shape index: {}]   ;;  %s6373_s11 = inlined_call_operand.vmem [shape: bf16[128,128], index: 11, kind: input, shape index: {}]   ;;  %s6374_s12 = inlined_call_operand.vmem [shape: f32[1,128], index: 12, kind: input, shape index: {}]   ;;  %s6375_s13 = inlined_call_operand.vmem [shape: bf16[128,128], index: 13, kind: input, shape index: {}]   ;;  %s6376_s14 = inlined_call_operand.vmem [shape: f32[1,128], index: 14, kind: input, shape index: {}]   ;;  %s6377_s15 = inlined_call_operand.vmem [shape: bf16[128,64], index: 15, kind: input, shape index: {}]   ;;  %s6378_s16 = inlined_call_operand.vmem [shape: f32[1,64], index: 16, kind: input, shape index: {}]   ;;  %s6379_s17 = inlined_call_operand.vmem [shape: bf16[32,4], index: 17, kind: input, shape index: {}]   ;;  %s6380_s18 = inlined_call_operand.hbm [shape: f32[512,128], index: 18, kind: output, shape index: {}]  }
   0x1   :  { %6391 = sst [smem:[#allocation40_spill]] %s6362_s0 }
   0x2   :  { %6392 = sst [smem:[#allocation41_spill]] %s6363_s1 }
   0x3   :  { %6393 = sst [smem:[#allocation42_spill]] %s6364_s2 }
   0x4   :  { %6394 = sst [smem:[#allocation43_spill]] %s6380_s18 }
   0x5   :  { %23 = vsyncpa [#allocation3], 0 }
   0x6   :  { %25 = vsyncpa [#allocation3 + $0x1], 0  ;;  %s4922_s27 = smov 0   ;;  %s4924_s28 = smov 0  }
   0x7   :  { %s4926_s29 = smov 0   ;;  %s4928_s30 = smov 0  }
   0x8 LB: > { %6395 = sst [smem:[#allocation5_spill]] %s4807_s27  ;;  %s4943_s0 = sadd.s32 4294967295, %s4819_s30   ;;  %s4819_s30 = sphi %s4928_s30, %s6471_s30   ;;  %s4815_s29 = sphi %s4926_s29, %s6473_s29   ;;  %s4811_s28 = sphi %s4924_s28, %s6475_s28   ;;  %s4807_s27 = sphi %s4922_s27, %s6474_s27  }
   0x9   : > { %6396 = sst [smem:[#allocation6_spill]] %s4815_s29  ;;  %s3868_s19 = sadd.s32 4294967294, %s4819_s30  }
   0xa   : > { %6397 = sst [smem:[#allocation7_spill]] %s4819_s30  ;;  %s4947_s1 = sadd.s32 1, %s4819_s30  }
   0xb   : > { %6398 = sst [smem:[#allocation8_spill]] %s4947_s1  ;;  %s421_s20 = sadd.s32 1, %s4815_s29 }
   0xc   : > { %s418_s21 = ssub.s32 %s4819_s30, %s4947_s1  ;;  %p431_p0 = scmp.ne.s32.totalorder %s4815_s29, %s4811_s28 }
   0xd   : > { %p419_p1 = scmp.eq.s32.totalorder %s418_s21, 0  ;;  %p432_p2 = scmp.eq.s32.totalorder %s4943_s0, 1 }
   0xe   : > { %p437_p3 = scmp.ne.s32.totalorder %s4811_s28, %s4807_s27  ;;  %p438_p4 = scmp.eq.s32.totalorder %s3868_s19, 1 }
   0xf   : > { %s4958_s22 = scalar_select %p419_p1, %s4815_s29, %s421_s20  }
  0x10   : > { %p4960_p5 = por %p432_p2, %p431_p0  ;;  %p4964_p6 = por %p438_p4, %p437_p3 }
  0x11   : > { %6399 = sst [smem:[#allocation9_spill]] %s4958_s22  ;;  %p3871_p7 = scmp.ge.s32.totalorder %s4819_s30, 1 }
  0x12   : > { %s6400_s2 = scalar_select %p4960_p5, 1, 0 }
  0x13   : > { %s6402_s23 = scalar_select %p4964_p6, 1, 0 }
  0x14   : > { %6401 = sst [smem:[#allocation10_spill]] %s6400_s2  ;;  %p516_p8 = scmp.lt.s32.totalorder %s4819_s30, 3 }
  0x15   : > { %6403 = sst [smem:[#allocation11_spill]] %s6402_s23 }
  0x16   : > { %p517_p9 = pnand %p3871_p7, %p516_p8 }
  0x18   : > { %520 = sbr.rel (%p517_p9) target bundleno = 2079 (0x81f), region = 92 }
  0x1f   : > { %s6404_s26 = sld [smem:[#allocation41_spill]]  ;;  %s3873_s19 = sshll.u32 %s4943_s0, 5  ;;  %v4637_v3 = vld [vmem:[%s6365_s3] sm:$0xff]   ;;  %v4638_v4 = vld [vmem:[%s6365_s3 + $0x8] sm:$0xff]   ;;  %vm729_vm0 = vcmask 523264   ;;  %v4639_v7 = vld [vmem:[%s6365_s3 + $0x10] sm:$0xff]  }
  0x20   : > { %p571_p10 = scmp.lt.s32.totalorder %s3873_s19, 63  ;;  %s6405_s2 = sld [smem:[#allocation40_spill]]  ;;  %4233 = vmatprep.subr.bf16.mxu1 %v4637_v3  ;;  %v4640_v12 = vld [vmem:[%s6365_s3 + $0x18] sm:$0xff]   ;;  %v4641_v13 = vld [vmem:[%s6365_s3 + $0x20] sm:$0xff]   ;;  %v4642_v14 = vld [vmem:[%s6365_s3 + $0x28] sm:$0xff]   ;;  %vm1819_vm1 = vcmask 261120  }
  0x21   : > { %4234 = vmatpush3.bf16.msra.mxu1 %v4637_v3  ;;  %v4643_v26 = vld [vmem:[%s6365_s3 + $0x30] sm:$0xff]   ;;  %v4644_v27 = vld [vmem:[%s6365_s3 + $0x38] sm:$0xff]   ;;  %v4645_v28 = vld [vmem:[%s6367_s5] sm:$0xff]   ;;  %s4822_s25 = smov 64   ;;  %vm3245_vm2 = vcmask 31744   ;;  %s4823_s30 = smov 96  }
  0x22   : > { %s6477_s19 = smov (!%p571_p10, %s3873_s19), 63  ;;  %4235 = vmatprep.subr.bf16.mxu1 %v4638_v4  ;;  %v4646_v29 = vld [vmem:[%s6367_s5 + $0x8] sm:$0xff]   ;;  %v4647_v30 = vld [vmem:[%s6367_s5 + $0x10] sm:$0xff]   ;;  %v4648_v31 = vld [vmem:[%s6367_s5 + $0x18] sm:$0xff]   ;;  %s567_s23 = sand.u32 1, %s4811_s28   ;;  %vm3694_vm3 = vcmask 785408  }
  0x23   : > { %s3874_s24 = sshll.u32 %s6477_s19, 2  ;;  %v4649_v32 = vld [vmem:[%s6367_s5 + $0x20] sm:$0xff]   ;;  %v4650_v33 = vld [vmem:[%s6367_s5 + $0x28] sm:$0xff]   ;;  %v4651_v34 = vld [vmem:[%s6367_s5 + $0x30] sm:$0xff]   ;;  %s3872_s19 = sshll.u32 %s567_s23, 8  ;;  %vm3727_vm4 = vcmask 818176  }
  0x24   : > { %s6467_s1 = sld [smem:[#allocation43_spill]]  ;;  %s4824_s22 = smov [#allocation2]  }
  0x25   : > { %v4617_v0 = vld [vmem:[%s6404_s26] sm:$0xff]   ;;  %v4618_v1 = vld [vmem:[%s6404_s26 + $0x8] sm:$0xff]   ;;  %v4619_v2 = vld [vmem:[%s6404_s26 + $0x10] sm:$0xff]   ;;  %4236 = vmatpush3.bf16.msra.mxu1 %v4638_v4 }
  0x26   : > { %4193 = vmatprep.subr.bf16.mxu0 %v4617_v0  ;;  %v4620_v5 = vld [vmem:[%s6404_s26 + $0x18] sm:$0xff]   ;;  %s4992_s29 = scalar_lea.vmem %s6405_s2, %s3874_s24  ;;  %4237 = vmatprep.subr.bf16.mxu1 %v4639_v7  ;;  %s6094_s24 = scalar_lea.vmem [#allocation2], %s3872_s19 }
  0x27   : > { %4194 = vmatpush3.bf16.msra.mxu0 %v4617_v0  ;;  %v4621_v6 = vld [vmem:[%s4992_s29] sm:$0xff]   ;;  %v4622_v8 = vld [vmem:[%s4992_s29 + $0x8] sm:$0xff]   ;;  %v4623_v9 = vld [vmem:[%s4992_s29 + $0x10] sm:$0xff]   ;;  %s3806_s20 = sshll.u32 %s6094_s24, 4  ;;  %s4761_s2 = sshll.u32 %s4824_s22, 4  ;;  %s6312_s20 = int_to_ptr.vmem [resolvable:$true] %s3806_s20  ;;  %s4762_s2 = int_to_ptr.vmem [resolvable:$false] %s4761_s2 }
  0x28   : > { %4195 = vmatprep.subr.bf16.mxu0 %v4618_v1  ;;  %4201 = vmatprep.mubr.msk.bf16.mxu0 %vm729_vm0, %v4621_v6  ;;  %v4624_v10 = vld [vmem:[%s4992_s29 + $0x18] sm:$0xff]   ;;  %v4625_v11 = vld [vmem:[%s4992_s29 + $0x20] sm:$0xff]   ;;  %v4626_v15 = vld [vmem:[%s4992_s29 + $0x28] sm:$0xff]   ;;  %s4763_s19 = scalar_lea.vmem %s4762_s2, 8192  ;;  %p4764_p0 = scmp.lt.s32.totalorder %s6312_s20, %s4762_s2 }
  0x29   : > { %4238 = vmatpush3.bf16.msra.mxu1 %v4639_v7  ;;  %v4627_v16 = vld [vmem:[%s4992_s29 + $0x30] sm:$0xff]   ;;  %v4628_v17 = vld [vmem:[%s4992_s29 + $0x38] sm:$0xff]   ;;  %v4629_v18 = vld [vmem:[%s4992_s29 + $0x40] sm:$0xff]  }
  0x2a   : > { %4239 = vmatprep.subr.bf16.mxu1 %v4640_v12  ;;  %v4630_v19 = vld [vmem:[%s4992_s29 + $0x48] sm:$0xff]   ;;  %v4631_v20 = vld [vmem:[%s4992_s29 + $0x50] sm:$0xff]   ;;  %v4632_v21 = vld [vmem:[%s4992_s29 + $0x58] sm:$0xff]  }
  0x2b   : > { %4196 = vmatpush3.bf16.msra.mxu0 %v4618_v1  ;;  %v4633_v22 = vld [vmem:[%s4992_s29 + $0x60] sm:$0xff]   ;;  %v4634_v23 = vld [vmem:[%s4992_s29 + $0x68] sm:$0xff]   ;;  %v4635_v24 = vld [vmem:[%s4992_s29 + $0x70] sm:$0xff]  }
  0x2c   : > { %4197 = vmatprep.subr.bf16.mxu0 %v4619_v2  ;;  %v4636_v25 = vld [vmem:[%s4992_s29 + $0x78] sm:$0xff]   ;;  %s6406_s29 = sld [smem:[#allocation42_spill]] }
  0x2d   : > { %4240 = vmatpush3.bf16.msra.mxu1 %v4640_v12 }
  0x2e   : > { %4241 = vmatprep.subr.bf16.mxu1 %v4641_v13 }
  0x2f   : > { %4198 = vmatpush3.bf16.msra.mxu0 %v4619_v2 }
  0x30   : > { %4199 = vmatprep.subr.bf16.mxu0 %v4620_v5 }
  0x31   : > { %4242 = vmatpush3.bf16.msra.mxu1 %v4641_v13 }
  0x32   : > { %4243 = vmatprep.subr.bf16.mxu1 %v4642_v14  ;;  %v5068_v35 = vld [vmem:[%s6406_s29] ss:$0 sm:$0xff]  ;;  %s6321_s29 = scalar_lea.sflag [#allocation3], %s567_s23 }
  0x33   : > { %4200 = vmatpush3.bf16.msra.mxu0 %v4620_v5 }
  0x34   : > { %4281 = vmatprep.subr.bf16.mxu0 %v4645_v28 }
  0x35   : > { %4244 = vmatpush3.bf16.msra.mxu1 %v4642_v14 }
  0x36   : > { %4202 = vmatmul.mubr.msk.bf16.vlgmr.msra.gmra.mrb[0].mxu0 %vm729_vm0, %v4622_v8  ;;  %4245 = vmatprep.subr.bf16.mxu1 %v4643_v26 }
  0x37   : > { %4205 = vmatprep.mubr.msk.bf16.mxu0 %vm729_vm0, %v4623_v9  ;;  %4282 = vmatpush3.bf16.msra.mxu0 %v4645_v28 }
  0x38   : > { %4283 = vmatprep.subr.bf16.mxu0 %v4646_v29 }
  0x39   : > { %4246 = vmatpush3.bf16.msra.mxu1 %v4643_v26 }
  0x3a   : > { %4247 = vmatprep.subr.bf16.mxu1 %v4644_v27 }
  0x3b   : > { %4284 = vmatpush3.bf16.msra.mxu0 %v4646_v29 }
  0x3c   : > { %4285 = vmatprep.subr.bf16.mxu0 %v4647_v30 }
  0x3d   : > { %4248 = vmatpush3.bf16.msra.mxu1 %v4644_v27 }
  0x3e   : > { %4206 = vmatmul.mubr.msk.bf16.gmra.mrb[4].mxu0 %vm729_vm0, %v4624_v10 }
  0x3f   : > { %4209 = vmatprep.mubr.msk.bf16.mxu0 %vm729_vm0, %v4625_v11  ;;  %4286 = vmatpush3.bf16.msra.mxu0 %v4647_v30 }
  0x40   : > { %4287 = vmatprep.subr.bf16.mxu0 %v4648_v31 }
  0x43   : > { %4288 = vmatpush3.bf16.msra.mxu0 %v4648_v31 }
  0x44   : > { %4289 = vmatprep.subr.bf16.mxu0 %v4649_v32 }
  0x46   : > { %4210 = vmatmul.mubr.msk.bf16.gmra.mrb[8].mxu0 %vm729_vm0, %v4626_v15 }
  0x47   : > { %4213 = vmatprep.mubr.msk.bf16.mxu0 %vm729_vm0, %v4627_v16  ;;  %4290 = vmatpush3.bf16.msra.mxu0 %v4649_v32 }
  0x48   : > { %4291 = vmatprep.subr.bf16.mxu0 %v4650_v33 }
  0x4b   : > { %4292 = vmatpush3.bf16.msra.mxu0 %v4650_v33 }
  0x4c   : > { %4293 = vmatprep.subr.bf16.mxu0 %v4651_v34 }
  0x4e   : > { %4214 = vmatmul.mubr.msk.bf16.gmra.mrb[12].mxu0 %vm729_vm0, %v4628_v17 }
  0x4f   : > { %4217 = vmatprep.mubr.msk.bf16.mxu0 %vm729_vm0, %v4629_v18  ;;  %4294 = vmatpush3.bf16.msra.mxu0 %v4651_v34 }
  0x56   : > { %4218 = vmatmul.mubr.msk.bf16.gmra.mrb[16].mxu0 %vm729_vm0, %v4630_v19 }
  0x57   : > { %4221 = vmatprep.mubr.msk.bf16.mxu0 %vm729_vm0, %v4631_v20 }
  0x5e   : > { %4222 = vmatmul.mubr.msk.bf16.gmra.mrb[20].mxu0 %vm729_vm0, %v4632_v21 }
  0x5f   : > { %4225 = vmatprep.mubr.msk.bf16.mxu0 %vm729_vm0, %v4633_v22 }
  0x66   : > { %4226 = vmatmul.mubr.msk.bf16.gmra.mrb[24].mxu0 %vm729_vm0, %v4634_v23 }
  0x67   : > { %4229 = vmatprep.mubr.msk.bf16.mxu0 %vm729_vm0, %v4635_v24 }
  0x6e   : > { %4230 = vmatmul.mubr.msk.bf16.gmra.mrb[28].mxu0 %vm729_vm0, %v4636_v25 }
 0x109   : > { %v4203_v36 = vpop.f32.mrb[0].mxu0 }
 0x10a   : > { %v821_v37 = vadd.f32 %v4203_v36, %v5068_v35  ;;  %v812_v38 = vpop.f32.mrb[1].mxu0 }
 0x10b   : > { %v813_v39 = vadd.f32 %v5068_v35, %v812_v38  ;;  %v4204_v40 = vpop.f32.mrb[2].mxu0 }
 0x10c   : > { %v824_v41 = vadd.f32 %v4204_v40, %v5068_v35  ;;  %v815_v42 = vpop.f32.mrb[3].mxu0  ;;  %v941_v44 = vmax.f32 %v821_v37, 0.0 }
 0x10d   : > { %v816_v43 = vadd.f32 %v5068_v35, %v815_v42  ;;  %v939_v46 = vmax.f32 %v813_v39, 0.0 }
 0x10e   : > { %v942_v45 = vmax.f32 %v824_v41, 0.0 }
 0x10f   : > { %v940_v47 = vmax.f32 %v816_v43, 0.0 }
 0x110   : > { %v972_v48 = vpack.c.bf16 %v942_v45, %v941_v44 }
 0x111   : > { %v4207_v49 = vpop.f32.mrb[4].mxu0  ;;  %v971_v50 = vpack.c.bf16 %v940_v47, %v939_v46 }
 0x112   : > { %v837_v51 = vadd.f32 %v4207_v49, %v5068_v35  ;;  %v828_v52 = vpop.f32.mrb[5].mxu0 }
 0x113   : > { %v829_v53 = vadd.f32 %v5068_v35, %v828_v52  ;;  %v4208_v54 = vpop.f32.mrb[6].mxu0  ;;  %4249 = vmatprep.mubr.bf16.mxu1 %v971_v50 }
 0x114   : > { %v945_v55 = vmax.f32 %v837_v51, 0.0  ;;  %v840_v56 = vadd.f32 %v4208_v54, %v5068_v35  ;;  %v831_v57 = vpop.f32.mrb[7].mxu0  ;;  %4250 = vmatmul.mubr.bf16.vlgmr.msra.gmra.mrb[0].mxu1 %v972_v48 }
 0x115   : > { %v943_v58 = vmax.f32 %v829_v53, 0.0  ;;  %v832_v59 = vadd.f32 %v5068_v35, %v831_v57 }
 0x116   : > { %v946_v60 = vmax.f32 %v840_v56, 0.0 }
 0x117   : > { %v944_v61 = vmax.f32 %v832_v59, 0.0 }
 0x118   : > { %v974_v62 = vpack.c.bf16 %v946_v60, %v945_v55 }
 0x119   : > { %v973_v63 = vpack.c.bf16 %v944_v61, %v943_v58  ;;  %v4211_v0 = vpop.f32.mrb[8].mxu0 }
 0x11a   : > { %v853_v1 = vadd.f32 %v4211_v0, %v5068_v35  ;;  %v844_v2 = vpop.f32.mrb[9].mxu0 }
 0x11b   : > { %v845_v3 = vadd.f32 %v5068_v35, %v844_v2  ;;  %v4212_v4 = vpop.f32.mrb[10].mxu0  ;;  %4253 = vmatprep.mubr.bf16.mxu1 %v973_v63 }
 0x11c   : > { %v949_v5 = vmax.f32 %v853_v1, 0.0  ;;  %v856_v6 = vadd.f32 %v4212_v4, %v5068_v35  ;;  %v847_v7 = vpop.f32.mrb[11].mxu0  ;;  %4254 = vmatmul.mubr.bf16.gmra.mrb[4].mxu1 %v974_v62 }
 0x11d   : > { %v947_v8 = vmax.f32 %v845_v3, 0.0  ;;  %v848_v9 = vadd.f32 %v5068_v35, %v847_v7 }
 0x11e   : > { %v950_v10 = vmax.f32 %v856_v6, 0.0 }
 0x11f   : > { %v948_v11 = vmax.f32 %v848_v9, 0.0 }
 0x120   : > { %v976_v12 = vpack.c.bf16 %v950_v10, %v949_v5 }
 0x121   : > { %v975_v13 = vpack.c.bf16 %v948_v11, %v947_v8  ;;  %v4215_v14 = vpop.f32.mrb[12].mxu0 }
 0x122   : > { %v869_v15 = vadd.f32 %v4215_v14, %v5068_v35  ;;  %v860_v16 = vpop.f32.mrb[13].mxu0 }
 0x123   : > { %4257 = vmatprep.mubr.bf16.mxu1 %v975_v13  ;;  %v861_v17 = vadd.f32 %v5068_v35, %v860_v16  ;;  %v4216_v18 = vpop.f32.mrb[14].mxu0 }
 0x124   : > { %4258 = vmatmul.mubr.bf16.gmra.mrb[8].mxu1 %v976_v12  ;;  %v953_v19 = vmax.f32 %v869_v15, 0.0  ;;  %v872_v20 = vadd.f32 %v4216_v18, %v5068_v35  ;;  %v863_v21 = vpop.f32.mrb[15].mxu0 }
 0x125   : > { %v951_v22 = vmax.f32 %v861_v17, 0.0  ;;  %v864_v23 = vadd.f32 %v5068_v35, %v863_v21  ;;  %v4652_v21 = vld [vmem:[%s6367_s5 + $0x38] sm:$0xff]  }
 0x126   : > { %v954_v24 = vmax.f32 %v872_v20, 0.0  ;;  %4295 = vmatprep.subr.bf16.mxu0 %v4652_v21 }
 0x127   : > { %v952_v25 = vmax.f32 %v864_v23, 0.0  ;;  %4296 = vmatpush3.bf16.msra.mxu0 %v4652_v21  ;;  %v5114_v23 = vld [vmem:[%s6369_s7 + $0x10] sm:$0xff]  }
 0x128   : > { %v978_v26 = vpack.c.bf16 %v954_v24, %v953_v19  ;;  %v5120_v24 = vld [vmem:[%s6369_s7 + $0x18] sm:$0xff]  }
 0x129   : > { %v977_v27 = vpack.c.bf16 %v952_v25, %v951_v22  ;;  %v4219_v28 = vpop.f32.mrb[16].mxu0  ;;  %v4653_v22 = vld [vmem:[%s6369_s7] sm:$0xff]  }
 0x12a   : > { %v885_v29 = vadd.f32 %v4219_v28, %v5068_v35  ;;  %v876_v30 = vpop.f32.mrb[17].mxu0  ;;  %4329 = vmatprep.subr.bf16.mxu0 %v4653_v22  ;;  %4557 = vmatprep.subr.bf16.mxu1 %v4653_v22  ;;  %v5127_v25 = vld [vmem:[%s6369_s7 + $0x20] sm:$0xff]  }
 0x12b   : > { %4261 = vmatprep.mubr.bf16.mxu1 %v977_v27  ;;  %v877_v31 = vadd.f32 %v5068_v35, %v876_v30  ;;  %v4220_v32 = vpop.f32.mrb[18].mxu0  ;;  %4565 = vmatpush3.bf16.msra.mxu1 %v4653_v22  ;;  %v5141_v27 = vld [vmem:[%s6369_s7 + $0x30] sm:$0xff]   ;;  %v5149_v28 = vld [vmem:[%s6366_s4] ss:$0 sm:$0xff] }
 0x12c   : > { %4262 = vmatmul.mubr.bf16.gmra.mrb[12].mxu1 %v978_v26  ;;  %v957_v33 = vmax.f32 %v885_v29, 0.0  ;;  %v888_v34 = vadd.f32 %v4220_v32, %v5068_v35  ;;  %v879_v36 = vpop.f32.mrb[19].mxu0  ;;  %v5134_v26 = vld [vmem:[%s6369_s7 + $0x28] sm:$0xff]  }
 0x12d   : > { %v955_v37 = vmax.f32 %v877_v31, 0.0  ;;  %v880_v38 = vadd.f32 %v5068_v35, %v879_v36 }
 0x12e   : > { %v958_v39 = vmax.f32 %v888_v34, 0.0 }
 0x12f   : > { %v956_v40 = vmax.f32 %v880_v38, 0.0 }
 0x130   : > { %v980_v41 = vpack.c.bf16 %v958_v39, %v957_v33 }
 0x131   : > { %v979_v42 = vpack.c.bf16 %v956_v40, %v955_v37  ;;  %v4223_v43 = vpop.f32.mrb[20].mxu0 }
 0x132   : > { %v901_v44 = vadd.f32 %v4223_v43, %v5068_v35  ;;  %v892_v45 = vpop.f32.mrb[21].mxu0 }
 0x133   : > { %4265 = vmatprep.mubr.bf16.mxu1 %v979_v42  ;;  %v893_v46 = vadd.f32 %v5068_v35, %v892_v45  ;;  %v4224_v47 = vpop.f32.mrb[22].mxu0 }
 0x134   : > { %4266 = vmatmul.mubr.bf16.gmra.mrb[16].mxu1 %v980_v41  ;;  %v961_v48 = vmax.f32 %v901_v44, 0.0  ;;  %v904_v49 = vadd.f32 %v4224_v47, %v5068_v35  ;;  %v895_v50 = vpop.f32.mrb[23].mxu0 }
 0x135   : > { %v959_v51 = vmax.f32 %v893_v46, 0.0  ;;  %v896_v52 = vadd.f32 %v5068_v35, %v895_v50 }
 0x136   : > { %v962_v53 = vmax.f32 %v904_v49, 0.0 }
 0x137   : > { %v960_v54 = vmax.f32 %v896_v52, 0.0 }
 0x138   : > { %v982_v55 = vpack.c.bf16 %v962_v53, %v961_v48 }
 0x139   : > { %v981_v56 = vpack.c.bf16 %v960_v54, %v959_v51  ;;  %v4227_v57 = vpop.f32.mrb[24].mxu0 }
 0x13a   : > { %v917_v58 = vadd.f32 %v4227_v57, %v5068_v35  ;;  %v908_v59 = vpop.f32.mrb[25].mxu0 }
 0x13b   : > { %4269 = vmatprep.mubr.bf16.mxu1 %v981_v56  ;;  %v909_v60 = vadd.f32 %v5068_v35, %v908_v59  ;;  %v4228_v61 = vpop.f32.mrb[26].mxu0 }
 0x13c   : > { %4270 = vmatmul.mubr.bf16.gmra.mrb[20].mxu1 %v982_v55  ;;  %v965_v62 = vmax.f32 %v917_v58, 0.0  ;;  %v920_v63 = vadd.f32 %v4228_v61, %v5068_v35  ;;  %v911_v0 = vpop.f32.mrb[27].mxu0 }
 0x13d   : > { %v963_v1 = vmax.f32 %v909_v60, 0.0  ;;  %v912_v2 = vadd.f32 %v5068_v35, %v911_v0 }
 0x13e   : > { %v966_v3 = vmax.f32 %v920_v63, 0.0 }
 0x13f   : > { %v964_v4 = vmax.f32 %v912_v2, 0.0 }
 0x140   : > { %v984_v5 = vpack.c.bf16 %v966_v3, %v965_v62 }
 0x141   : > { %v983_v6 = vpack.c.bf16 %v964_v4, %v963_v1  ;;  %v4231_v7 = vpop.f32.mrb[28].mxu0 }
 0x142   : > { %v933_v8 = vadd.f32 %v4231_v7, %v5068_v35  ;;  %v924_v9 = vpop.f32.mrb[29].mxu0 }
 0x143   : > { %4273 = vmatprep.mubr.bf16.mxu1 %v983_v6  ;;  %v925_v10 = vadd.f32 %v5068_v35, %v924_v9  ;;  %v4232_v11 = vpop.f32.mrb[30].mxu0 }
 0x144   : > { %4274 = vmatmul.mubr.bf16.gmra.mrb[24].mxu1 %v984_v5  ;;  %v969_v12 = vmax.f32 %v933_v8, 0.0  ;;  %v936_v13 = vadd.f32 %v4232_v11, %v5068_v35  ;;  %v927_v14 = vpop.f32.mrb[31].mxu0 }
 0x145   : > { %v967_v15 = vmax.f32 %v925_v10, 0.0  ;;  %v928_v16 = vadd.f32 %v5068_v35, %v927_v14  ;;  %v4654_v35 = vld [vmem:[%s6369_s7 + $0x8] sm:$0xff]  }
 0x146   : > { %v970_v17 = vmax.f32 %v936_v13, 0.0  ;;  %4558 = vmatprep.subr.bf16.mxu1 %v4654_v35 }
 0x147   : > { %v968_v18 = vmax.f32 %v928_v16, 0.0  ;;  %4566 = vmatpush3.bf16.msra.mxu1 %v4654_v35 }
 0x148   : > { %v986_v19 = vpack.c.bf16 %v970_v17, %v969_v12  ;;  %4559 = vmatprep.subr.bf16.mxu1 %v5114_v23 }
 0x149   : > { %v985_v20 = vpack.c.bf16 %v968_v18, %v967_v15 }
 0x14b   : > { %4277 = vmatprep.mubr.bf16.mxu1 %v985_v20  ;;  %4567 = vmatpush3.bf16.msra.mxu1 %v5114_v23 }
 0x14c   : > { %4278 = vmatmul.mubr.bf16.gmra.mrb[28].mxu1 %v986_v19  ;;  %4560 = vmatprep.subr.bf16.mxu1 %v5120_v24 }
 0x14f   : > { %4568 = vmatpush3.bf16.msra.mxu1 %v5120_v24 }
 0x150   : > { %4561 = vmatprep.subr.bf16.mxu1 %v5127_v25 }
 0x153   : > { %4569 = vmatpush3.bf16.msra.mxu1 %v5127_v25 }
 0x154   : > { %4562 = vmatprep.subr.bf16.mxu1 %v5134_v26 }
 0x157   : > { %4570 = vmatpush3.bf16.msra.mxu1 %v5134_v26 }
 0x158   : > { %4563 = vmatprep.subr.bf16.mxu1 %v5141_v27 }
 0x15b   : > { %4571 = vmatpush3.bf16.msra.mxu1 %v5141_v27 }
 0x1e7   : > { %v4251_v29 = vpop.f32.mrb[0].mxu1 }
 0x1e8   : > { %v1101_v30 = vadd.f32 %v4251_v29, %v5149_v28  ;;  %v1092_v31 = vpop.f32.mrb[1].mxu1 }
 0x1e9   : > { %v1093_v32 = vadd.f32 %v5149_v28, %v1092_v31  ;;  %v4252_v33 = vpop.f32.mrb[2].mxu1 }
 0x1ea   : > { %v1104_v34 = vadd.f32 %v4252_v33, %v5149_v28  ;;  %v1095_v36 = vpop.f32.mrb[3].mxu1  ;;  %v1221_v38 = vmax.f32 %v1101_v30, 0.0 }
 0x1eb   : > { %v1096_v37 = vadd.f32 %v5149_v28, %v1095_v36  ;;  %v1219_v40 = vmax.f32 %v1093_v32, 0.0 }
 0x1ec   : > { %v1222_v39 = vmax.f32 %v1104_v34, 0.0 }
 0x1ed   : > { %v1220_v41 = vmax.f32 %v1096_v37, 0.0 }
 0x1ee   : > { %v1252_v42 = vpack.c.bf16 %v1222_v39, %v1221_v38 }
 0x1ef   : > { %v1251_v43 = vpack.c.bf16 %v1220_v41, %v1219_v40  ;;  %v4255_v44 = vpop.f32.mrb[4].mxu1 }
 0x1f0   : > { %v1117_v45 = vadd.f32 %v4255_v44, %v5149_v28  ;;  %v1108_v46 = vpop.f32.mrb[5].mxu1 }
 0x1f1   : > { %v1109_v47 = vadd.f32 %v5149_v28, %v1108_v46  ;;  %v4256_v48 = vpop.f32.mrb[6].mxu1  ;;  %4297 = vmatprep.mubr.bf16.mxu0 %v1251_v43 }
 0x1f2   : > { %v1225_v49 = vmax.f32 %v1117_v45, 0.0  ;;  %v1120_v50 = vadd.f32 %v4256_v48, %v5149_v28  ;;  %v1111_v51 = vpop.f32.mrb[7].mxu1  ;;  %4298 = vmatmul.mubr.bf16.vlgmr.msra.gmra.mrb[32].mxu0 %v1252_v42 }
 0x1f3   : > { %v1223_v52 = vmax.f32 %v1109_v47, 0.0  ;;  %v1112_v53 = vadd.f32 %v5149_v28, %v1111_v51  ;;  %4330 = vmatpush3.bf16.msra.mxu0 %v4653_v22 }
 0x1f4   : > { %v1226_v54 = vmax.f32 %v1120_v50, 0.0  ;;  %4331 = vmatprep.subr.bf16.mxu0 %v4654_v35 }
 0x1f5   : > { %v1224_v55 = vmax.f32 %v1112_v53, 0.0 }
 0x1f6   : > { %v1254_v56 = vpack.c.bf16 %v1226_v54, %v1225_v49 }
 0x1f7   : > { %v1253_v57 = vpack.c.bf16 %v1224_v55, %v1223_v52  ;;  %v4259_v58 = vpop.f32.mrb[8].mxu1  ;;  %4332 = vmatpush3.bf16.msra.mxu0 %v4654_v35 }
 0x1f8   : > { %v1133_v59 = vadd.f32 %v4259_v58, %v5149_v28  ;;  %v1124_v60 = vpop.f32.mrb[9].mxu1  ;;  %4333 = vmatprep.subr.bf16.mxu0 %v5114_v23 }
 0x1f9   : > { %v1125_v61 = vadd.f32 %v5149_v28, %v1124_v60  ;;  %v4260_v62 = vpop.f32.mrb[10].mxu1  ;;  %4301 = vmatprep.mubr.bf16.mxu0 %v1253_v57 }
 0x1fa   : > { %v1229_v63 = vmax.f32 %v1133_v59, 0.0  ;;  %v1136_v0 = vadd.f32 %v4260_v62, %v5149_v28  ;;  %v1127_v1 = vpop.f32.mrb[11].mxu1  ;;  %4302 = vmatmul.mubr.bf16.gmra.mrb[36].mxu0 %v1254_v56 }
 0x1fb   : > { %v1227_v2 = vmax.f32 %v1125_v61, 0.0  ;;  %v1128_v3 = vadd.f32 %v5149_v28, %v1127_v1  ;;  %4334 = vmatpush3.bf16.msra.mxu0 %v5114_v23 }
 0x1fc   : > { %v1230_v4 = vmax.f32 %v1136_v0, 0.0  ;;  %4335 = vmatprep.subr.bf16.mxu0 %v5120_v24 }
 0x1fd   : > { %v1228_v5 = vmax.f32 %v1128_v3, 0.0 }
 0x1fe   : > { %v1256_v6 = vpack.c.bf16 %v1230_v4, %v1229_v63 }
 0x1ff   : > { %v1255_v7 = vpack.c.bf16 %v1228_v5, %v1227_v2  ;;  %v4263_v8 = vpop.f32.mrb[12].mxu1  ;;  %4336 = vmatpush3.bf16.msra.mxu0 %v5120_v24 }
 0x200   : > { %v1149_v9 = vadd.f32 %v4263_v8, %v5149_v28  ;;  %v1140_v10 = vpop.f32.mrb[13].mxu1  ;;  %4337 = vmatprep.subr.bf16.mxu0 %v5127_v25 }
 0x201   : > { %4305 = vmatprep.mubr.bf16.mxu0 %v1255_v7  ;;  %v1141_v11 = vadd.f32 %v5149_v28, %v1140_v10  ;;  %v4264_v12 = vpop.f32.mrb[14].mxu1 }
 0x202   : > { %4306 = vmatmul.mubr.bf16.gmra.mrb[40].mxu0 %v1256_v6  ;;  %v1233_v13 = vmax.f32 %v1149_v9, 0.0  ;;  %v1152_v14 = vadd.f32 %v4264_v12, %v5149_v28  ;;  %v1143_v15 = vpop.f32.mrb[15].mxu1 }
 0x203   : > { %v1231_v16 = vmax.f32 %v1141_v11, 0.0  ;;  %v1144_v17 = vadd.f32 %v5149_v28, %v1143_v15  ;;  %4338 = vmatpush3.bf16.msra.mxu0 %v5127_v25  ;;  %v4660_v15 = vld [vmem:[%s6369_s7 + $0x38] sm:$0xff]  }
 0x204   : > { %v1234_v18 = vmax.f32 %v1152_v14, 0.0  ;;  %4339 = vmatprep.subr.bf16.mxu0 %v5134_v26  ;;  %4564 = vmatprep.subr.bf16.mxu1 %v4660_v15 }
 0x205   : > { %v1232_v19 = vmax.f32 %v1144_v17, 0.0  ;;  %4572 = vmatpush3.bf16.msra.mxu1 %v4660_v15 }
 0x206   : > { %v1258_v20 = vpack.c.bf16 %v1234_v18, %v1233_v13 }
 0x207   : > { %v1257_v21 = vpack.c.bf16 %v1232_v19, %v1231_v16  ;;  %v4267_v22 = vpop.f32.mrb[16].mxu1  ;;  %4340 = vmatpush3.bf16.msra.mxu0 %v5134_v26  ;;  %v4663_v16 = vld [vmem:[%s6371_s9 + $0x4] ss:$8 sps:$4 sm:$0xff]  }
 0x208   : > { %v1165_v35 = vadd.f32 %v4267_v22, %v5149_v28  ;;  %v1156_v23 = vpop.f32.mrb[17].mxu1  ;;  %4341 = vmatprep.subr.bf16.mxu0 %v5141_v27 }
 0x209   : > { %4309 = vmatprep.mubr.bf16.mxu0 %v1257_v21  ;;  %v1157_v24 = vadd.f32 %v5149_v28, %v1156_v23  ;;  %v4268_v29 = vpop.f32.mrb[18].mxu1 }
 0x20a   : > { %4310 = vmatmul.mubr.bf16.gmra.mrb[44].mxu0 %v1258_v20  ;;  %v1237_v25 = vmax.f32 %v1165_v35, 0.0  ;;  %v1168_v30 = vadd.f32 %v4268_v29, %v5149_v28  ;;  %v1159_v31 = vpop.f32.mrb[19].mxu1 }
 0x20b   : > { %v1235_v32 = vmax.f32 %v1157_v24, 0.0  ;;  %v1160_v33 = vadd.f32 %v5149_v28, %v1159_v31  ;;  %4342 = vmatpush3.bf16.msra.mxu0 %v5141_v27 }
 0x20c   : > { %v1238_v26 = vmax.f32 %v1168_v30, 0.0  ;;  %4343 = vmatprep.subr.bf16.mxu0 %v4660_v15 }
 0x20d   : > { %v1236_v34 = vmax.f32 %v1160_v33, 0.0 }
 0x20e   : > { %v1260_v36 = vpack.c.bf16 %v1238_v26, %v1237_v25  ;;  %v4661_v26 = vld [vmem:[%s6371_s9] ss:$8 sps:$4 sm:$0xff]  }
 0x20f   : > { %v1259_v37 = vpack.c.bf16 %v1236_v34, %v1235_v32  ;;  %v4271_v38 = vpop.f32.mrb[20].mxu1  ;;  %4344 = vmatpush3.bf16.msra.mxu0 %v4660_v15 }
 0x210   : > { %v1181_v39 = vadd.f32 %v4271_v38, %v5149_v28  ;;  %v1172_v40 = vpop.f32.mrb[21].mxu1  ;;  %1868 = vmatprep.subr.bf16.mxu0 %v4663_v16 }
 0x211   : > { %4313 = vmatprep.mubr.bf16.mxu0 %v1259_v37  ;;  %v1173_v41 = vadd.f32 %v5149_v28, %v1172_v40  ;;  %v4272_v42 = vpop.f32.mrb[22].mxu1 }
 0x212   : > { %4314 = vmatmul.mubr.bf16.gmra.mrb[48].mxu0 %v1260_v36  ;;  %v1241_v43 = vmax.f32 %v1181_v39, 0.0  ;;  %v1184_v44 = vadd.f32 %v4272_v42, %v5149_v28  ;;  %v1175_v45 = vpop.f32.mrb[23].mxu1 }
 0x213   : > { %v1239_v46 = vmax.f32 %v1173_v41, 0.0  ;;  %v1176_v27 = vadd.f32 %v5149_v28, %v1175_v45 }
 0x214   : > { %v1242_v47 = vmax.f32 %v1184_v44, 0.0 }
 0x215   : > { %v1240_v48 = vmax.f32 %v1176_v27, 0.0 }
 0x216   : > { %v1262_v49 = vpack.c.bf16 %v1242_v47, %v1241_v43 }
 0x217   : > { %v1261_v50 = vpack.c.bf16 %v1240_v48, %v1239_v46  ;;  %v4275_v51 = vpop.f32.mrb[24].mxu1 }
 0x218   : > { %v1197_v52 = vadd.f32 %v4275_v51, %v5149_v28  ;;  %v1188_v53 = vpop.f32.mrb[25].mxu1 }
 0x219   : > { %4317 = vmatprep.mubr.bf16.mxu0 %v1261_v50  ;;  %v1189_v54 = vadd.f32 %v5149_v28, %v1188_v53  ;;  %v4276_v55 = vpop.f32.mrb[26].mxu1 }
 0x21a   : > { %4318 = vmatmul.mubr.bf16.gmra.mrb[52].mxu0 %v1262_v49  ;;  %v1245_v56 = vmax.f32 %v1197_v52, 0.0  ;;  %v1200_v57 = vadd.f32 %v4276_v55, %v5149_v28  ;;  %v1191_v58 = vpop.f32.mrb[27].mxu1 }
 0x21b   : > { %v1243_v59 = vmax.f32 %v1189_v54, 0.0  ;;  %v1192_v60 = vadd.f32 %v5149_v28, %v1191_v58 }
 0x21c   : > { %v1246_v61 = vmax.f32 %v1200_v57, 0.0 }
 0x21d   : > { %v1244_v62 = vmax.f32 %v1192_v60, 0.0 }
 0x21e   : > { %v1264_v63 = vpack.c.bf16 %v1246_v61, %v1245_v56 }
 0x21f   : > { %v1263_v0 = vpack.c.bf16 %v1244_v62, %v1243_v59  ;;  %v4279_v1 = vpop.f32.mrb[28].mxu1 }
 0x220   : > { %v1213_v2 = vadd.f32 %v4279_v1, %v5149_v28  ;;  %v1204_v3 = vpop.f32.mrb[29].mxu1 }
 0x221   : > { %4321 = vmatprep.mubr.bf16.mxu0 %v1263_v0  ;;  %v1205_v4 = vadd.f32 %v5149_v28, %v1204_v3  ;;  %v4280_v5 = vpop.f32.mrb[30].mxu1 }
 0x222   : > { %4322 = vmatmul.mubr.bf16.gmra.mrb[56].mxu0 %v1264_v63  ;;  %v1249_v6 = vmax.f32 %v1213_v2, 0.0  ;;  %v1216_v7 = vadd.f32 %v4280_v5, %v5149_v28  ;;  %v1207_v8 = vpop.f32.mrb[31].mxu1 }
 0x223   : > { %v1247_v9 = vmax.f32 %v1205_v4, 0.0  ;;  %v1208_v10 = vadd.f32 %v5149_v28, %v1207_v8  ;;  %v5202_v28 = vld [vmem:[%s6368_s6] ss:$0 sm:$0xff] }
 0x224   : > { %v1250_v11 = vmax.f32 %v1216_v7, 0.0 }
 0x225   : > { %v1248_v12 = vmax.f32 %v1208_v10, 0.0 }
 0x226   : > { %v1266_v13 = vpack.c.bf16 %v1250_v11, %v1249_v6 }
 0x227   : > { %v1265_v14 = vpack.c.bf16 %v1248_v12, %v1247_v9 }
 0x229   : > { %4325 = vmatprep.mubr.bf16.mxu0 %v1265_v14 }
 0x22a   : > { %4326 = vmatmul.mubr.bf16.gmra.mrb[60].mxu0 %v1266_v13 }
 0x2c5   : > { %v4299_v17 = vpop.f32.mrb[32].mxu0 }
 0x2c6   : > { %v1381_v18 = vadd.f32 %v4299_v17, %v5202_v28  ;;  %v1372_v19 = vpop.f32.mrb[33].mxu0 }
 0x2c7   : > { %v1373_v20 = vadd.f32 %v5202_v28, %v1372_v19  ;;  %v4300_v21 = vpop.f32.mrb[34].mxu0 }
 0x2c8   : > { %v1384_v22 = vadd.f32 %v4300_v21, %v5202_v28  ;;  %v1375_v35 = vpop.f32.mrb[35].mxu0  ;;  %v1501_v24 = vmax.f32 %v1381_v18, 0.0 }
 0x2c9   : > { %v1376_v23 = vadd.f32 %v5202_v28, %v1375_v35  ;;  %v1499_v25 = vmax.f32 %v1373_v20, 0.0 }
 0x2ca   : > { %v1502_v29 = vmax.f32 %v1384_v22, 0.0 }
 0x2cb   : > { %v1500_v30 = vmax.f32 %v1376_v23, 0.0 }
 0x2cc   : > { %v1532_v31 = vpack.c.bf16 %v1502_v29, %v1501_v24 }
 0x2cd   : > { %v1531_v32 = vpack.c.bf16 %v1500_v30, %v1499_v25  ;;  %v4303_v33 = vpop.f32.mrb[36].mxu0 }
 0x2ce   : > { %v1397_v34 = vadd.f32 %v4303_v33, %v5202_v28  ;;  %v1388_v36 = vpop.f32.mrb[37].mxu0 }
 0x2cf   : > { %v1389_v37 = vadd.f32 %v5202_v28, %v1388_v36  ;;  %v4304_v38 = vpop.f32.mrb[38].mxu0  ;;  %4345 = vmatprep.mubr.bf16.mxu0 %v1531_v32 }
 0x2d0   : > { %v1400_v39 = vadd.f32 %v4304_v38, %v5202_v28  ;;  %v1391_v40 = vpop.f32.mrb[39].mxu0  ;;  %4346 = vmatmul.mubr.bf16.vlgmr.msra.gmra.mrb[64].mxu0 %v1532_v31  ;;  %v1505_v42 = vmax.f32 %v1397_v34, 0.0 }
 0x2d1   : > { %v1392_v41 = vadd.f32 %v5202_v28, %v1391_v40  ;;  %1869 = vmatpush1.bf16.msra.mxu0 %v4661_v26  ;;  %v1503_v44 = vmax.f32 %v1389_v37, 0.0 }
 0x2d2   : > { %v1506_v43 = vmax.f32 %v1400_v39, 0.0 }
 0x2d3   : > { %v1504_v45 = vmax.f32 %v1392_v41, 0.0 }
 0x2d4   : > { %v1534_v46 = vpack.c.bf16 %v1506_v43, %v1505_v42 }
 0x2d5   : > { %v1533_v27 = vpack.c.bf16 %v1504_v45, %v1503_v44  ;;  %v4307_v47 = vpop.f32.mrb[40].mxu0 }
 0x2d6   : > { %v1413_v48 = vadd.f32 %v4307_v47, %v5202_v28  ;;  %v1404_v49 = vpop.f32.mrb[41].mxu0 }
 0x2d7   : > { %v1405_v50 = vadd.f32 %v5202_v28, %v1404_v49  ;;  %v4308_v51 = vpop.f32.mrb[42].mxu0  ;;  %4349 = vmatprep.mubr.bf16.mxu1 %v1533_v27 }
 0x2d8   : > { %v1509_v52 = vmax.f32 %v1413_v48, 0.0  ;;  %v1416_v53 = vadd.f32 %v4308_v51, %v5202_v28  ;;  %v1407_v54 = vpop.f32.mrb[43].mxu0  ;;  %4350 = vmatmul.mubr.bf16.vlgmr.msra.gmra.mrb[32].mxu1 %v1534_v46 }
 0x2d9   : > { %v1507_v55 = vmax.f32 %v1405_v50, 0.0  ;;  %v1408_v56 = vadd.f32 %v5202_v28, %v1407_v54 }
 0x2da   : > { %v1510_v57 = vmax.f32 %v1416_v53, 0.0 }
 0x2db   : > { %v1508_v58 = vmax.f32 %v1408_v56, 0.0 }
 0x2dc   : > { %v1536_v59 = vpack.c.bf16 %v1510_v57, %v1509_v52 }
 0x2dd   : > { %v1535_v60 = vpack.c.bf16 %v1508_v58, %v1507_v55  ;;  %v4311_v61 = vpop.f32.mrb[44].mxu0 }
 0x2de   : > { %v1429_v62 = vadd.f32 %v4311_v61, %v5202_v28  ;;  %v1420_v63 = vpop.f32.mrb[45].mxu0 }
 0x2df   : > { %4353 = vmatprep.mubr.bf16.mxu1 %v1535_v60  ;;  %v1421_v0 = vadd.f32 %v5202_v28, %v1420_v63  ;;  %v4312_v1 = vpop.f32.mrb[46].mxu0 }
 0x2e0   : > { %4354 = vmatmul.mubr.bf16.gmra.mrb[36].mxu1 %v1536_v59  ;;  %v1513_v2 = vmax.f32 %v1429_v62, 0.0  ;;  %v1432_v3 = vadd.f32 %v4312_v1, %v5202_v28  ;;  %v1423_v4 = vpop.f32.mrb[47].mxu0 }
 0x2e1   : > { %v1511_v5 = vmax.f32 %v1421_v0, 0.0  ;;  %v1424_v6 = vadd.f32 %v5202_v28, %v1423_v4  ;;  %v4666_v4 = vld [vmem:[%s6371_s9 + $0x14] ss:$8 sps:$4 sm:$0xff]  }
 0x2e2   : > { %v1514_v7 = vmax.f32 %v1432_v3, 0.0  ;;  %1870 = vmatprep.subr.bf16.mxu0 %v4666_v4 }
 0x2e3   : > { %v1512_v8 = vmax.f32 %v1424_v6, 0.0  ;;  %v4821_v6 = vmov 0  }
 0x2e4   : > { %v1538_v9 = vpack.c.bf16 %v1514_v7, %v1513_v2  ;;  %1900 = vmatprep.mubr.bf16.mxu0 %v4821_v6 }
 0x2e5   : > { %v1537_v10 = vpack.c.bf16 %v1512_v8, %v1511_v5  ;;  %v4315_v11 = vpop.f32.mrb[48].mxu0  ;;  %v4664_v5 = vld [vmem:[%s6371_s9 + $0x10] ss:$8 sps:$4 sm:$0xff]  }
 0x2e6   : > { %v1445_v12 = vadd.f32 %v4315_v11, %v5202_v28  ;;  %v1436_v13 = vpop.f32.mrb[49].mxu0  ;;  %1871 = vmatpush1.bf16.msra.mxu0 %v4664_v5  ;;  %v4668_v5 = vld [vmem:[%s6373_s11 + $0x8] sm:$0xff]  }
 0x2e7   : > { %4357 = vmatprep.mubr.bf16.mxu1 %v1537_v10  ;;  %v1437_v14 = vadd.f32 %v5202_v28, %v1436_v13  ;;  %v4316_v15 = vpop.f32.mrb[50].mxu0 }
 0x2e8   : > { %4358 = vmatmul.mubr.bf16.gmra.mrb[40].mxu1 %v1538_v9  ;;  %v1517_v16 = vmax.f32 %v1445_v12, 0.0  ;;  %v1448_v17 = vadd.f32 %v4316_v15, %v5202_v28  ;;  %v1439_v18 = vpop.f32.mrb[51].mxu0 }
 0x2e9   : > { %v1515_v19 = vmax.f32 %v1437_v14, 0.0  ;;  %v1440_v20 = vadd.f32 %v5202_v28, %v1439_v18 }
 0x2ea   : > { %v1518_v21 = vmax.f32 %v1448_v17, 0.0 }
 0x2eb   : > { %v1516_v22 = vmax.f32 %v1440_v20, 0.0 }
 0x2ec   : > { %v1540_v35 = vpack.c.bf16 %v1518_v21, %v1517_v16 }
 0x2ed   : > { %v1539_v23 = vpack.c.bf16 %v1516_v22, %v1515_v19  ;;  %v4319_v24 = vpop.f32.mrb[52].mxu0 }
 0x2ee   : > { %v1461_v29 = vadd.f32 %v4319_v24, %v5202_v28  ;;  %v1452_v25 = vpop.f32.mrb[53].mxu0 }
 0x2ef   : > { %4361 = vmatprep.mubr.bf16.mxu1 %v1539_v23  ;;  %v1453_v30 = vadd.f32 %v5202_v28, %v1452_v25  ;;  %v4320_v31 = vpop.f32.mrb[54].mxu0 }
 0x2f0   : > { %4362 = vmatmul.mubr.bf16.gmra.mrb[44].mxu1 %v1540_v35  ;;  %v1521_v32 = vmax.f32 %v1461_v29, 0.0  ;;  %v1464_v33 = vadd.f32 %v4320_v31, %v5202_v28  ;;  %v1455_v26 = vpop.f32.mrb[55].mxu0 }
 0x2f1   : > { %v1519_v34 = vmax.f32 %v1453_v30, 0.0  ;;  %v1456_v36 = vadd.f32 %v5202_v28, %v1455_v26 }
 0x2f2   : > { %v1522_v37 = vmax.f32 %v1464_v33, 0.0 }
 0x2f3   : > { %v1520_v38 = vmax.f32 %v1456_v36, 0.0 }
 0x2f4   : > { %v1542_v39 = vpack.c.bf16 %v1522_v37, %v1521_v32 }
 0x2f5   : > { %v1541_v40 = vpack.c.bf16 %v1520_v38, %v1519_v34  ;;  %v4323_v41 = vpop.f32.mrb[56].mxu0 }
 0x2f6   : > { %v1477_v42 = vadd.f32 %v4323_v41, %v5202_v28  ;;  %v1468_v43 = vpop.f32.mrb[57].mxu0 }
 0x2f7   : > { %4365 = vmatprep.mubr.bf16.mxu1 %v1541_v40  ;;  %v1469_v44 = vadd.f32 %v5202_v28, %v1468_v43  ;;  %v4324_v45 = vpop.f32.mrb[58].mxu0 }
 0x2f8   : > { %4366 = vmatmul.mubr.bf16.gmra.mrb[48].mxu1 %v1542_v39  ;;  %v1525_v46 = vmax.f32 %v1477_v42, 0.0  ;;  %v1480_v27 = vadd.f32 %v4324_v45, %v5202_v28  ;;  %v1471_v47 = vpop.f32.mrb[59].mxu0 }
 0x2f9   : > { %v1523_v48 = vmax.f32 %v1469_v44, 0.0  ;;  %v1472_v49 = vadd.f32 %v5202_v28, %v1471_v47 }
 0x2fa   : > { %v1526_v50 = vmax.f32 %v1480_v27, 0.0 }
 0x2fb   : > { %v1524_v51 = vmax.f32 %v1472_v49, 0.0 }
 0x2fc   : > { %v1544_v52 = vpack.c.bf16 %v1526_v50, %v1525_v46 }
 0x2fd   : > { %v1543_v53 = vpack.c.bf16 %v1524_v51, %v1523_v48  ;;  %v4327_v54 = vpop.f32.mrb[60].mxu0 }
 0x2fe   : > { %v1493_v55 = vadd.f32 %v4327_v54, %v5202_v28  ;;  %v1484_v56 = vpop.f32.mrb[61].mxu0 }
 0x2ff   : > { %4369 = vmatprep.mubr.bf16.mxu1 %v1543_v53  ;;  %v1485_v57 = vadd.f32 %v5202_v28, %v1484_v56  ;;  %v4328_v58 = vpop.f32.mrb[62].mxu0 }
 0x300   : > { %4370 = vmatmul.mubr.bf16.gmra.mrb[52].mxu1 %v1544_v52  ;;  %v1529_v59 = vmax.f32 %v1493_v55, 0.0  ;;  %v1496_v60 = vadd.f32 %v4328_v58, %v5202_v28  ;;  %v1487_v61 = vpop.f32.mrb[63].mxu0 }
 0x301   : > { %v1527_v62 = vmax.f32 %v1485_v57, 0.0  ;;  %v1488_v63 = vadd.f32 %v5202_v28, %v1487_v61  ;;  %v5249_v28 = vld [vmem:[%s6370_s8] ss:$0 sm:$0xff] }
 0x302   : > { %v1530_v0 = vmax.f32 %v1496_v60, 0.0 }
 0x303   : > { %v1528_v1 = vmax.f32 %v1488_v63, 0.0 }
 0x304   : > { %v1546_v2 = vpack.c.bf16 %v1530_v0, %v1529_v59 }
 0x305   : > { %v1545_v3 = vpack.c.bf16 %v1528_v1, %v1527_v62 }
 0x307   : > { %4373 = vmatprep.mubr.bf16.mxu1 %v1545_v3  ;;  %v4667_v3 = vld [vmem:[%s6373_s11] sm:$0xff]  }
 0x308   : > { %4374 = vmatmul.mubr.bf16.gmra.mrb[56].mxu1 %v1546_v2  ;;  %4377 = vmatprep.subr.bf16.mxu1 %v4667_v3 }
 0x309   : > { %4378 = vmatpush3.bf16.msra.mxu1 %v4667_v3 }
 0x30a   : > { %4379 = vmatprep.subr.bf16.mxu1 %v4668_v5 }
 0x30d   : > { %4380 = vmatpush3.bf16.msra.mxu1 %v4668_v5 }
 0x3a3   : > { %v4347_v7 = vpop.f32.mrb[64].mxu0 }
 0x3a4   : > { %v1661_v8 = vadd.f32 %v4347_v7, %v5249_v28  ;;  %v1652_v9 = vpop.f32.mrb[65].mxu0 }
 0x3a5   : > { %v1653_v10 = vadd.f32 %v5249_v28, %v1652_v9  ;;  %v4348_v11 = vpop.f32.mrb[66].mxu0 }
 0x3a6   : > { %v1664_v12 = vadd.f32 %v4348_v11, %v5249_v28  ;;  %3442 = vrot.lane.b32.xlu1 %v1661_v8, %s4822_s25  ;;  %v1655_v13 = vpop.f32.mrb[67].mxu0 }
 0x3a7   : > { %v1656_v14 = vadd.f32 %v5249_v28, %v1655_v13  ;;  %3438 = vrot.lane.b32.xlu0 %v1653_v10, %s4822_s25 }
 0x3a8   : > { %v1780_v15 = vpack.c.bf16 %v1664_v12, %v1661_v8 }
 0x3a9   : > { %v1779_v16 = vpack.c.bf16 %v1656_v14, %v1653_v10 }
 0x3aa   : > { %3444 = vrot.lane.b32.xlu1 %v1664_v12, %s4822_s25  ;;  %v4669_v12 = vld [vmem:[%s6373_s11 + $0x10] sm:$0xff]  }
 0x3ab   : > { %v4351_v17 = vpop.f32.mrb[32].mxu1  ;;  %3943 = vmatmul.mubr.msk.bf16.vlgmr.msra.gmra.mrb[68].mxu0 %vm1819_vm1, %v1779_v16  ;;  %4381 = vmatprep.subr.bf16.mxu1 %v4669_v12 }
 0x3ac   : > { %v1677_v18 = vadd.f32 %v4351_v17, %v5249_v28  ;;  %v1668_v19 = vpop.f32.mrb[33].mxu1  ;;  %1910 = vmatprep.mubr.bf16.mxu0 %v4821_v6  ;;  %4382 = vmatpush3.bf16.msra.mxu1 %v4669_v12 }
 0x3ad   : > { %v4352_v20 = vpop.f32.mrb[34].mxu1  ;;  %v1669_v35 = vadd.f32 %v5249_v28, %v1668_v19 }
 0x3ae   : > { %v1680_v21 = vadd.f32 %v4352_v20, %v5249_v28  ;;  %v1671_v22 = vpop.f32.mrb[35].mxu1  ;;  %3440 = vrot.lane.b32.xlu1 %v1656_v14, %s4822_s25  ;;  %3450 = vrot.lane.b32.xlu0 %v1677_v18, %s4822_s25 }
 0x3af   : > { %v1672_v23 = vadd.f32 %v5249_v28, %v1671_v22 }
 0x3b0   : > { %v1782_v24 = vpack.c.bf16 %v1680_v21, %v1677_v18  ;;  %v4670_v18 = vld [vmem:[%s6373_s11 + $0x18] sm:$0xff]  }
 0x3b1   : > { %v1781_v29 = vpack.c.bf16 %v1672_v23, %v1669_v35  ;;  %4383 = vmatprep.subr.bf16.mxu1 %v4670_v18 }
 0x3b2   : > { %3452 = vrot.lane.b32.xlu1 %v1680_v21, %s4822_s25  ;;  %3446 = vrot.lane.b32.xlu0 %v1669_v35, %s4822_s25 }
 0x3b3   : > { %v4355_v25 = vpop.f32.mrb[36].mxu1  ;;  %3944 = vmatmul.mubr.msk.bf16.gmra.mrb[72].mxu0 %vm1819_vm1, %v1780_v15  ;;  %4384 = vmatpush3.bf16.msra.mxu1 %v4670_v18 }
 0x3b4   : > { %v5270_v30 = vadd.f32 %v4355_v25, %v5249_v28  ;;  %v1684_v31 = vpop.f32.mrb[37].mxu1  ;;  %1920 = vmatprep.mubr.bf16.mxu0 %v4821_v6 }
 0x3b5   : > { %v1685_v32 = vadd.f32 %v5249_v28, %v1684_v31  ;;  %v4356_v33 = vpop.f32.mrb[38].mxu1  ;;  %v4672_v31 = vld [vmem:[%s6373_s11 + $0x28] sm:$0xff]  }
 0x3b6   : > { %v1696_v26 = vadd.f32 %v4356_v33, %v5249_v28  ;;  %3448 = vrot.lane.b32.xlu1 %v1672_v23, %s4822_s25  ;;  %3458 = vrot.lane.b32.xlu0 %v5270_v30, %s4822_s25  ;;  %v1687_v34 = vpop.f32.mrb[39].mxu1  ;;  %v4674_v33 = vld [vmem:[%s6373_s11 + $0x38] sm:$0xff]  }
 0x3b7   : > { %v1688_v36 = vadd.f32 %v5249_v28, %v1687_v34 }
 0x3b8   : > { %v1784_v37 = vpack.c.bf16 %v1696_v26, %v5270_v30 }
 0x3b9   : > { %v1783_v38 = vpack.c.bf16 %v1688_v36, %v1685_v32 }
 0x3ba   : > { %3460 = vrot.lane.b32.xlu1 %v1696_v26, %s4822_s25  ;;  %3454 = vrot.lane.b32.xlu0 %v1685_v32, %s4822_s25  ;;  %v4673_v32 = vld [vmem:[%s6373_s11 + $0x30] sm:$0xff]   ;;  %v5434_v26 = vld [vmem:[%s6372_s10] ss:$0 sm:$0xff] }
 0x3bb   : > { %3945 = vmatmul.mubr.msk.bf16.gmra.mrb[76].mxu0 %vm1819_vm1, %v1781_v29  ;;  %v4359_v39 = vpop.f32.mrb[40].mxu1 }
 0x3bc   : > { %v5284_v40 = vadd.f32 %v4359_v39, %v5249_v28  ;;  %v1700_v41 = vpop.f32.mrb[41].mxu1  ;;  %1930 = vmatprep.mubr.bf16.mxu0 %v4821_v6 }
 0x3bd   : > { %v5288_v42 = vadd.f32 %v5249_v28, %v1700_v41  ;;  %v4360_v43 = vpop.f32.mrb[42].mxu1 }
 0x3be   : > { %3456 = vrot.lane.b32.xlu1 %v1688_v36, %s4822_s25  ;;  %v5292_v44 = vadd.f32 %v4360_v43, %v5249_v28  ;;  %3466 = vrot.lane.b32.xlu0 %v5284_v40, %s4822_s25  ;;  %v1703_v45 = vpop.f32.mrb[43].mxu1 }
 0x3bf   : > { %v5297_v46 = vadd.f32 %v5249_v28, %v1703_v45 }
 0x3c0   : > { %v1786_v27 = vpack.c.bf16 %v5292_v44, %v5284_v40 }
 0x3c1   : > { %v1785_v47 = vpack.c.bf16 %v5297_v46, %v5288_v42 }
 0x3c2   : > { %3468 = vrot.lane.b32.xlu1 %v5292_v44, %s4822_s25  ;;  %3462 = vrot.lane.b32.xlu0 %v5288_v42, %s4822_s25 }
 0x3c3   : > { %3946 = vmatmul.mubr.msk.bf16.gmra.mrb[80].mxu0 %vm1819_vm1, %v1782_v24  ;;  %v4363_v48 = vpop.f32.mrb[44].mxu1 }
 0x3c4   : > { %1940 = vmatprep.mubr.bf16.mxu0 %v4821_v6  ;;  %v5310_v49 = vadd.f32 %v4363_v48, %v5249_v28  ;;  %v1716_v50 = vpop.f32.mrb[45].mxu1 }
 0x3c5   : > { %v5313_v51 = vadd.f32 %v5249_v28, %v1716_v50  ;;  %v4364_v52 = vpop.f32.mrb[46].mxu1 }
 0x3c6   : > { %3464 = vrot.lane.b32.xlu1 %v5297_v46, %s4822_s25  ;;  %v5318_v53 = vadd.f32 %v4364_v52, %v5249_v28  ;;  %3474 = vrot.lane.b32.xlu0 %v5310_v49, %s4822_s25  ;;  %v1719_v54 = vpop.f32.mrb[47].mxu1 }
 0x3c7   : > { %v5323_v55 = vadd.f32 %v5249_v28, %v1719_v54 }
 0x3c8   : > { %v1788_v56 = vpack.c.bf16 %v5318_v53, %v5310_v49 }
 0x3c9   : > { %v1787_v57 = vpack.c.bf16 %v5323_v55, %v5313_v51 }
 0x3ca   : > { %3476 = vrot.lane.b32.xlu1 %v5318_v53, %s4822_s25  ;;  %3470 = vrot.lane.b32.xlu0 %v5313_v51, %s4822_s25 }
 0x3cb   : > { %3947 = vmatmul.mubr.msk.bf16.gmra.mrb[84].mxu0 %vm1819_vm1, %v1783_v38  ;;  %v4367_v58 = vpop.f32.mrb[48].mxu1  ;;  %v4675_v38 = vld [vmem:[%s6375_s13] sm:$0xff]  }
 0x3cc   : > { %1950 = vmatprep.mubr.bf16.mxu0 %v4821_v6  ;;  %v5336_v59 = vadd.f32 %v4367_v58, %v5249_v28  ;;  %v1732_v60 = vpop.f32.mrb[49].mxu1  ;;  %v4676_v58 = vld [vmem:[%s6375_s13 + $0x8] sm:$0xff]  }
 0x3cd   : > { %v5339_v61 = vadd.f32 %v5249_v28, %v1732_v60  ;;  %v4368_v62 = vpop.f32.mrb[50].mxu1 }
 0x3ce   : > { %3472 = vrot.lane.b32.xlu1 %v5323_v55, %s4822_s25  ;;  %v5344_v63 = vadd.f32 %v4368_v62, %v5249_v28  ;;  %3482 = vrot.lane.b32.xlu0 %v5336_v59, %s4822_s25  ;;  %v1735_v0 = vpop.f32.mrb[51].mxu1 }
 0x3cf   : > { %v1736_v1 = vadd.f32 %v5249_v28, %v1735_v0 }
 0x3d0   : > { %v1790_v2 = vpack.c.bf16 %v5344_v63, %v5336_v59 }
 0x3d1   : > { %v1789_v4 = vpack.c.bf16 %v1736_v1, %v5339_v61 }
 0x3d2   : > { %3484 = vrot.lane.b32.xlu1 %v5344_v63, %s4822_s25  ;;  %3478 = vrot.lane.b32.xlu0 %v5339_v61, %s4822_s25 }
 0x3d3   : > { %3948 = vmatmul.mubr.msk.bf16.gmra.mrb[88].mxu0 %vm1819_vm1, %v1784_v37  ;;  %v4371_v7 = vpop.f32.mrb[52].mxu1 }
 0x3d4   : > { %1960 = vmatprep.mubr.bf16.mxu0 %v4821_v6  ;;  %v5365_v8 = vadd.f32 %v4371_v7, %v5249_v28  ;;  %v1748_v9 = vpop.f32.mrb[53].mxu1 }
 0x3d5   : > { %v1749_v10 = vadd.f32 %v5249_v28, %v1748_v9  ;;  %v4372_v11 = vpop.f32.mrb[54].mxu1  ;;  %v4678_v9 = vld [vmem:[%s6375_s13 + $0x18] sm:$0xff]  }
 0x3d6   : > { %3480 = vrot.lane.b32.xlu1 %v1736_v1, %s4822_s25  ;;  %v1760_v13 = vadd.f32 %v4372_v11, %v5249_v28  ;;  %3490 = vrot.lane.b32.xlu0 %v5365_v8, %s4822_s25  ;;  %v1751_v14 = vpop.f32.mrb[55].mxu1  ;;  %v4677_v1 = vld [vmem:[%s6375_s13 + $0x10] sm:$0xff]  }
 0x3d7   : > { %v1752_v15 = vadd.f32 %v5249_v28, %v1751_v14 }
 0x3d8   : > { %v1792_v16 = vpack.c.bf16 %v1760_v13, %v5365_v8 }
 0x3d9   : > { %v1791_v17 = vpack.c.bf16 %v1752_v15, %v1749_v10 }
 0x3da   : > { %3492 = vrot.lane.b32.xlu1 %v1760_v13, %s4822_s25  ;;  %3486 = vrot.lane.b32.xlu0 %v1749_v10, %s4822_s25 }
 0x3db   : > { %3949 = vmatmul.mubr.msk.bf16.gmra.mrb[92].mxu0 %vm1819_vm1, %v1785_v47  ;;  %v4375_v19 = vpop.f32.mrb[56].mxu1 }
 0x3dc   : > { %1970 = vmatprep.mubr.bf16.mxu0 %v4821_v6  ;;  %v1773_v20 = vadd.f32 %v4375_v19, %v5249_v28  ;;  %v1764_v21 = vpop.f32.mrb[57].mxu1 }
 0x3dd   : > { %v1765_v22 = vadd.f32 %v5249_v28, %v1764_v21  ;;  %v4376_v35 = vpop.f32.mrb[58].mxu1 }
 0x3de   : > { %3488 = vrot.lane.b32.xlu1 %v1752_v15, %s4822_s25  ;;  %v1776_v23 = vadd.f32 %v4376_v35, %v5249_v28  ;;  %3498 = vrot.lane.b32.xlu0 %v1773_v20, %s4822_s25  ;;  %v1767_v24 = vpop.f32.mrb[59].mxu1  ;;  %v4680_v35 = vld [vmem:[%s6375_s13 + $0x28] sm:$0xff]  }
 0x3df   : > { %v1768_v29 = vadd.f32 %v5249_v28, %v1767_v24  ;;  %v4671_v28 = vld [vmem:[%s6373_s11 + $0x20] sm:$0xff]  }
 0x3e0   : > { %v1794_v25 = vpack.c.bf16 %v1776_v23, %v1773_v20  ;;  %4385 = vmatprep.subr.bf16.mxu1 %v4671_v28 }
 0x3e1   : > { %v1793_v30 = vpack.c.bf16 %v1768_v29, %v1765_v22  ;;  %4386 = vmatpush3.bf16.msra.mxu1 %v4671_v28 }
 0x3e2   : > { %3500 = vrot.lane.b32.xlu1 %v1776_v23, %s4822_s25  ;;  %3494 = vrot.lane.b32.xlu0 %v1765_v22, %s4822_s25 }
 0x3e3   : > { %3950 = vmatmul.mubr.msk.bf16.gmra.mrb[96].mxu0 %vm1819_vm1, %v1786_v27  ;;  %4387 = vmatprep.subr.bf16.mxu1 %v4672_v31 }
 0x3e4   : > { %1980 = vmatprep.mubr.bf16.mxu0 %v4821_v6 }
 0x3e5   : > { %4388 = vmatpush3.bf16.msra.mxu1 %v4672_v31 }
 0x3e6   : > { %3496 = vrot.lane.b32.xlu1 %v1768_v29, %s4822_s25  ;;  %4389 = vmatprep.subr.bf16.mxu1 %v4673_v32  ;;  %s4010_s25 = sshll.u32 %s4943_s0, 12 }
 0x3e7   : > { %s6310_s18 = scalar_lea.hbm %s6467_s1, %s4010_s25 }
 0x3e9   : > { %4390 = vmatpush3.bf16.msra.mxu1 %v4673_v32 }
 0x3ea   : > { %4391 = vmatprep.subr.bf16.mxu1 %v4674_v33 }
 0x3eb   : > { %3951 = vmatmul.mubr.msk.bf16.gmra.mrb[100].mxu0 %vm1819_vm1, %v1787_v57 }
 0x3ec   : > { %1990 = vmatprep.mubr.bf16.mxu0 %v4821_v6 }
 0x3ed   : > { %4392 = vmatpush3.bf16.msra.mxu1 %v4674_v33 }
 0x3ee   : > { %4425 = vmatprep.subr.bf16.mxu1 %v4675_v38 }
 0x3f3   : > { %3952 = vmatmul.mubr.msk.bf16.gmra.mrb[104].mxu0 %vm1819_vm1, %v1788_v56 }
 0x3f4   : > { %2000 = vmatprep.mubr.bf16.mxu0 %v4821_v6 }
 0x3fb   : > { %3953 = vmatmul.mubr.msk.bf16.gmra.mrb[108].mxu0 %vm1819_vm1, %v1789_v4 }
 0x3fc   : > { %2010 = vmatprep.mubr.bf16.mxu0 %v4821_v6 }
 0x403   : > { %3954 = vmatmul.mubr.msk.bf16.gmra.mrb[112].mxu0 %vm1819_vm1, %v1790_v2 }
 0x404   : > { %2020 = vmatprep.mubr.bf16.mxu0 %v4821_v6 }
 0x40b   : > { %3955 = vmatmul.mubr.msk.bf16.gmra.mrb[116].mxu0 %vm1819_vm1, %v1791_v17 }
 0x40c   : > { %2030 = vmatprep.mubr.bf16.mxu0 %v4821_v6 }
 0x413   : > { %3956 = vmatmul.mubr.msk.bf16.gmra.mrb[120].mxu0 %vm1819_vm1, %v1792_v16  ;;  %v4679_v16 = vld [vmem:[%s6375_s13 + $0x20] sm:$0xff]  }
 0x414   : > { %2040 = vmatprep.mubr.bf16.mxu0 %v4821_v6 }
 0x41b   : > { %3957 = vmatmul.mubr.msk.bf16.gmra.mrb[124].mxu0 %vm1819_vm1, %v1793_v30 }
 0x41c   : > { %2050 = vmatprep.mubr.bf16.mxu0 %v4821_v6 }
 0x423   : > { %3958 = vmatmul.mubr.msk.bf16.gmra.mrb[128].mxu0 %vm1819_vm1, %v1794_v25 }
 0x47e   : > { %v1902_v34 = vpop.f32.mrb[68].mxu0 }
 0x47f   : > { %v2068_v36 = vadd.f32 %v5434_v26, %v1902_v34  ;;  %v1904_v37 = vpop.f32.mrb[69].mxu0 }
 0x480   : > { %v1906_v39 = vpop.f32.mrb[70].mxu0  ;;  %v5441_v6 = vmul.f32 %v1904_v37, %v1904_v37 }
 0x481   : > { %v2069_v40 = vadd.f32 %v5434_v26, %v1906_v39  ;;  %v1908_v41 = vpop.f32.mrb[71].mxu0  ;;  %v2100_v43 = vmax.f32 %v2068_v36, 0.0 }
 0x482   : > { %v5443_v42 = vmul.f32 %v1908_v41, %v1908_v41 }
 0x483   : > { %v2101_v44 = vmax.f32 %v2069_v40, 0.0 }
 0x484   : > { %v2972_v45 = vpack.c.bf16 %v5443_v42, %v5441_v6 }
 0x485   : > { %v2132_v46 = vpack.c.bf16 %v2101_v44, %v2100_v43 }
 0x486   : > { %v1912_v27 = vpop.f32.mrb[72].mxu0 }
 0x487   : > { %v2070_v47 = vadd.f32 %v5434_v26, %v1912_v27  ;;  %v1914_v48 = vpop.f32.mrb[73].mxu0  ;;  %4393 = vmatprep.mubr.bf16.mxu1 %v2132_v46 }
 0x488   : > { %v1916_v49 = vpop.f32.mrb[74].mxu0  ;;  %v5449_v52 = vmul.f32 %v1914_v48, %v1914_v48 }
 0x489   : > { %v2071_v50 = vadd.f32 %v5434_v26, %v1916_v49  ;;  %v1918_v51 = vpop.f32.mrb[75].mxu0  ;;  %v2102_v54 = vmax.f32 %v2070_v47, 0.0 }
 0x48a   : > { %v5451_v53 = vmul.f32 %v1918_v51, %v1918_v51 }
 0x48b   : > { %v2103_v55 = vmax.f32 %v2071_v50, 0.0 }
 0x48c   : > { %v2973_v56 = vpack.c.bf16 %v5451_v53, %v5449_v52  ;;  %v5722_v52 = vld [vmem:[%s6376_s14] ss:$0 sm:$0xff] }
 0x48d   : > { %v2133_v57 = vpack.c.bf16 %v2103_v55, %v2102_v54 }
 0x48e   : > { %v1922_v59 = vpop.f32.mrb[76].mxu0 }
 0x48f   : > { %v2072_v60 = vadd.f32 %v5434_v26, %v1922_v59  ;;  %v1924_v61 = vpop.f32.mrb[77].mxu0  ;;  %4394 = vmatmul.mubr.bf16.vlgmr.msra.gmra.mrb[60].mxu1 %v2133_v57 }
 0x490   : > { %v1926_v62 = vpop.f32.mrb[78].mxu0  ;;  %4426 = vmatpush3.bf16.msra.mxu1 %v4675_v38  ;;  %v5463_v2 = vmul.f32 %v1924_v61, %v1924_v61 }
 0x491   : > { %v2073_v63 = vadd.f32 %v5434_v26, %v1926_v62  ;;  %v1928_v0 = vpop.f32.mrb[79].mxu0  ;;  %4427 = vmatprep.subr.bf16.mxu1 %v4676_v58  ;;  %v2104_v4 = vmax.f32 %v2072_v60, 0.0 }
 0x492   : > { %v5465_v3 = vmul.f32 %v1928_v0, %v1928_v0 }
 0x493   : > { %v2105_v5 = vmax.f32 %v2073_v63, 0.0 }
 0x494   : > { %v2974_v7 = vpack.c.bf16 %v5465_v3, %v5463_v2  ;;  %4428 = vmatpush3.bf16.msra.mxu1 %v4676_v58 }
 0x495   : > { %v2134_v8 = vpack.c.bf16 %v2105_v5, %v2104_v4  ;;  %4429 = vmatprep.subr.bf16.mxu1 %v4677_v1 }
 0x496   : > { %v1932_v10 = vpop.f32.mrb[80].mxu0 }
 0x497   : > { %v2074_v11 = vadd.f32 %v5434_v26, %v1932_v10  ;;  %v1934_v12 = vpop.f32.mrb[81].mxu0  ;;  %4397 = vmatprep.mubr.bf16.mxu1 %v2134_v8 }
 0x498   : > { %v1936_v13 = vpop.f32.mrb[82].mxu0  ;;  %4430 = vmatpush3.bf16.msra.mxu1 %v4677_v1  ;;  %v5477_v17 = vmul.f32 %v1934_v12, %v1934_v12 }
 0x499   : > { %v2075_v14 = vadd.f32 %v5434_v26, %v1936_v13  ;;  %v1938_v15 = vpop.f32.mrb[83].mxu0  ;;  %4431 = vmatprep.subr.bf16.mxu1 %v4678_v9  ;;  %v2106_v19 = vmax.f32 %v2074_v11, 0.0 }
 0x49a   : > { %v5479_v18 = vmul.f32 %v1938_v15, %v1938_v15 }
 0x49b   : > { %v2107_v20 = vmax.f32 %v2075_v14, 0.0 }
 0x49c   : > { %v2975_v21 = vpack.c.bf16 %v5479_v18, %v5477_v17  ;;  %4432 = vmatpush3.bf16.msra.mxu1 %v4678_v9 }
 0x49d   : > { %v2135_v22 = vpack.c.bf16 %v2107_v20, %v2106_v19  ;;  %4433 = vmatprep.subr.bf16.mxu1 %v4679_v16 }
 0x49e   : > { %v1942_v23 = vpop.f32.mrb[84].mxu0 }
 0x49f   : > { %v2076_v24 = vadd.f32 %v5434_v26, %v1942_v23  ;;  %v1944_v29 = vpop.f32.mrb[85].mxu0  ;;  %4398 = vmatmul.mubr.bf16.gmra.mrb[64].mxu1 %v2135_v22 }
 0x4a0   : > { %v1946_v25 = vpop.f32.mrb[86].mxu0  ;;  %4434 = vmatpush3.bf16.msra.mxu1 %v4679_v16  ;;  %v5488_v31 = vmul.f32 %v1944_v29, %v1944_v29 }
 0x4a1   : > { %v2077_v30 = vadd.f32 %v5434_v26, %v1946_v25  ;;  %v1948_v28 = vpop.f32.mrb[87].mxu0  ;;  %4435 = vmatprep.subr.bf16.mxu1 %v4680_v35  ;;  %v2108_v33 = vmax.f32 %v2076_v24, 0.0 }
 0x4a2   : > { %v5490_v32 = vmul.f32 %v1948_v28, %v1948_v28 }
 0x4a3   : > { %v2109_v34 = vmax.f32 %v2077_v30, 0.0 }
 0x4a4   : > { %v2976_v36 = vpack.c.bf16 %v5490_v32, %v5488_v31  ;;  %4436 = vmatpush3.bf16.msra.mxu1 %v4680_v35 }
 0x4a5   : > { %v2136_v37 = vpack.c.bf16 %v2109_v34, %v2108_v33 }
 0x4a6   : > { %v1952_v38 = vpop.f32.mrb[88].mxu0 }
 0x4a7   : > { %v2078_v39 = vadd.f32 %v5434_v26, %v1952_v38  ;;  %v1954_v40 = vpop.f32.mrb[89].mxu0  ;;  %4401 = vmatprep.mubr.bf16.mxu1 %v2136_v37 }
 0x4a8   : > { %v1956_v41 = vpop.f32.mrb[90].mxu0  ;;  %v5496_v46 = vmul.f32 %v1954_v40, %v1954_v40 }
 0x4a9   : > { %v2079_v43 = vadd.f32 %v5434_v26, %v1956_v41  ;;  %v1958_v44 = vpop.f32.mrb[91].mxu0  ;;  %v2110_v47 = vmax.f32 %v2078_v39, 0.0 }
 0x4aa   : > { %v5498_v27 = vmul.f32 %v1958_v44, %v1958_v44 }
 0x4ab   : > { %v2111_v48 = vmax.f32 %v2079_v43, 0.0 }
 0x4ac   : > { %v2977_v49 = vpack.c.bf16 %v5498_v27, %v5496_v46 }
 0x4ad   : > { %v2137_v50 = vpack.c.bf16 %v2111_v48, %v2110_v47 }
 0x4ae   : > { %v1962_v51 = vpop.f32.mrb[92].mxu0 }
 0x4af   : > { %v2080_v54 = vadd.f32 %v5434_v26, %v1962_v51  ;;  %v1964_v55 = vpop.f32.mrb[93].mxu0  ;;  %4402 = vmatmul.mubr.bf16.gmra.mrb[68].mxu1 %v2137_v50 }
 0x4b0   : > { %v1966_v57 = vpop.f32.mrb[94].mxu0  ;;  %v5504_v60 = vmul.f32 %v1964_v55, %v1964_v55 }
 0x4b1   : > { %v2081_v58 = vadd.f32 %v5434_v26, %v1966_v57  ;;  %v1968_v59 = vpop.f32.mrb[95].mxu0  ;;  %v2112_v62 = vmax.f32 %v2080_v54, 0.0 }
 0x4b2   : > { %v5506_v61 = vmul.f32 %v1968_v59, %v1968_v59 }
 0x4b3   : > { %v2113_v63 = vmax.f32 %v2081_v58, 0.0 }
 0x4b4   : > { %v2978_v0 = vpack.c.bf16 %v5506_v61, %v5504_v60 }
 0x4b5   : > { %v2138_v1 = vpack.c.bf16 %v2113_v63, %v2112_v62 }
 0x4b6   : > { %v1972_v4 = vpop.f32.mrb[96].mxu0 }
 0x4b7   : > { %v2082_v5 = vadd.f32 %v5434_v26, %v1972_v4  ;;  %v1974_v8 = vpop.f32.mrb[97].mxu0  ;;  %4405 = vmatprep.mubr.bf16.mxu1 %v2138_v1 }
 0x4b8   : > { %v1976_v9 = vpop.f32.mrb[98].mxu0  ;;  %v5512_v12 = vmul.f32 %v1974_v8, %v1974_v8 }
 0x4b9   : > { %v2083_v10 = vadd.f32 %v5434_v26, %v1976_v9  ;;  %v1978_v11 = vpop.f32.mrb[99].mxu0  ;;  %v2114_v14 = vmax.f32 %v2082_v5, 0.0 }
 0x4ba   : > { %v5514_v13 = vmul.f32 %v1978_v11, %v1978_v11 }
 0x4bb   : > { %v2115_v15 = vmax.f32 %v2083_v10, 0.0 }
 0x4bc   : > { %v2979_v16 = vpack.c.bf16 %v5514_v13, %v5512_v12 }
 0x4bd   : > { %v2139_v19 = vpack.c.bf16 %v2115_v15, %v2114_v14 }
 0x4be   : > { %v1982_v20 = vpop.f32.mrb[100].mxu0 }
 0x4bf   : > { %v2084_v22 = vadd.f32 %v5434_v26, %v1982_v20  ;;  %v1984_v35 = vpop.f32.mrb[101].mxu0  ;;  %4406 = vmatmul.mubr.bf16.gmra.mrb[72].mxu1 %v2139_v19 }
 0x4c0   : > { %v1986_v23 = vpop.f32.mrb[102].mxu0  ;;  %v5520_v25 = vmul.f32 %v1984_v35, %v1984_v35 }
 0x4c1   : > { %v2085_v24 = vadd.f32 %v5434_v26, %v1986_v23  ;;  %v1988_v29 = vpop.f32.mrb[103].mxu0  ;;  %v2116_v28 = vmax.f32 %v2084_v22, 0.0 }
 0x4c2   : > { %v5522_v30 = vmul.f32 %v1988_v29, %v1988_v29 }
 0x4c3   : > { %v2117_v33 = vmax.f32 %v2085_v24, 0.0 }
 0x4c4   : > { %v2980_v34 = vpack.c.bf16 %v5522_v30, %v5520_v25 }
 0x4c5   : > { %v2140_v37 = vpack.c.bf16 %v2117_v33, %v2116_v28 }
 0x4c6   : > { %v1992_v38 = vpop.f32.mrb[104].mxu0 }
 0x4c7   : > { %v2086_v39 = vadd.f32 %v5434_v26, %v1992_v38  ;;  %v1994_v40 = vpop.f32.mrb[105].mxu0  ;;  %4409 = vmatprep.mubr.bf16.mxu1 %v2140_v37 }
 0x4c8   : > { %v1996_v41 = vpop.f32.mrb[106].mxu0  ;;  %v5528_v47 = vmul.f32 %v1994_v40, %v1994_v40 }
 0x4c9   : > { %v2087_v43 = vadd.f32 %v5434_v26, %v1996_v41  ;;  %v1998_v44 = vpop.f32.mrb[107].mxu0  ;;  %v2118_v50 = vmax.f32 %v2086_v39, 0.0 }
 0x4ca   : > { %v5530_v48 = vmul.f32 %v1998_v44, %v1998_v44 }
 0x4cb   : > { %v2119_v51 = vmax.f32 %v2087_v43, 0.0 }
 0x4cc   : > { %v2981_v54 = vpack.c.bf16 %v5530_v48, %v5528_v47 }
 0x4cd   : > { %v2141_v55 = vpack.c.bf16 %v2119_v51, %v2118_v50 }
 0x4ce   : > { %v2002_v57 = vpop.f32.mrb[108].mxu0 }
 0x4cf   : > { %v2088_v58 = vadd.f32 %v5434_v26, %v2002_v57  ;;  %v2004_v59 = vpop.f32.mrb[109].mxu0  ;;  %4410 = vmatmul.mubr.bf16.gmra.mrb[76].mxu1 %v2141_v55 }
 0x4d0   : > { %v2006_v62 = vpop.f32.mrb[110].mxu0  ;;  %v5536_v4 = vmul.f32 %v2004_v59, %v2004_v59 }
 0x4d1   : > { %v2089_v63 = vadd.f32 %v5434_v26, %v2006_v62  ;;  %v2008_v1 = vpop.f32.mrb[111].mxu0  ;;  %v2120_v8 = vmax.f32 %v2088_v58, 0.0  ;;  %v4681_v58 = vld [vmem:[%s6375_s13 + $0x30] sm:$0xff]  }
 0x4d2   : > { %v5538_v5 = vmul.f32 %v2008_v1, %v2008_v1  ;;  %4437 = vmatprep.subr.bf16.mxu1 %v4681_v58 }
 0x4d3   : > { %v2121_v9 = vmax.f32 %v2089_v63, 0.0  ;;  %4438 = vmatpush3.bf16.msra.mxu1 %v4681_v58 }
 0x4d4   : > { %v2982_v10 = vpack.c.bf16 %v5538_v5, %v5536_v4 }
 0x4d5   : > { %v2142_v11 = vpack.c.bf16 %v2121_v9, %v2120_v8  ;;  %v4682_v9 = vld [vmem:[%s6375_s13 + $0x38] sm:$0xff]  }
 0x4d6   : > { %v2012_v14 = vpop.f32.mrb[112].mxu0  ;;  %4439 = vmatprep.subr.bf16.mxu1 %v4682_v9 }
 0x4d7   : > { %v2090_v15 = vadd.f32 %v5434_v26, %v2012_v14  ;;  %v2014_v19 = vpop.f32.mrb[113].mxu0  ;;  %4413 = vmatprep.mubr.bf16.mxu1 %v2142_v11  ;;  %4440 = vmatpush3.bf16.msra.mxu1 %v4682_v9 }
 0x4d8   : > { %v2016_v20 = vpop.f32.mrb[114].mxu0  ;;  %v5544_v23 = vmul.f32 %v2014_v19, %v2014_v19 }
 0x4d9   : > { %v2091_v22 = vadd.f32 %v5434_v26, %v2016_v20  ;;  %v2018_v35 = vpop.f32.mrb[115].mxu0  ;;  %v2122_v29 = vmax.f32 %v2090_v15, 0.0 }
 0x4da   : > { %v5546_v24 = vmul.f32 %v2018_v35, %v2018_v35 }
 0x4db   : > { %v2123_v28 = vmax.f32 %v2091_v22, 0.0 }
 0x4dc   : > { %v2983_v33 = vpack.c.bf16 %v5546_v24, %v5544_v23 }
 0x4dd   : > { %v2143_v37 = vpack.c.bf16 %v2123_v28, %v2122_v29 }
 0x4de   : > { %v2022_v38 = vpop.f32.mrb[116].mxu0 }
 0x4df   : > { %v2092_v39 = vadd.f32 %v5434_v26, %v2022_v38  ;;  %v2024_v40 = vpop.f32.mrb[117].mxu0  ;;  %4414 = vmatmul.mubr.bf16.gmra.mrb[80].mxu1 %v2143_v37 }
 0x4e0   : > { %v2026_v41 = vpop.f32.mrb[118].mxu0  ;;  %v5552_v50 = vmul.f32 %v2024_v40, %v2024_v40 }
 0x4e1   : > { %v2093_v43 = vadd.f32 %v5434_v26, %v2026_v41  ;;  %v2028_v44 = vpop.f32.mrb[119].mxu0  ;;  %v2124_v55 = vmax.f32 %v2092_v39, 0.0 }
 0x4e2   : > { %v5554_v51 = vmul.f32 %v2028_v44, %v2028_v44 }
 0x4e3   : > { %v2125_v57 = vmax.f32 %v2093_v43, 0.0 }
 0x4e4   : > { %v2984_v59 = vpack.c.bf16 %v5554_v51, %v5552_v50 }
 0x4e5   : > { %v2144_v62 = vpack.c.bf16 %v2125_v57, %v2124_v55 }
 0x4e6   : > { %v2032_v63 = vpop.f32.mrb[120].mxu0 }
 0x4e7   : > { %v2094_v1 = vadd.f32 %v5434_v26, %v2032_v63  ;;  %v2034_v8 = vpop.f32.mrb[121].mxu0  ;;  %4417 = vmatprep.mubr.bf16.mxu1 %v2144_v62 }
 0x4e8   : > { %v2036_v11 = vpop.f32.mrb[122].mxu0  ;;  %v5566_v19 = vmul.f32 %v2034_v8, %v2034_v8 }
 0x4e9   : > { %v2095_v14 = vadd.f32 %v5434_v26, %v2036_v11  ;;  %v2038_v15 = vpop.f32.mrb[123].mxu0  ;;  %v2126_v22 = vmax.f32 %v2094_v1, 0.0 }
 0x4ea   : > { %v5568_v20 = vmul.f32 %v2038_v15, %v2038_v15 }
 0x4eb   : > { %v2127_v35 = vmax.f32 %v2095_v14, 0.0 }
 0x4ec   : > { %v6407_v6 = vpack.c.bf16 %v5568_v20, %v5566_v19 }
 0x4ed   : > { %v2145_v28 = vpack.c.bf16 %v2127_v35, %v2126_v22 }
 0x4ee   : > { %v2042_v37 = vpop.f32.mrb[124].mxu0 }
 0x4ef   : > { %v2096_v38 = vadd.f32 %v5434_v26, %v2042_v37  ;;  %v2044_v39 = vpop.f32.mrb[125].mxu0  ;;  %4418 = vmatmul.mubr.bf16.gmra.mrb[84].mxu1 %v2145_v28 }
 0x4f0   : > { %v2046_v40 = vpop.f32.mrb[126].mxu0  ;;  %v5574_v44 = vmul.f32 %v2044_v39, %v2044_v39 }
 0x4f1   : > { %v2097_v41 = vadd.f32 %v5434_v26, %v2046_v40  ;;  %v2048_v43 = vpop.f32.mrb[127].mxu0  ;;  %v2128_v57 = vmax.f32 %v2096_v38, 0.0  ;;  %v4683_v40 = vld [vmem:[%s6379_s17] sm:$0xff]   ;;  %v4684_v38 = vld [vmem:[%s6379_s17 + $0x8] sm:$0xff]  }
 0x4f2   : > { %v5576_v55 = vmul.f32 %v2048_v43, %v2048_v43  ;;  %4521 = vmatprep.subr.bf16.mxu1 %v4683_v40 }
 0x4f3   : > { %v2129_v58 = vmax.f32 %v2097_v41, 0.0 }
 0x4f4   : > { %v6408_v42 = vpack.c.bf16 %v5576_v55, %v5574_v44 }
 0x4f5   : > { %v2146_v63 = vpack.c.bf16 %v2129_v58, %v2128_v57 }
 0x4f6   : > { %v2052_v1 = vpop.f32.mrb[128].mxu0 }
 0x4f7   : > { %v2098_v8 = vadd.f32 %v5434_v26, %v2052_v1  ;;  %v2054_v9 = vpop.f32.mrb[129].mxu0  ;;  %4421 = vmatprep.mubr.bf16.mxu1 %v2146_v63 }
 0x4f8   : > { %v2056_v11 = vpop.f32.mrb[130].mxu0  ;;  %v5582_v22 = vmul.f32 %v2054_v9, %v2054_v9 }
 0x4f9   : > { %v2099_v14 = vadd.f32 %v5434_v26, %v2056_v11  ;;  %v2058_v15 = vpop.f32.mrb[131].mxu0  ;;  %v2130_v28 = vmax.f32 %v2098_v8, 0.0  ;;  %v5594_v26 = vld [vmem:[%s6374_s12] ss:$0 sm:$0xff] }
 0x4fa   : > { %v5584_v35 = vmul.f32 %v2058_v15, %v2058_v15 }
 0x4fb   : > { %v2131_v37 = vmax.f32 %v2099_v14, 0.0 }
 0x4fd   : > { %v2147_v39 = vpack.c.bf16 %v2131_v37, %v2130_v28 }
 0x4ff   : > { %4422 = vmatmul.mubr.bf16.gmra.mrb[88].mxu1 %v2147_v39 }
 0x562   : > { %v4395_v41 = vpop.f32.mrb[60].mxu1 }
 0x563   : > { %v2262_v43 = vadd.f32 %v4395_v41, %v5594_v26  ;;  %v2253_v57 = vpop.f32.mrb[61].mxu1 }
 0x564   : > { %v2254_v58 = vadd.f32 %v5594_v26, %v2253_v57  ;;  %v4396_v63 = vpop.f32.mrb[62].mxu1 }
 0x565   : > { %v2265_v1 = vadd.f32 %v4396_v63, %v5594_v26  ;;  %v2256_v8 = vpop.f32.mrb[63].mxu1  ;;  %v2382_v11 = vmax.f32 %v2262_v43, 0.0 }
 0x566   : > { %v2257_v9 = vadd.f32 %v5594_v26, %v2256_v8  ;;  %v2380_v15 = vmax.f32 %v2254_v58, 0.0 }
 0x567   : > { %v2383_v14 = vmax.f32 %v2265_v1, 0.0 }
 0x568   : > { %v2381_v28 = vmax.f32 %v2257_v9, 0.0 }
 0x569   : > { %v2413_v37 = vpack.c.bf16 %v2383_v14, %v2382_v11 }
 0x56a   : > { %v2412_v39 = vpack.c.bf16 %v2381_v28, %v2380_v15 }
 0x56c   : > { %4441 = vmatprep.mubr.bf16.mxu1 %v2412_v39 }
 0x56d   : > { %4442 = vmatmul.mubr.bf16.vlgmr.msra.gmra.mrb[92].mxu1 %v2413_v37 }
 0x56e   : > { %4522 = vmatpush3.bf16.msra.mxu1 %v4683_v40 }
 0x56f   : > { %4523 = vmatprep.subr.bf16.mxu1 %v4684_v38 }
 0x572   : > { %v4399_v41 = vpop.f32.mrb[64].mxu1  ;;  %4524 = vmatpush3.bf16.msra.mxu1 %v4684_v38 }
 0x573   : > { %v2278_v57 = vadd.f32 %v4399_v41, %v5594_v26  ;;  %v2269_v63 = vpop.f32.mrb[65].mxu1 }
 0x574   : > { %v2270_v43 = vadd.f32 %v5594_v26, %v2269_v63  ;;  %v4400_v1 = vpop.f32.mrb[66].mxu1 }
 0x575   : > { %v2281_v58 = vadd.f32 %v4400_v1, %v5594_v26  ;;  %v2272_v8 = vpop.f32.mrb[67].mxu1  ;;  %v2386_v11 = vmax.f32 %v2278_v57, 0.0 }
 0x576   : > { %v2273_v9 = vadd.f32 %v5594_v26, %v2272_v8  ;;  %v2384_v15 = vmax.f32 %v2270_v43, 0.0 }
 0x577   : > { %v2387_v14 = vmax.f32 %v2281_v58, 0.0 }
 0x578   : > { %v2385_v28 = vmax.f32 %v2273_v9, 0.0 }
 0x579   : > { %v2415_v37 = vpack.c.bf16 %v2387_v14, %v2386_v11 }
 0x57a   : > { %v2414_v40 = vpack.c.bf16 %v2385_v28, %v2384_v15 }
 0x57c   : > { %4445 = vmatprep.mubr.bf16.mxu1 %v2414_v40 }
 0x57d   : > { %4446 = vmatmul.mubr.bf16.gmra.mrb[96].mxu1 %v2415_v37 }
 0x582   : > { %v4403_v38 = vpop.f32.mrb[68].mxu1 }
 0x583   : > { %v2294_v39 = vadd.f32 %v4403_v38, %v5594_v26  ;;  %v2285_v41 = vpop.f32.mrb[69].mxu1 }
 0x584   : > { %v2286_v63 = vadd.f32 %v5594_v26, %v2285_v41  ;;  %v4404_v62 = vpop.f32.mrb[70].mxu1 }
 0x585   : > { %v2297_v1 = vadd.f32 %v4404_v62, %v5594_v26  ;;  %v2288_v29 = vpop.f32.mrb[71].mxu1  ;;  %v2390_v57 = vmax.f32 %v2294_v39, 0.0 }
 0x586   : > { %v2289_v8 = vadd.f32 %v5594_v26, %v2288_v29  ;;  %v2388_v43 = vmax.f32 %v2286_v63, 0.0 }
 0x587   : > { %v2391_v58 = vmax.f32 %v2297_v1, 0.0 }
 0x588   : > { %v2389_v9 = vmax.f32 %v2289_v8, 0.0 }
 0x589   : > { %v2417_v11 = vpack.c.bf16 %v2391_v58, %v2390_v57 }
 0x58a   : > { %v2416_v14 = vpack.c.bf16 %v2389_v9, %v2388_v43  ;;  %v4685_v43 = vld [vmem:[%s6377_s15] sm:$0xff]   ;;  %v4686_v9 = vld [vmem:[%s6377_s15 + $0x8] sm:$0xff]  }
 0x58b   : > { %4473 = vmatprep.subr.bf16.mxu0 %v4685_v43 }
 0x58c   : > { %4449 = vmatprep.mubr.bf16.mxu1 %v2416_v14  ;;  %4474 = vmatpush3.bf16.msra.mxu0 %v4685_v43 }
 0x58d   : > { %4450 = vmatmul.mubr.bf16.gmra.mrb[100].mxu1 %v2417_v11  ;;  %4475 = vmatprep.subr.bf16.mxu0 %v4686_v9  ;;  %v4687_v11 = vld [vmem:[%s6377_s15 + $0x10] sm:$0xff]  }
 0x590   : > { %4476 = vmatpush3.bf16.msra.mxu0 %v4686_v9  ;;  %v4690_v9 = vld [vmem:[%s6377_s15 + $0x28] sm:$0xff]  }
 0x591   : > { %4477 = vmatprep.subr.bf16.mxu0 %v4687_v11 }
 0x592   : > { %v4407_v15 = vpop.f32.mrb[72].mxu1 }
 0x593   : > { %v2310_v28 = vadd.f32 %v4407_v15, %v5594_v26  ;;  %v2301_v37 = vpop.f32.mrb[73].mxu1 }
 0x594   : > { %v2302_v40 = vadd.f32 %v5594_v26, %v2301_v37  ;;  %v4408_v38 = vpop.f32.mrb[74].mxu1  ;;  %4478 = vmatpush3.bf16.msra.mxu0 %v4687_v11 }
 0x595   : > { %v2313_v62 = vadd.f32 %v4408_v38, %v5594_v26  ;;  %v2304_v41 = vpop.f32.mrb[75].mxu1  ;;  %v2394_v39 = vmax.f32 %v2310_v28, 0.0 }
 0x596   : > { %v2305_v29 = vadd.f32 %v5594_v26, %v2304_v41  ;;  %v2392_v63 = vmax.f32 %v2302_v40, 0.0  ;;  %v4688_v41 = vld [vmem:[%s6377_s15 + $0x18] sm:$0xff]  }
 0x597   : > { %v2395_v1 = vmax.f32 %v2313_v62, 0.0  ;;  %4479 = vmatprep.subr.bf16.mxu0 %v4688_v41 }
 0x598   : > { %v2393_v8 = vmax.f32 %v2305_v29, 0.0  ;;  %4480 = vmatpush3.bf16.msra.mxu0 %v4688_v41 }
 0x599   : > { %v2419_v57 = vpack.c.bf16 %v2395_v1, %v2394_v39 }
 0x59a   : > { %v2418_v58 = vpack.c.bf16 %v2393_v8, %v2392_v63 }
 0x59c   : > { %4453 = vmatprep.mubr.bf16.mxu1 %v2418_v58  ;;  %v4689_v58 = vld [vmem:[%s6377_s15 + $0x20] sm:$0xff]  }
 0x59d   : > { %4454 = vmatmul.mubr.bf16.gmra.mrb[104].mxu1 %v2419_v57  ;;  %4481 = vmatprep.subr.bf16.mxu0 %v4689_v58 }
 0x59e   : > { %4482 = vmatpush3.bf16.msra.mxu0 %v4689_v58 }
 0x59f   : > { %4483 = vmatprep.subr.bf16.mxu0 %v4690_v9 }
 0x5a2   : > { %v4411_v14 = vpop.f32.mrb[76].mxu1  ;;  %4484 = vmatpush3.bf16.msra.mxu0 %v4690_v9 }
 0x5a3   : > { %v2326_v15 = vadd.f32 %v4411_v14, %v5594_v26  ;;  %v2317_v28 = vpop.f32.mrb[77].mxu1 }
 0x5a4   : > { %v2318_v37 = vadd.f32 %v5594_v26, %v2317_v28  ;;  %v4412_v40 = vpop.f32.mrb[78].mxu1 }
 0x5a5   : > { %v2329_v38 = vadd.f32 %v4412_v40, %v5594_v26  ;;  %v2320_v62 = vpop.f32.mrb[79].mxu1  ;;  %v2398_v39 = vmax.f32 %v2326_v15, 0.0 }
 0x5a6   : > { %v2321_v29 = vadd.f32 %v5594_v26, %v2320_v62  ;;  %v2396_v63 = vmax.f32 %v2318_v37, 0.0 }
 0x5a7   : > { %v2399_v1 = vmax.f32 %v2329_v38, 0.0 }
 0x5a8   : > { %v2397_v8 = vmax.f32 %v2321_v29, 0.0 }
 0x5a9   : > { %v2421_v57 = vpack.c.bf16 %v2399_v1, %v2398_v39 }
 0x5aa   : > { %v2420_v43 = vpack.c.bf16 %v2397_v8, %v2396_v63 }
 0x5ac   : > { %4457 = vmatprep.mubr.bf16.mxu1 %v2420_v43 }
 0x5ad   : > { %4458 = vmatmul.mubr.bf16.gmra.mrb[108].mxu1 %v2421_v57  ;;  %v4691_v57 = vld [vmem:[%s6377_s15 + $0x30] sm:$0xff]  }
 0x5ae   : > { %4485 = vmatprep.subr.bf16.mxu0 %v4691_v57 }
 0x5af   : > { %4486 = vmatpush3.bf16.msra.mxu0 %v4691_v57 }
 0x5b2   : > { %v4415_v14 = vpop.f32.mrb[80].mxu1 }
 0x5b3   : > { %v2342_v11 = vadd.f32 %v4415_v14, %v5594_v26  ;;  %v2333_v15 = vpop.f32.mrb[81].mxu1 }
 0x5b4   : > { %v2334_v28 = vadd.f32 %v5594_v26, %v2333_v15  ;;  %v4416_v37 = vpop.f32.mrb[82].mxu1 }
 0x5b5   : > { %v2345_v40 = vadd.f32 %v4416_v37, %v5594_v26  ;;  %v2336_v38 = vpop.f32.mrb[83].mxu1  ;;  %v2402_v41 = vmax.f32 %v2342_v11, 0.0  ;;  %v4692_v37 = vld [vmem:[%s6377_s15 + $0x38] sm:$0xff]  }
 0x5b6   : > { %v2337_v62 = vadd.f32 %v5594_v26, %v2336_v38  ;;  %v2400_v39 = vmax.f32 %v2334_v28, 0.0  ;;  %4487 = vmatprep.subr.bf16.mxu0 %v4692_v37 }
 0x5b7   : > { %v2403_v29 = vmax.f32 %v2345_v40, 0.0  ;;  %4488 = vmatpush3.bf16.msra.mxu0 %v4692_v37 }
 0x5b8   : > { %v2401_v1 = vmax.f32 %v2337_v62, 0.0 }
 0x5b9   : > { %v2423_v63 = vpack.c.bf16 %v2403_v29, %v2402_v41 }
 0x5ba   : > { %v2422_v8 = vpack.c.bf16 %v2401_v1, %v2400_v39 }
 0x5bc   : > { %4461 = vmatprep.mubr.bf16.mxu1 %v2422_v8 }
 0x5bd   : > { %4462 = vmatmul.mubr.bf16.gmra.mrb[112].mxu1 %v2423_v63 }
 0x5c2   : > { %v4419_v58 = vpop.f32.mrb[84].mxu1 }
 0x5c3   : > { %v2358_v43 = vadd.f32 %v4419_v58, %v5594_v26  ;;  %v2349_v9 = vpop.f32.mrb[85].mxu1 }
 0x5c4   : > { %v2350_v14 = vadd.f32 %v5594_v26, %v2349_v9  ;;  %v4420_v15 = vpop.f32.mrb[86].mxu1 }
 0x5c5   : > { %v2361_v11 = vadd.f32 %v4420_v15, %v5594_v26  ;;  %v2352_v28 = vpop.f32.mrb[87].mxu1  ;;  %v2406_v38 = vmax.f32 %v2358_v43, 0.0 }
 0x5c6   : > { %v2353_v40 = vadd.f32 %v5594_v26, %v2352_v28  ;;  %v2404_v41 = vmax.f32 %v2350_v14, 0.0 }
 0x5c7   : > { %v2407_v62 = vmax.f32 %v2361_v11, 0.0 }
 0x5c8   : > { %v2405_v29 = vmax.f32 %v2353_v40, 0.0 }
 0x5c9   : > { %v2425_v39 = vpack.c.bf16 %v2407_v62, %v2406_v38 }
 0x5ca   : > { %v2424_v1 = vpack.c.bf16 %v2405_v29, %v2404_v41 }
 0x5cc   : > { %4465 = vmatprep.mubr.bf16.mxu1 %v2424_v1 }
 0x5cd   : > { %4466 = vmatmul.mubr.bf16.gmra.mrb[116].mxu1 %v2425_v39 }
 0x5d2   : > { %v4423_v63 = vpop.f32.mrb[88].mxu1 }
 0x5d3   : > { %v2374_v8 = vadd.f32 %v4423_v63, %v5594_v26  ;;  %v2365_v57 = vpop.f32.mrb[89].mxu1 }
 0x5d4   : > { %v2366_v58 = vadd.f32 %v5594_v26, %v2365_v57  ;;  %v4424_v9 = vpop.f32.mrb[90].mxu1 }
 0x5d5   : > { %v2377_v15 = vadd.f32 %v4424_v9, %v5594_v26  ;;  %v2368_v28 = vpop.f32.mrb[91].mxu1  ;;  %v2410_v11 = vmax.f32 %v2374_v8, 0.0 }
 0x5d6   : > { %v2369_v43 = vadd.f32 %v5594_v26, %v2368_v28  ;;  %v2408_v40 = vmax.f32 %v2366_v58, 0.0 }
 0x5d7   : > { %v2411_v14 = vmax.f32 %v2377_v15, 0.0 }
 0x5d8   : > { %v2409_v37 = vmax.f32 %v2369_v43, 0.0 }
 0x5d9   : > { %v2427_v38 = vpack.c.bf16 %v2411_v14, %v2410_v11 }
 0x5da   : > { %v2426_v62 = vpack.c.bf16 %v2409_v37, %v2408_v40 }
 0x5dc   : > { %4469 = vmatprep.mubr.bf16.mxu1 %v2426_v62 }
 0x5dd   : > { %4470 = vmatmul.mubr.bf16.gmra.mrb[120].mxu1 %v2427_v38 }
 0x5de   : > { %4525 = vmatprep.mubr.msk.bf16.mxu1 %vm1819_vm1, %v2972_v45  ;;  %v6409_v45 = vpack.c.bf16 %v5584_v35, %v5582_v22 }
 0x5e5   : > { %4526 = vmatmul.mubr.msk.bf16.vlgmr.msra.gmra.mrb[124].mxu1 %vm1819_vm1, %v2973_v56 }
 0x5e6   : > { %4529 = vmatprep.mubr.msk.bf16.mxu1 %vm1819_vm1, %v2974_v7 }
 0x5ed   : > { %4530 = vmatmul.mubr.msk.bf16.gmra.mrb[128].mxu1 %vm1819_vm1, %v2975_v21 }
 0x5ee   : > { %4533 = vmatprep.mubr.msk.bf16.mxu1 %vm1819_vm1, %v2976_v36 }
 0x5f5   : > { %4534 = vmatmul.mubr.msk.bf16.gmra.mrb[132].mxu1 %vm1819_vm1, %v2977_v49 }
 0x5f6   : > { %4537 = vmatprep.mubr.msk.bf16.mxu1 %vm1819_vm1, %v2978_v0 }
 0x5fd   : > { %4538 = vmatmul.mubr.msk.bf16.gmra.mrb[136].mxu1 %vm1819_vm1, %v2979_v16 }
 0x5fe   : > { %4541 = vmatprep.mubr.msk.bf16.mxu1 %vm1819_vm1, %v2980_v34 }
 0x605   : > { %4542 = vmatmul.mubr.msk.bf16.gmra.mrb[140].mxu1 %vm1819_vm1, %v2981_v54 }
 0x606   : > { %4545 = vmatprep.mubr.msk.bf16.mxu1 %vm1819_vm1, %v2982_v10 }
 0x60d   : > { %4546 = vmatmul.mubr.msk.bf16.gmra.mrb[144].mxu1 %vm1819_vm1, %v2983_v33 }
 0x60e   : > { %4549 = vmatprep.mubr.msk.bf16.mxu1 %vm1819_vm1, %v2984_v59 }
 0x615   : > { %4550 = vmatmul.mubr.msk.bf16.gmra.mrb[148].mxu1 %vm1819_vm1, %v6407_v6 }
 0x616   : > { %4553 = vmatprep.mubr.msk.bf16.mxu1 %vm1819_vm1, %v6408_v42 }
 0x61d   : > { %4554 = vmatmul.mubr.msk.bf16.gmra.mrb[152].mxu1 %vm1819_vm1, %v6409_v45 }
 0x640   : > { %v4443_v53 = vpop.f32.mrb[92].mxu1 }
 0x641   : > { %v2542_v56 = vadd.f32 %v4443_v53, %v5722_v52  ;;  %v2533_v2 = vpop.f32.mrb[93].mxu1 }
 0x642   : > { %v2534_v3 = vadd.f32 %v5722_v52, %v2533_v2  ;;  %v4444_v7 = vpop.f32.mrb[94].mxu1 }
 0x643   : > { %v2545_v17 = vadd.f32 %v4444_v7, %v5722_v52  ;;  %v2536_v18 = vpop.f32.mrb[95].mxu1  ;;  %v2662_v31 = vmax.f32 %v2542_v56, 0.0 }
 0x644   : > { %v2537_v21 = vadd.f32 %v5722_v52, %v2536_v18  ;;  %v2660_v36 = vmax.f32 %v2534_v3, 0.0 }
 0x645   : > { %v2663_v32 = vmax.f32 %v2545_v17, 0.0 }
 0x646   : > { %v2661_v46 = vmax.f32 %v2537_v21, 0.0 }
 0x647   : > { %v2693_v27 = vpack.c.bf16 %v2663_v32, %v2662_v31 }
 0x648   : > { %v2692_v49 = vpack.c.bf16 %v2661_v46, %v2660_v36 }
 0x64a   : > { %4489 = vmatprep.mubr.bf16.mxu0 %v2692_v49 }
 0x64b   : > { %4490 = vmatmul.mubr.bf16.vlgmr.msra.gmra.mrb[132].mxu0 %v2693_v27 }
 0x650   : > { %v4447_v60 = vpop.f32.mrb[96].mxu1 }
 0x651   : > { %v2558_v61 = vadd.f32 %v4447_v60, %v5722_v52  ;;  %v2549_v0 = vpop.f32.mrb[97].mxu1 }
 0x652   : > { %v2550_v12 = vadd.f32 %v5722_v52, %v2549_v0  ;;  %v4448_v13 = vpop.f32.mrb[98].mxu1 }
 0x653   : > { %v2561_v16 = vadd.f32 %v4448_v13, %v5722_v52  ;;  %v2552_v25 = vpop.f32.mrb[99].mxu1  ;;  %v2666_v34 = vmax.f32 %v2558_v61, 0.0 }
 0x654   : > { %v2553_v30 = vadd.f32 %v5722_v52, %v2552_v25  ;;  %v2664_v48 = vmax.f32 %v2550_v12, 0.0 }
 0x655   : > { %v2667_v47 = vmax.f32 %v2561_v16, 0.0 }
 0x656   : > { %v2665_v54 = vmax.f32 %v2553_v30, 0.0 }
 0x657   : > { %v2695_v4 = vpack.c.bf16 %v2667_v47, %v2666_v34 }
 0x658   : > { %v2694_v5 = vpack.c.bf16 %v2665_v54, %v2664_v48 }
 0x65a   : > { %4493 = vmatprep.mubr.bf16.mxu0 %v2694_v5 }
 0x65b   : > { %4494 = vmatmul.mubr.bf16.gmra.mrb[136].mxu0 %v2695_v4 }
 0x660   : > { %v4451_v10 = vpop.f32.mrb[100].mxu1 }
 0x661   : > { %v2574_v23 = vadd.f32 %v4451_v10, %v5722_v52  ;;  %v2565_v24 = vpop.f32.mrb[101].mxu1 }
 0x662   : > { %v2566_v33 = vadd.f32 %v5722_v52, %v2565_v24  ;;  %v4452_v50 = vpop.f32.mrb[102].mxu1 }
 0x663   : > { %v2577_v51 = vadd.f32 %v4452_v50, %v5722_v52  ;;  %v2568_v59 = vpop.f32.mrb[103].mxu1  ;;  %v2670_v20 = vmax.f32 %v2574_v23, 0.0 }
 0x664   : > { %v2569_v19 = vadd.f32 %v5722_v52, %v2568_v59  ;;  %v2668_v55 = vmax.f32 %v2566_v33, 0.0 }
 0x665   : > { %v2671_v44 = vmax.f32 %v2577_v51, 0.0 }
 0x666   : > { %v2669_v22 = vmax.f32 %v2569_v19, 0.0 }
 0x667   : > { %v2697_v35 = vpack.c.bf16 %v2671_v44, %v2670_v20 }
 0x668   : > { %v2696_v26 = vpack.c.bf16 %v2669_v22, %v2668_v55 }
 0x66a   : > { %4497 = vmatprep.mubr.bf16.mxu0 %v2696_v26 }
 0x66b   : > { %4498 = vmatmul.mubr.bf16.gmra.mrb[140].mxu0 %v2697_v35 }
 0x670   : > { %v4455_v41 = vpop.f32.mrb[104].mxu1 }
 0x671   : > { %v2590_v29 = vadd.f32 %v4455_v41, %v5722_v52  ;;  %v2581_v39 = vpop.f32.mrb[105].mxu1 }
 0x672   : > { %v2582_v1 = vadd.f32 %v5722_v52, %v2581_v39  ;;  %v4456_v63 = vpop.f32.mrb[106].mxu1 }
 0x673   : > { %v2593_v8 = vadd.f32 %v4456_v63, %v5722_v52  ;;  %v2584_v57 = vpop.f32.mrb[107].mxu1  ;;  %v2674_v9 = vmax.f32 %v2590_v29, 0.0 }
 0x674   : > { %v2585_v58 = vadd.f32 %v5722_v52, %v2584_v57  ;;  %v2672_v28 = vmax.f32 %v2582_v1, 0.0 }
 0x675   : > { %v2675_v15 = vmax.f32 %v2593_v8, 0.0 }
 0x676   : > { %v2673_v43 = vmax.f32 %v2585_v58, 0.0 }
 0x677   : > { %v2699_v11 = vpack.c.bf16 %v2675_v15, %v2674_v9 }
 0x678   : > { %v2698_v14 = vpack.c.bf16 %v2673_v43, %v2672_v28 }
 0x67a   : > { %4501 = vmatprep.mubr.bf16.mxu0 %v2698_v14 }
 0x67b   : > { %4502 = vmatmul.mubr.bf16.gmra.mrb[144].mxu0 %v2699_v11 }
 0x680   : > { %v4459_v40 = vpop.f32.mrb[108].mxu1 }
 0x681   : > { %v2606_v37 = vadd.f32 %v4459_v40, %v5722_v52  ;;  %v2597_v38 = vpop.f32.mrb[109].mxu1 }
 0x682   : > { %v2598_v62 = vadd.f32 %v5722_v52, %v2597_v38  ;;  %v4460_v6 = vpop.f32.mrb[110].mxu1 }
 0x683   : > { %v2609_v42 = vadd.f32 %v4460_v6, %v5722_v52  ;;  %v2600_v45 = vpop.f32.mrb[111].mxu1  ;;  %v2678_v56 = vmax.f32 %v2606_v37, 0.0 }
 0x684   : > { %v2601_v53 = vadd.f32 %v5722_v52, %v2600_v45  ;;  %v2676_v3 = vmax.f32 %v2598_v62, 0.0 }
 0x685   : > { %v2679_v2 = vmax.f32 %v2609_v42, 0.0 }
 0x686   : > { %v2677_v7 = vmax.f32 %v2601_v53, 0.0 }
 0x687   : > { %v2701_v17 = vpack.c.bf16 %v2679_v2, %v2678_v56 }
 0x688   : > { %v2700_v18 = vpack.c.bf16 %v2677_v7, %v2676_v3 }
 0x68a   : > { %4505 = vmatprep.mubr.bf16.mxu0 %v2700_v18 }
 0x68b   : > { %4506 = vmatmul.mubr.bf16.gmra.mrb[148].mxu0 %v2701_v17 }
 0x690   : > { %v4463_v21 = vpop.f32.mrb[112].mxu1 }
 0x691   : > { %v2622_v31 = vadd.f32 %v4463_v21, %v5722_v52  ;;  %v2613_v32 = vpop.f32.mrb[113].mxu1 }
 0x692   : > { %v2614_v36 = vadd.f32 %v5722_v52, %v2613_v32  ;;  %v4464_v46 = vpop.f32.mrb[114].mxu1 }
 0x693   : > { %v2625_v27 = vadd.f32 %v4464_v46, %v5722_v52  ;;  %v2616_v49 = vpop.f32.mrb[115].mxu1  ;;  %v2682_v61 = vmax.f32 %v2622_v31, 0.0 }
 0x694   : > { %v2617_v60 = vadd.f32 %v5722_v52, %v2616_v49  ;;  %v2680_v12 = vmax.f32 %v2614_v36, 0.0 }
 0x695   : > { %v2683_v0 = vmax.f32 %v2625_v27, 0.0 }
 0x696   : > { %v2681_v13 = vmax.f32 %v2617_v60, 0.0 }
 0x697   : > { %v2703_v16 = vpack.c.bf16 %v2683_v0, %v2682_v61 }
 0x698   : > { %v2702_v25 = vpack.c.bf16 %v2681_v13, %v2680_v12 }
 0x69a   : > { %4509 = vmatprep.mubr.bf16.mxu0 %v2702_v25 }
 0x69b   : > { %4510 = vmatmul.mubr.bf16.gmra.mrb[152].mxu0 %v2703_v16 }
 0x6a0   : > { %v4467_v30 = vpop.f32.mrb[116].mxu1 }
 0x6a1   : > { %v2638_v34 = vadd.f32 %v4467_v30, %v5722_v52  ;;  %v2629_v47 = vpop.f32.mrb[117].mxu1 }
 0x6a2   : > { %v2630_v48 = vadd.f32 %v5722_v52, %v2629_v47  ;;  %v4468_v54 = vpop.f32.mrb[118].mxu1 }
 0x6a3   : > { %v2641_v4 = vadd.f32 %v4468_v54, %v5722_v52  ;;  %v2632_v5 = vpop.f32.mrb[119].mxu1  ;;  %v2686_v23 = vmax.f32 %v2638_v34, 0.0 }
 0x6a4   : > { %v2633_v10 = vadd.f32 %v5722_v52, %v2632_v5  ;;  %v2684_v33 = vmax.f32 %v2630_v48, 0.0 }
 0x6a5   : > { %v2687_v24 = vmax.f32 %v2641_v4, 0.0 }
 0x6a6   : > { %v2685_v50 = vmax.f32 %v2633_v10, 0.0 }
 0x6a7   : > { %v2705_v51 = vpack.c.bf16 %v2687_v24, %v2686_v23 }
 0x6a8   : > { %v2704_v59 = vpack.c.bf16 %v2685_v50, %v2684_v33 }
 0x6aa   : > { %4513 = vmatprep.mubr.bf16.mxu0 %v2704_v59 }
 0x6ab   : > { %4514 = vmatmul.mubr.bf16.gmra.mrb[156].mxu0 %v2705_v51 }
 0x6b0   : > { %v4471_v19 = vpop.f32.mrb[120].mxu1 }
 0x6b1   : > { %v2654_v20 = vadd.f32 %v4471_v19, %v5722_v52  ;;  %v2645_v44 = vpop.f32.mrb[121].mxu1 }
 0x6b2   : > { %v2646_v55 = vadd.f32 %v5722_v52, %v2645_v44  ;;  %v4472_v22 = vpop.f32.mrb[122].mxu1 }
 0x6b3   : > { %v2657_v35 = vadd.f32 %v4472_v22, %v5722_v52  ;;  %v2648_v26 = vpop.f32.mrb[123].mxu1  ;;  %v2690_v29 = vmax.f32 %v2654_v20, 0.0 }
 0x6b4   : > { %v2649_v41 = vadd.f32 %v5722_v52, %v2648_v26  ;;  %v2688_v1 = vmax.f32 %v2646_v55, 0.0 }
 0x6b5   : > { %v2691_v39 = vmax.f32 %v2657_v35, 0.0 }
 0x6b6   : > { %v2689_v63 = vmax.f32 %v2649_v41, 0.0 }
 0x6b7   : > { %v2707_v8 = vpack.c.bf16 %v2691_v39, %v2690_v29 }
 0x6b8   : > { %v2706_v57 = vpack.c.bf16 %v2689_v63, %v2688_v1  ;;  %v4527_v58 = vpop.f32.mrb[124].mxu1 }
 0x6b9   : > { %v3095_v9 = vadd.f32 40.0, %v4527_v58  ;;  %v3086_v15 = vpop.f32.mrb[125].mxu1 }
 0x6ba   : > { %v3087_v28 = vadd.f32 40.0, %v3086_v15  ;;  %4517 = vmatprep.mubr.bf16.mxu0 %v2706_v57  ;;  %v4528_v43 = vpop.f32.mrb[126].mxu1 }
 0x6bb   : > { %v5756_v11 = vmul.f32 0.020833334, %v3095_v9  ;;  %v3098_v14 = vadd.f32 40.0, %v4528_v43  ;;  %4518 = vmatmul.mubr.bf16.gmra.mrb[160].mxu0 %v2707_v8  ;;  %v3089_v40 = vpop.f32.mrb[127].mxu1 }
 0x6bc   : > { %v5758_v37 = vmul.f32 0.020833334, %v3087_v28  ;;  %v3090_v52 = vadd.f32 40.0, %v3089_v40 }
 0x6bd   : > { %v5760_v38 = vmul.f32 0.020833334, %v3098_v14  ;;  %v3252_v62 = vsel %vm3245_vm2, %v5756_v11, 0.0 }
 0x6be   : > { %v5764_v6 = vmul.f32 0.020833334, %v3090_v52  ;;  %3253 = vadd.xlane.f32.xlu1 %v3252_v62  ;;  %v3246_v42 = vsel %vm3245_vm2, %v5758_v37, 0.0 }
 0x6bf   : > { %3247 = vadd.xlane.f32.xlu0 %v3246_v42  ;;  %v3255_v2 = vsel %vm3245_vm2, %v5760_v38, 0.0 }
 0x6c0   : > { %v4531_v45 = vpop.f32.mrb[128].mxu1  ;;  %v3249_v17 = vsel %vm3245_vm2, %v5764_v6, 0.0 }
 0x6c1   : > { %v3111_v53 = vadd.f32 40.0, %v4531_v45  ;;  %v3102_v56 = vpop.f32.mrb[129].mxu1 }
 0x6c2   : > { %v3103_v3 = vadd.f32 40.0, %v3102_v56  ;;  %3256 = vadd.xlane.f32.xlu1 %v3255_v2  ;;  %v4532_v7 = vpop.f32.mrb[130].mxu1 }
 0x6c3   : > { %v5772_v18 = vmul.f32 0.020833334, %v3111_v53  ;;  %v3114_v21 = vadd.f32 40.0, %v4532_v7  ;;  %v3105_v31 = vpop.f32.mrb[131].mxu1  ;;  %3250 = vadd.xlane.f32.xlu0 %v3249_v17 }
 0x6c4   : > { %v3106_v32 = vadd.f32 40.0, %v3105_v31  ;;  %v5778_v27 = vmul.f32 0.020833334, %v3103_v3 }
 0x6c5   : > { %v5774_v36 = vmul.f32 0.020833334, %v3114_v21  ;;  %v3264_v46 = vsel %vm3245_vm2, %v5772_v18, 0.0 }
 0x6c6   : > { %v5780_v49 = vmul.f32 0.020833334, %v3106_v32  ;;  %v3258_v25 = vsel %vm3245_vm2, %v5778_v27, 0.0 }
 0x6c7   : > { %3265 = vadd.xlane.f32.xlu0 %v3264_v46  ;;  %v3267_v60 = vsel %vm3245_vm2, %v5774_v36, 0.0 }
 0x6c8   : > { %3268 = vadd.xlane.f32.xlu1 %v3267_v60  ;;  %v4535_v61 = vpop.f32.mrb[132].mxu1  ;;  %v3261_v48 = vsel %vm3245_vm2, %v5780_v49, 0.0 }
 0x6c9   : > { %v3127_v0 = vadd.f32 40.0, %v4535_v61  ;;  %v3118_v12 = vpop.f32.mrb[133].mxu1 }
 0x6ca   : > { %v3119_v13 = vadd.f32 40.0, %v3118_v12  ;;  %v4536_v16 = vpop.f32.mrb[134].mxu1 }
 0x6cb   : > { %v5786_v30 = vmul.f32 0.020833334, %v3127_v0  ;;  %v3130_v34 = vadd.f32 40.0, %v4536_v16  ;;  %v3121_v47 = vpop.f32.mrb[135].mxu1  ;;  %3259 = vadd.xlane.f32.xlu0 %v3258_v25 }
 0x6cc   : > { %v3122_v54 = vadd.f32 40.0, %v3121_v47  ;;  %3262 = vadd.xlane.f32.xlu1 %v3261_v48  ;;  %v5794_v10 = vmul.f32 0.020833334, %v3119_v13 }
 0x6cd   : > { %v5790_v4 = vmul.f32 0.020833334, %v3130_v34  ;;  %v3276_v5 = vsel %vm3245_vm2, %v5786_v30, 0.0 }
 0x6ce   : > { %v5796_v23 = vmul.f32 0.020833334, %v3122_v54  ;;  %v3270_v20 = vsel %vm3245_vm2, %v5794_v10, 0.0 }
 0x6cf   : > { %3277 = vadd.xlane.f32.xlu0 %v3276_v5  ;;  %v3279_v24 = vsel %vm3245_vm2, %v5790_v4, 0.0 }
 0x6d0   : > { %v4539_v33 = vpop.f32.mrb[136].mxu1  ;;  %3280 = vadd.xlane.f32.xlu1 %v3279_v24  ;;  %v3273_v35 = vsel %vm3245_vm2, %v5796_v23, 0.0 }
 0x6d1   : > { %v3143_v50 = vadd.f32 40.0, %v4539_v33  ;;  %v3134_v51 = vpop.f32.mrb[137].mxu1 }
 0x6d2   : > { %v3135_v59 = vadd.f32 40.0, %v3134_v51  ;;  %v4540_v19 = vpop.f32.mrb[138].mxu1 }
 0x6d3   : > { %v5802_v44 = vmul.f32 0.020833334, %v3143_v50  ;;  %v3146_v55 = vadd.f32 40.0, %v4540_v19  ;;  %v3137_v22 = vpop.f32.mrb[139].mxu1  ;;  %3271 = vadd.xlane.f32.xlu0 %v3270_v20 }
 0x6d4   : > { %v3138_v26 = vadd.f32 40.0, %v3137_v22  ;;  %3274 = vadd.xlane.f32.xlu1 %v3273_v35  ;;  %v5810_v39 = vmul.f32 0.020833334, %v3135_v59 }
 0x6d5   : > { %v5806_v41 = vmul.f32 0.020833334, %v3146_v55  ;;  %v3288_v29 = vsel %vm3245_vm2, %v5802_v44, 0.0 }
 0x6d6   : > { %v5812_v1 = vmul.f32 0.020833334, %v3138_v26  ;;  %v3282_v28 = vsel %vm3245_vm2, %v5810_v39, 0.0 }
 0x6d7   : > { %3289 = vadd.xlane.f32.xlu0 %v3288_v29  ;;  %v3291_v63 = vsel %vm3245_vm2, %v5806_v41, 0.0 }
 0x6d8   : > { %v4543_v8 = vpop.f32.mrb[140].mxu1  ;;  %3292 = vadd.xlane.f32.xlu1 %v3291_v63  ;;  %v3285_v52 = vsel %vm3245_vm2, %v5812_v1, 0.0 }
 0x6d9   : > { %v3159_v57 = vadd.f32 40.0, %v4543_v8  ;;  %v3150_v58 = vpop.f32.mrb[141].mxu1 }
 0x6da   : > { %v3151_v9 = vadd.f32 40.0, %v3150_v58  ;;  %v4544_v15 = vpop.f32.mrb[142].mxu1 }
 0x6db   : > { %v5818_v43 = vmul.f32 0.020833334, %v3159_v57  ;;  %v3162_v14 = vadd.f32 40.0, %v4544_v15  ;;  %v3153_v40 = vpop.f32.mrb[143].mxu1  ;;  %3283 = vadd.xlane.f32.xlu0 %v3282_v28  ;;  %v5864_v57 = vpop.permute.xlu1 %3442 }
 0x6dc   : > { %v3154_v62 = vadd.f32 40.0, %v3153_v40  ;;  %3286 = vadd.xlane.f32.xlu1 %v3285_v52  ;;  %v5826_v53 = vmul.f32 0.020833334, %v3151_v9 }
 0x6dd   : > { %v5822_v42 = vmul.f32 0.020833334, %v3162_v14  ;;  %v3300_v45 = vsel %vm3245_vm2, %v5818_v43, 0.0 }
 0x6de   : > { %v5828_v56 = vmul.f32 0.020833334, %v3154_v62  ;;  %v3294_v32 = vsel %vm3245_vm2, %v5826_v53, 0.0 }
 0x6df   : > { %3301 = vadd.xlane.f32.xlu0 %v3300_v45  ;;  %v3303_v2 = vsel %vm3245_vm2, %v5822_v42, 0.0 }
 0x6e0   : > { %v4547_v3 = vpop.f32.mrb[144].mxu1  ;;  %3304 = vadd.xlane.f32.xlu1 %v3303_v2  ;;  %v3297_v0 = vsel %vm3245_vm2, %v5828_v56, 0.0 }
 0x6e1   : > { %v3175_v7 = vadd.f32 40.0, %v4547_v3  ;;  %v3166_v17 = vpop.f32.mrb[145].mxu1 }
 0x6e2   : > { %v3167_v21 = vadd.f32 40.0, %v3166_v17  ;;  %v4548_v31 = vpop.f32.mrb[146].mxu1 }
 0x6e3   : > { %v5834_v46 = vmul.f32 0.020833334, %v3175_v7  ;;  %v3178_v60 = vadd.f32 40.0, %v4548_v31  ;;  %v3169_v61 = vpop.f32.mrb[147].mxu1  ;;  %3295 = vadd.xlane.f32.xlu0 %v3294_v32 }
 0x6e4   : > { %v3170_v12 = vadd.f32 40.0, %v3169_v61  ;;  %3298 = vadd.xlane.f32.xlu1 %v3297_v0  ;;  %v5842_v25 = vmul.f32 0.020833334, %v3167_v21  ;;  %v5878_v21 = vpop.permute.xlu1 %3444 }
 0x6e5   : > { %v5838_v13 = vmul.f32 0.020833334, %v3178_v60  ;;  %v3312_v16 = vsel %vm3245_vm2, %v5834_v46, 0.0 }
 0x6e6   : > { %v5844_v34 = vmul.f32 0.020833334, %v3170_v12  ;;  %v3306_v50 = vsel %vm3245_vm2, %v5842_v25, 0.0  ;;  %v5890_v12 = vpop.permute.xlu0 %3438 }
 0x6e7   : > { %3313 = vadd.xlane.f32.xlu0 %v3312_v16  ;;  %v3315_v47 = vsel %vm3245_vm2, %v5838_v13, 0.0 }
 0x6e8   : > { %v4551_v48 = vpop.f32.mrb[148].mxu1  ;;  %3316 = vadd.xlane.f32.xlu1 %v3315_v47  ;;  %v3309_v20 = vsel %vm3245_vm2, %v5844_v34, 0.0  ;;  %v5888_v0 = vpop.permute.xlu1 %3440 }
 0x6e9   : > { %v3191_v54 = vadd.f32 40.0, %v4551_v48  ;;  %v3182_v5 = vpop.f32.mrb[149].mxu1 }
 0x6ea   : > { %v3183_v24 = vadd.f32 40.0, %v3182_v5  ;;  %v4552_v33 = vpop.f32.mrb[150].mxu1  ;;  %v5894_v47 = vpop.permute.xlu0 %3450 }
 0x6eb   : > { %v5850_v51 = vmul.f32 0.020833334, %v3191_v54  ;;  %v3194_v59 = vadd.f32 40.0, %v4552_v33  ;;  %v3185_v19 = vpop.f32.mrb[151].mxu1  ;;  %3307 = vadd.xlane.f32.xlu0 %v3306_v50 }
 0x6ec   : > { %v3186_v55 = vadd.f32 40.0, %v3185_v19  ;;  %3310 = vadd.xlane.f32.xlu1 %v3309_v20  ;;  %v5858_v26 = vmul.f32 0.020833334, %v3183_v24  ;;  %v5892_v16 = vpop.permute.xlu1 %3452 }
 0x6ed   : > { %v5854_v22 = vmul.f32 0.020833334, %v3194_v59  ;;  %v3324_v35 = vsel %vm3245_vm2, %v5850_v51, 0.0 }
 0x6ee   : > { %v5860_v29 = vmul.f32 0.020833334, %v3186_v55  ;;  %v3318_v14 = vsel %vm3245_vm2, %v5858_v26, 0.0  ;;  %v5898_v54 = vpop.permute.xlu0 %3446 }
 0x6ef   : > { %3325 = vadd.xlane.f32.xlu0 %v3324_v35  ;;  %v3327_v63 = vsel %vm3245_vm2, %v5854_v22, 0.0 }
 0x6f0   : > { %3328 = vadd.xlane.f32.xlu1 %v3327_v63  ;;  %v4555_v8 = vpop.f32.mrb[152].mxu1  ;;  %v3321_v45 = vsel %vm3245_vm2, %v5860_v29, 0.0  ;;  %v5896_v48 = vpop.permute.xlu1 %3448 }
 0x6f1   : > { %v3207_v58 = vadd.f32 40.0, %v4555_v8  ;;  %v3198_v9 = vpop.f32.mrb[153].mxu1 }
 0x6f2   : > { %v3199_v15 = vadd.f32 40.0, %v3198_v9  ;;  %v4556_v28 = vpop.f32.mrb[154].mxu1  ;;  %v5902_v24 = vpop.permute.xlu0 %3458 }
 0x6f3   : > { %v5868_v40 = vmul.f32 0.020833334, %v3207_v58  ;;  %v3210_v52 = vadd.f32 40.0, %v4556_v28  ;;  %3319 = vadd.xlane.f32.xlu0 %v3318_v14  ;;  %v3201_v62 = vpop.f32.mrb[155].mxu1 }
 0x6f4   : > { %v3202_v2 = vadd.f32 40.0, %v3201_v62  ;;  %3322 = vadd.xlane.f32.xlu1 %v3321_v45  ;;  %v5876_v17 = vmul.f32 0.020833334, %v3199_v15  ;;  %v5900_v5 = vpop.permute.xlu1 %3460 }
 0x6f5   : > { %v5872_v3 = vmul.f32 0.020833334, %v3210_v52  ;;  %v3336_v7 = vsel %vm3245_vm2, %v5868_v40, 0.0  ;;  %6410 = vst [vmem:[#allocation12_spill] sm:$0xff] %v5900_v5 }
 0x6f6   : > { %v5880_v31 = vmul.f32 0.020833334, %v3202_v2  ;;  %v3330_v60 = vsel %vm3245_vm2, %v5876_v17, 0.0  ;;  %v5906_v50 = vpop.permute.xlu0 %3454 }
 0x6f7   : > { %3337 = vadd.xlane.f32.xlu0 %v3336_v7  ;;  %v3339_v32 = vsel %vm3245_vm2, %v5872_v3, 0.0  ;;  %6412 = vst [vmem:[#allocation14_spill] sm:$0xff] %v5906_v50 }
 0x6f8   : > { %3340 = vadd.xlane.f32.xlu1 %v3339_v32  ;;  %v3333_v61 = vsel %vm3245_vm2, %v5880_v31, 0.0  ;;  %v5904_v33 = vpop.permute.xlu1 %3456 }
 0x6f9   : > { %6411 = vst [vmem:[#allocation13_spill] sm:$0xff] %v5904_v33 }
 0x6fa   : > { %v5910_v19 = vpop.permute.xlu0 %3466 }
 0x6fb   : > { %3331 = vadd.xlane.f32.xlu0 %v3330_v60  ;;  %6414 = vst [vmem:[#allocation16_spill] sm:$0xff] %v5910_v19 }
 0x6fc   : > { %3334 = vadd.xlane.f32.xlu1 %v3333_v61  ;;  %v5908_v59 = vpop.permute.xlu1 %3468 }
 0x6fd   : > { %6413 = vst [vmem:[#allocation15_spill] sm:$0xff] %v5908_v59 }
 0x6fe   : > { %v5918_v63 = vpop.permute.xlu0 %3462 }
 0x6ff   : > { %6416 = vst [vmem:[#allocation18_spill] sm:$0xff] %v5918_v63 }
 0x700   : > { %v5914_v55 = vpop.permute.xlu1 %3464 }
 0x701   : > { %6415 = vst [vmem:[#allocation17_spill] sm:$0xff] %v5914_v55 }
 0x702   : > { %v5926_v15 = vpop.permute.xlu0 %3474 }
 0x703   : > { %6418 = vst [vmem:[#allocation20_spill] sm:$0xff] %v5926_v15 }
 0x704   : > { %v5924_v9 = vpop.permute.xlu1 %3476 }
 0x705   : > { %6417 = vst [vmem:[#allocation19_spill] sm:$0xff] %v5924_v9 }
 0x706   : > { %v5930_v14 = vpop.permute.xlu0 %3470 }
 0x707   : > { %6420 = vst [vmem:[#allocation22_spill] sm:$0xff] %v5930_v14 }
 0x708   : > { %v5928_v28 = vpop.permute.xlu1 %3472 }
 0x709   : > { %6419 = vst [vmem:[#allocation21_spill] sm:$0xff] %v5928_v28 }
 0x70a   : > { %v5934_v62 = vpop.permute.xlu0 %3482 }
 0x70b   : > { %6422 = vst [vmem:[#allocation24_spill] sm:$0xff] %v5934_v62 }
 0x70c   : > { %v5932_v52 = vpop.permute.xlu1 %3484 }
 0x70d   : > { %6421 = vst [vmem:[#allocation23_spill] sm:$0xff] %v5932_v52 }
 0x70e   : > { %v5946_v61 = vpop.permute.xlu0 %3478 }
 0x70f   : > { %6424 = vst [vmem:[#allocation26_spill] sm:$0xff] %v5946_v61 }
 0x710   : > { %v5944_v60 = vpop.permute.xlu1 %3480 }
 0x711   : > { %6423 = vst [vmem:[#allocation25_spill] sm:$0xff] %v5944_v60 }
 0x712   : > { %v5950_v28 = vpop.permute.xlu0 %3490 }
 0x713   : > { %6426 = vst [vmem:[#allocation28_spill] sm:$0xff] %v5950_v28 }
 0x714   : > { %v5948_v9 = vpop.permute.xlu1 %3492 }
 0x715   : > { %6425 = vst [vmem:[#allocation27_spill] sm:$0xff] %v5948_v9 }
 0x716   : > { %v5954_v52 = vpop.permute.xlu0 %3486 }
 0x717   : > { %6428 = vst [vmem:[#allocation30_spill] sm:$0xff] %v5954_v52 }
 0x718   : > { %v5952_v14 = vpop.permute.xlu1 %3488 }
 0x719   : > { %6427 = vst [vmem:[#allocation29_spill] sm:$0xff] %v5952_v14 }
 0x71a   : > { %v5966_v60 = vpop.permute.xlu0 %3498 }
 0x71b   : > { %6431 = vst [vmem:[#allocation33_spill] sm:$0xff] %v5966_v60 }
 0x71c   : > { %v5962_v63 = vpop.permute.xlu1 %3500 }
 0x71d   : > { %6429 = vst [vmem:[#allocation31_spill] sm:$0xff] %v5962_v63 }
 0x71e   : > { %v5912_v20 = vpop.f32.mrb[132].mxu0  ;;  %v5970_v9 = vpop.permute.xlu0 %3494 }
 0x71f   : > { %v5916_v35 = vpop.f32.mrb[133].mxu0  ;;  %6433 = vst [vmem:[#allocation35_spill] sm:$0xff] %v5970_v9 }
 0x720   : > { %v5920_v8 = vpop.f32.mrb[134].mxu0  ;;  %v5968_v61 = vpop.permute.xlu1 %3496 }
 0x721   : > { %v5922_v58 = vpop.f32.mrb[135].mxu0  ;;  %6432 = vst [vmem:[#allocation34_spill] sm:$0xff] %v5968_v61 }
 0x72e   : > { %v5936_v45 = vpop.f32.mrb[136].mxu0 }
 0x72f   : > { %v5938_v2 = vpop.f32.mrb[137].mxu0 }
 0x730   : > { %v5940_v7 = vpop.f32.mrb[138].mxu0 }
 0x731   : > { %v5942_v32 = vpop.f32.mrb[139].mxu0 }
 0x73e   : > { %v5956_v62 = vpop.f32.mrb[140].mxu0 }
 0x73f   : > { %v5958_v15 = vpop.f32.mrb[141].mxu0 }
 0x740   : > { %v5960_v55 = vpop.f32.mrb[142].mxu0 }
 0x741   : > { %v5964_v59 = vpop.f32.mrb[143].mxu0 }
 0x742   : > { %6430 = vst [vmem:[#allocation32_spill] sm:$0xff] %v5964_v59 }
 0x74b   : > { %v3254_v28 = vpop.xlane.xlu1 %3253 }
 0x74c   : > { %4693 = vrcp.f32 %v3254_v28  ;;  %v3248_v14 = vpop.xlane.xlu0 %3247 }
 0x74d   : > { %4695 = vrcp.f32 %v3248_v14 }
 0x74e   : > { %v5972_v52 = vpop.f32.mrb[144].mxu0 }
 0x74f   : > { %6434 = vst [vmem:[#allocation36_spill] sm:$0xff] %v5972_v52  ;;  %v3257_v19 = vpop.xlane.xlu1 %3256  ;;  %v5974_v33 = vpop.f32.mrb[145].mxu0 }
 0x750   : > { %6435 = vst [vmem:[#allocation37_spill] sm:$0xff] %v5974_v33  ;;  %4697 = vrcp.f32 %v3257_v19  ;;  %v3251_v50 = vpop.xlane.xlu0 %3250  ;;  %v5976_v63 = vpop.f32.mrb[146].mxu0 }
 0x751   : > { %6436 = vst [vmem:[#allocation38_spill] sm:$0xff] %v5976_v63  ;;  %v5978_v5 = vpop.f32.mrb[147].mxu0  ;;  %4699 = vrcp.f32 %v3251_v50 }
 0x752   : > { %6437 = vst [vmem:[#allocation39_spill] sm:$0xff] %v5978_v5 }
 0x754   : > { %v3266_v60 = vpop.xlane.xlu0 %3265 }
 0x755   : > { %4701 = vrcp.f32 %v3266_v60  ;;  %v3269_v61 = vpop.xlane.xlu1 %3268 }
 0x756   : > { %v4694_v9 = vpop.eup %4693  ;;  %4703 = vrcp.f32 %v3269_v61 }
 0x757   : > { %v3347_v28 = vmul.f32 %v4694_v9, %v5756_v11  ;;  %v4696_v14 = vpop.eup %4695 }
 0x758   : > { %v3260_v59 = vpop.xlane.xlu0 %3259  ;;  %v3343_v50 = vmul.f32 %v4696_v14, %v5758_v37 }
 0x759   : > { %4705 = vrcp.f32 %v3260_v59  ;;  %v3263_v52 = vpop.xlane.xlu1 %3262  ;;  %3570 = vrot.lane.b32.xlu0 %v3347_v28, %s4823_s30 }
 0x75a   : > { %v4698_v19 = vpop.eup %4697  ;;  %4707 = vrcp.f32 %v3263_v52 }
 0x75b   : > { %v3349_v33 = vmul.f32 %v4698_v19, %v5760_v38  ;;  %v4700_v5 = vpop.eup %4699 }
 0x75c   : > { %v3278_v60 = vpop.xlane.xlu0 %3277  ;;  %v3345_v52 = vmul.f32 %v4700_v5, %v5764_v6 }
 0x75d   : > { %4709 = vrcp.f32 %v3278_v60  ;;  %v3281_v63 = vpop.xlane.xlu1 %3280  ;;  %3572 = vrot.lane.b32.xlu1 %v3349_v33, %s4823_s30  ;;  %3566 = vrot.lane.b32.xlu0 %v3343_v50, %s4823_s30 }
 0x75e   : > { %4711 = vrcp.f32 %v3281_v63  ;;  %v5986_v11 = vpop.f32.mrb[148].mxu0 }
 0x75f   : > { %v4702_v59 = vpop.eup %4701  ;;  %v5988_v9 = vpop.f32.mrb[149].mxu0 }
 0x760   : > { %v4704_v61 = vpop.eup %4703  ;;  %v3272_v38 = vpop.xlane.xlu0 %3271  ;;  %v3355_v37 = vmul.f32 %v4702_v59, %v5772_v18 }
 0x761   : > { %v5991_v28 = vpop.f32.mrb[150].mxu0  ;;  %4713 = vrcp.f32 %v3272_v38  ;;  %v3275_v14 = vpop.xlane.xlu1 %3274  ;;  %3568 = vrot.lane.b32.xlu1 %v3345_v52, %s4823_s30  ;;  %v3357_v19 = vmul.f32 %v4704_v61, %v5774_v36 }
 0x762   : > { %v5995_v33 = vpop.f32.mrb[151].mxu0  ;;  %4715 = vrcp.f32 %v3275_v14  ;;  %3578 = vrot.lane.b32.xlu0 %v3355_v37, %s4823_s30 }
 0x763   : > { %v4706_v63 = vpop.eup %4705 }
 0x764   : > { %v4708_v50 = vpop.eup %4707  ;;  %v3290_v6 = vpop.xlane.xlu0 %3289  ;;  %v3351_v5 = vmul.f32 %v4706_v63, %v5778_v27 }
 0x765   : > { %4717 = vrcp.f32 %v3290_v6  ;;  %v3293_v60 = vpop.xlane.xlu1 %3292  ;;  %3580 = vrot.lane.b32.xlu1 %v3357_v19, %s4823_s30  ;;  %v3353_v59 = vmul.f32 %v4708_v50, %v5780_v49 }
 0x766   : > { %4719 = vrcp.f32 %v3293_v60  ;;  %3574 = vrot.lane.b32.xlu0 %v3351_v5, %s4823_s30 }
 0x767   : > { %v4710_v18 = vpop.eup %4709 }
 0x768   : > { %v4712_v52 = vpop.eup %4711  ;;  %v3284_v38 = vpop.xlane.xlu0 %3283  ;;  %v3363_v37 = vmul.f32 %v4710_v18, %v5786_v30 }
 0x769   : > { %4721 = vrcp.f32 %v3284_v38  ;;  %v3287_v36 = vpop.xlane.xlu1 %3286  ;;  %3576 = vrot.lane.b32.xlu1 %v3353_v59, %s4823_s30  ;;  %v3365_v61 = vmul.f32 %v4712_v52, %v5790_v4 }
 0x76a   : > { %4723 = vrcp.f32 %v3287_v36  ;;  %3586 = vrot.lane.b32.xlu0 %v3363_v37, %s4823_s30 }
 0x76b   : > { %v4714_v27 = vpop.eup %4713 }
 0x76c   : > { %v4716_v14 = vpop.eup %4715  ;;  %v3302_v63 = vpop.xlane.xlu0 %3301  ;;  %v3359_v19 = vmul.f32 %v4714_v27, %v5794_v10 }
 0x76d   : > { %4725 = vrcp.f32 %v3302_v63  ;;  %v3305_v49 = vpop.xlane.xlu1 %3304  ;;  %3588 = vrot.lane.b32.xlu1 %v3365_v61, %s4823_s30  ;;  %v3361_v5 = vmul.f32 %v4716_v14, %v5796_v23 }
 0x76e   : > { %4727 = vrcp.f32 %v3305_v49  ;;  %3582 = vrot.lane.b32.xlu0 %v3359_v19, %s4823_s30  ;;  %v6010_v30 = vpop.f32.mrb[152].mxu0 }
 0x76f   : > { %v4718_v50 = vpop.eup %4717  ;;  %v6012_v6 = vpop.f32.mrb[153].mxu0 }
 0x770   : > { %v4720_v60 = vpop.eup %4719  ;;  %v3296_v4 = vpop.xlane.xlu0 %3295  ;;  %v3371_v10 = vmul.f32 %v4718_v50, %v5802_v44 }
 0x771   : > { %v6015_v18 = vpop.f32.mrb[154].mxu0  ;;  %4729 = vrcp.f32 %v3296_v4  ;;  %v3299_v59 = vpop.xlane.xlu1 %3298  ;;  %3584 = vrot.lane.b32.xlu1 %v3361_v5, %s4823_s30  ;;  %v3373_v37 = vmul.f32 %v4720_v60, %v5806_v41 }
 0x772   : > { %v6019_v52 = vpop.f32.mrb[155].mxu0  ;;  %4731 = vrcp.f32 %v3299_v59  ;;  %3594 = vrot.lane.b32.xlu0 %v3371_v10, %s4823_s30 }
 0x773   : > { %v4722_v38 = vpop.eup %4721 }
 0x774   : > { %v4724_v36 = vpop.eup %4723  ;;  %v3314_v23 = vpop.xlane.xlu0 %3313  ;;  %v3367_v27 = vmul.f32 %v4722_v38, %v5810_v39 }
 0x775   : > { %4733 = vrcp.f32 %v3314_v23  ;;  %v3317_v61 = vpop.xlane.xlu1 %3316  ;;  %3596 = vrot.lane.b32.xlu1 %v3373_v37, %s4823_s30  ;;  %v3369_v14 = vmul.f32 %v4724_v36, %v5812_v1 }
 0x776   : > { %4735 = vrcp.f32 %v3317_v61  ;;  %3590 = vrot.lane.b32.xlu0 %v3367_v27, %s4823_s30 }
 0x777   : > { %v4726_v44 = vpop.eup %4725 }
 0x778   : > { %v4728_v63 = vpop.eup %4727  ;;  %v3308_v19 = vpop.xlane.xlu0 %3307  ;;  %v3379_v49 = vmul.f32 %v4726_v44, %v5818_v43 }
 0x779   : > { %4737 = vrcp.f32 %v3308_v19  ;;  %v3311_v41 = vpop.xlane.xlu1 %3310  ;;  %3592 = vrot.lane.b32.xlu1 %v3369_v14, %s4823_s30  ;;  %v3381_v50 = vmul.f32 %v4728_v63, %v5822_v42 }
 0x77a   : > { %4739 = vrcp.f32 %v3311_v41  ;;  %3602 = vrot.lane.b32.xlu0 %v3379_v49, %s4823_s30 }
 0x77b   : > { %v4730_v39 = vpop.eup %4729 }
 0x77c   : > { %v4732_v5 = vpop.eup %4731  ;;  %v3326_v60 = vpop.xlane.xlu0 %3325  ;;  %v3375_v4 = vmul.f32 %v4730_v39, %v5826_v53 }
 0x77d   : > { %4741 = vrcp.f32 %v3326_v60  ;;  %v3329_v1 = vpop.xlane.xlu1 %3328  ;;  %3604 = vrot.lane.b32.xlu1 %v3381_v50, %s4823_s30  ;;  %v3377_v38 = vmul.f32 %v4732_v5, %v5828_v56 }
 0x77e   : > { %4743 = vrcp.f32 %v3329_v1  ;;  %3598 = vrot.lane.b32.xlu0 %v3375_v4, %s4823_s30  ;;  %v6034_v43 = vpop.f32.mrb[156].mxu0 }
 0x77f   : > { %v4734_v10 = vpop.eup %4733  ;;  %v6036_v59 = vpop.f32.mrb[157].mxu0 }
 0x780   : > { %v4736_v37 = vpop.eup %4735  ;;  %v3320_v42 = vpop.xlane.xlu0 %3319  ;;  %v3387_v53 = vmul.f32 %v4734_v10, %v5834_v46 }
 0x781   : > { %v6039_v36 = vpop.f32.mrb[158].mxu0  ;;  %4745 = vrcp.f32 %v3320_v42  ;;  %v3323_v23 = vpop.xlane.xlu1 %3322  ;;  %3600 = vrot.lane.b32.xlu1 %v3377_v38, %s4823_s30  ;;  %v3389_v44 = vmul.f32 %v4736_v37, %v5838_v13 }
 0x782   : > { %v6043_v27 = vpop.f32.mrb[159].mxu0  ;;  %4747 = vrcp.f32 %v3323_v23  ;;  %3610 = vrot.lane.b32.xlu0 %v3387_v53, %s4823_s30 }
 0x783   : > { %v4738_v61 = vpop.eup %4737 }
 0x784   : > { %v4740_v14 = vpop.eup %4739  ;;  %v3338_v56 = vpop.xlane.xlu0 %3337  ;;  %v3383_v63 = vmul.f32 %v4738_v61, %v5842_v25 }
 0x785   : > { %v3341_v19 = vpop.xlane.xlu1 %3340  ;;  %3612 = vrot.lane.b32.xlu1 %v3389_v44, %s4823_s30  ;;  %v3385_v49 = vmul.f32 %v4740_v14, %v5844_v34 }
 0x786   : > { %3606 = vrot.lane.b32.xlu0 %v3383_v63, %s4823_s30 }
 0x787   : > { %v4742_v46 = vpop.eup %4741 }
 0x788   : > { %v4744_v41 = vpop.eup %4743  ;;  %v3332_v39 = vpop.xlane.xlu0 %3331  ;;  %v3395_v50 = vmul.f32 %v4742_v46, %v5850_v51 }
 0x789   : > { %4749 = vrcp.f32 %v3332_v39  ;;  %3608 = vrot.lane.b32.xlu1 %v3385_v49, %s4823_s30  ;;  %v3335_v13 = vpop.xlane.xlu1 %3334  ;;  %v3397_v5 = vmul.f32 %v4744_v41, %v5854_v22 }
 0x78a   : > { %4751 = vrcp.f32 %v3335_v13  ;;  %3618 = vrot.lane.b32.xlu0 %v3395_v50, %s4823_s30 }
 0x78b   : > { %v4746_v25 = vpop.eup %4745  ;;  %4753 = vrcp.f32 %v3338_v56 }
 0x78c   : > { %v4748_v60 = vpop.eup %4747  ;;  %4755 = vrcp.f32 %v3341_v19  ;;  %v3391_v4 = vmul.f32 %v4746_v25, %v5858_v26 }
 0x78d   : > { %3620 = vrot.lane.b32.xlu1 %v3397_v5, %s4823_s30  ;;  %v3393_v1 = vmul.f32 %v4748_v60, %v5860_v29 }
 0x78e   : > { %3614 = vrot.lane.b32.xlu0 %v3391_v4, %s4823_s30  ;;  %v6058_v34 = vpop.f32.mrb[160].mxu0 }
 0x78f   : > { %v6060_v51 = vpop.f32.mrb[161].mxu0 }
 0x790   : > { %v6063_v10 = vpop.f32.mrb[162].mxu0 }
 0x791   : > { %3616 = vrot.lane.b32.xlu1 %v3393_v1, %s4823_s30  ;;  %v6066_v22 = vpop.f32.mrb[163].mxu0 }
 0x793   : > { %v4750_v38 = vpop.eup %4749 }
 0x794   : > { %v4752_v26 = vpop.eup %4751  ;;  %v3399_v37 = vmul.f32 %v4750_v38, %v5876_v17  ;;  %v6079_v17 = vld [vmem:[%s6378_s16] ss:$0 sm:$0xff] }
 0x795   : > { %v4754_v42 = vpop.eup %4753  ;;  %v3401_v53 = vmul.f32 %v4752_v26, %v5880_v31  ;;  %v2822_v31 = vadd.f32 %v5912_v20, %v6079_v17  ;;  %v2817_v20 = vadd.f32 %v6079_v17, %v5922_v58  ;;  %v2838_v46 = vadd.f32 %v5936_v45, %v6079_v17 }
 0x796   : > { %v4756_v23 = vpop.eup %4755  ;;  %3622 = vrot.lane.b32.xlu0 %v3399_v37, %s4823_s30  ;;  %v3403_v29 = vmul.f32 %v4754_v42, %v5868_v40  ;;  %v2814_v40 = vadd.f32 %v6079_v17, %v5916_v35  ;;  %v2830_v45 = vadd.f32 %v6079_v17, %v5938_v2  ;;  %v2854_v38 = vadd.f32 %v5956_v62, %v6079_v17 }
 0x797   : > { %3624 = vrot.lane.b32.xlu1 %v3401_v53, %s4823_s30  ;;  %v3405_v61 = vmul.f32 %v4756_v23, %v5872_v3  ;;  %v2825_v3 = vadd.f32 %v5920_v8, %v6079_v17  ;;  %v3664_v14 = vsel %vm729_vm0, %v2822_v31, %v5864_v57  ;;  %v3668_v5 = vsel %vm729_vm0, %v2838_v46, %v5894_v47 }
 0x798   : > { %v3662_v57 = vsel %vm729_vm0, %v2814_v40, %v5890_v12  ;;  %v3663_v12 = vsel %vm729_vm0, %v2817_v20, %v5888_v0  ;;  %v2833_v0 = vadd.f32 %v6079_v17, %v5942_v32  ;;  %v3666_v37 = vsel %vm729_vm0, %v2830_v45, %v5898_v54 }
 0x799   : > { %v3665_v8 = vsel %vm729_vm0, %v2825_v3, %v5878_v21  ;;  %v2841_v21 = vadd.f32 %v5940_v7, %v6079_v17  ;;  %v3672_v31 = vsel %vm729_vm0, %v2854_v38, %v5902_v24 }
 0x79a   : > { %3626 = vrot.lane.b32.xlu0 %v3403_v29, %s4823_s30  ;;  %v3667_v23 = vsel %vm729_vm0, %v2833_v0, %v5896_v48  ;;  %v2846_v29 = vadd.f32 %v6079_v17, %v5958_v15 }
 0x79b   : > { %3628 = vrot.lane.b32.xlu1 %v3405_v61, %s4823_s30  ;;  %v3669_v1 = vsel %vm729_vm0, %v2841_v21, %v5892_v16  ;;  %v2857_v16 = vadd.f32 %v5960_v55, %v6079_v17  ;;  %v6443_v21 = vld [vmem:[#allocation13_spill] sm:$0xff]  ;;  %s4757_s30 = scalar_lea.vmem %s6312_s20, 4096 }
 0x79c   : > { %p4758_p11 = scmp.ne.s32.totalorder %s6312_s20, %s4757_s30  ;;  %p4765_p1 = scmp.lt.s32.totalorder %s4763_s19, %s4757_s30 }
 0x79e   : > { %p4759_p12 = pnand %p4758_p11, %p4960_p5  ;;  %p4766_p2 = por %p4765_p1, %p4764_p0 }
 0x7a0   : > { %p4760_p13 = pneg %p4759_p12 }
 0x7a2   : > { %p4767_p3 = pnand %p4766_p2, %p4760_p13 }
 0x7cb   : > { %v3571_v44 = vpop.permute.xlu0 %3570 }
 0x7cc   : > { %v3697_v56 = vsel %vm3694_vm3, %v3664_v14, %v3571_v44  ;;  %v6438_v44 = vld [vmem:[#allocation32_spill] sm:$0xff] }
 0x7cd   : > { %v3730_v63 = vsel %vm3727_vm4, %v3697_v56, 0.0  ;;  %v2849_v48 = vadd.f32 %v6079_v17, %v6438_v44  ;;  %v6439_v14 = vld [vmem:[#allocation12_spill] sm:$0xff] }
 0x7ce   : > { %3762 = vst [vmem:[%s6094_s24 + $0x10] sm:$0xff] %v3730_v63  ;;  %v3673_v56 = vsel %vm729_vm0, %v2857_v16, %v6439_v14  ;;  %v6440_v63 = vld [vmem:[#allocation36_spill] sm:$0xff] }
 0x7cf   : > { %v3573_v35 = vpop.permute.xlu1 %3572  ;;  %v3567_v19 = vpop.permute.xlu0 %3566  ;;  %v2870_v20 = vadd.f32 %v6440_v63, %v6079_v17  ;;  %v6450_v44 = vld [vmem:[#allocation20_spill] sm:$0xff]  ;;  %v6451_v63 = vld [vmem:[#allocation19_spill] sm:$0xff] }
 0x7d0   : > { %v3698_v49 = vsel %vm3694_vm3, %v3665_v8, %v3573_v35  ;;  %v3695_v41 = vsel %vm3694_vm3, %v3662_v57, %v3567_v19  ;;  %v6441_v8 = vld [vmem:[#allocation14_spill] sm:$0xff] }
 0x7d1   : > { %v3731_v39 = vsel %vm3727_vm4, %v3698_v49, 0.0  ;;  %v3728_v58 = vsel %vm3727_vm4, %v3695_v41, 0.0  ;;  %v3670_v19 = vsel %vm729_vm0, %v2846_v29, %v6441_v8  ;;  %v6442_v41 = vld [vmem:[#allocation38_spill] sm:$0xff] }
 0x7d2   : > { %3763 = vst [vmem:[%s6094_s24 + $0x18] sm:$0xff] %v3731_v39  ;;  %3760 = vst [vmem:[%s6094_s24] sm:$0xff] %v3728_v58  ;;  %v2873_v39 = vadd.f32 %v6442_v41, %v6079_v17  ;;  %v2905_v41 = vadd.f32 %v6015_v18, %v6079_v17 }
 0x7d3   : > { %v3569_v50 = vpop.permute.xlu1 %3568 }
 0x7d4   : > { %v3696_v13 = vsel %vm3694_vm3, %v3663_v12, %v3569_v50  ;;  %v3579_v25 = vpop.permute.xlu0 %3578  ;;  %v3671_v50 = vsel %vm729_vm0, %v2849_v48, %v6443_v21  ;;  %v6444_v12 = vld [vmem:[#allocation37_spill] sm:$0xff]  ;;  %v2894_v21 = vadd.f32 %v6079_v17, %v6012_v6 }
 0x7d5   : > { %v3729_v60 = vsel %vm3727_vm4, %v3696_v13, 0.0  ;;  %v3701_v4 = vsel %vm3694_vm3, %v3668_v5, %v3579_v25  ;;  %v2862_v45 = vadd.f32 %v6079_v17, %v6444_v12  ;;  %v6445_v5 = vld [vmem:[#allocation16_spill] sm:$0xff] }
 0x7d6   : > { %3761 = vst [vmem:[%s6094_s24 + $0x8] sm:$0xff] %v3729_v60  ;;  %v3734_v7 = vsel %vm3727_vm4, %v3701_v4, 0.0  ;;  %v3676_v60 = vsel %vm729_vm0, %v2870_v20, %v6445_v5 }
 0x7d7   : > { %3766 = vst [vmem:[%s6094_s24 + $0x30] sm:$0xff] %v3734_v7  ;;  %v3581_v2 = vpop.permute.xlu1 %3580 }
 0x7d8   : > { %v3702_v47 = vsel %vm3694_vm3, %v3669_v1, %v3581_v2  ;;  %v3575_v26 = vpop.permute.xlu0 %3574  ;;  %v6446_v2 = vld [vmem:[#allocation39_spill] sm:$0xff] }
 0x7d9   : > { %v3735_v42 = vsel %vm3727_vm4, %v3702_v47, 0.0  ;;  %v3699_v53 = vsel %vm3694_vm3, %v3666_v37, %v3575_v26  ;;  %v2865_v1 = vadd.f32 %v6079_v17, %v6446_v2  ;;  %v6447_v47 = vld [vmem:[#allocation15_spill] sm:$0xff]  ;;  %v2886_v37 = vadd.f32 %v5986_v11, %v6079_v17 }
 0x7da   : > { %3767 = vst [vmem:[%s6094_s24 + $0x38] sm:$0xff] %v3735_v42  ;;  %v3732_v32 = vsel %vm3727_vm4, %v3699_v53, 0.0  ;;  %v3677_v26 = vsel %vm729_vm0, %v2873_v39, %v6447_v47  ;;  %v6453_v39 = vld [vmem:[#allocation21_spill] sm:$0xff] }
 0x7db   : > { %3764 = vst [vmem:[%s6094_s24 + $0x20] sm:$0xff] %v3732_v32  ;;  %v3577_v62 = vpop.permute.xlu1 %3576  ;;  %v6448_v32 = vld [vmem:[#allocation18_spill] sm:$0xff]  ;;  %v3680_v48 = vsel %vm729_vm0, %v2886_v37, %v6450_v44 }
 0x7dc   : > { %v3700_v54 = vsel %vm3694_vm3, %v3667_v23, %v3577_v62  ;;  %v3587_v61 = vpop.permute.xlu0 %3586  ;;  %v3674_v16 = vsel %vm729_vm0, %v2862_v45, %v6448_v32  ;;  %v6454_v45 = vld [vmem:[#allocation24_spill] sm:$0xff] }
 0x7dd   : > { %v3733_v40 = vsel %vm3727_vm4, %v3700_v54, 0.0  ;;  %v3705_v3 = vsel %vm3694_vm3, %v3672_v31, %v3587_v61  ;;  %v2889_v54 = vadd.f32 %v5991_v28, %v6079_v17  ;;  %v6449_v61 = vld [vmem:[#allocation17_spill] sm:$0xff] }
 0x7de   : > { %3765 = vst [vmem:[%s6094_s24 + $0x28] sm:$0xff] %v3733_v40  ;;  %v3738_v55 = vsel %vm3727_vm4, %v3705_v3, 0.0  ;;  %v3675_v31 = vsel %vm729_vm0, %v2865_v1, %v6449_v61  ;;  %v2878_v40 = vadd.f32 %v6079_v17, %v5988_v9 }
 0x7df   : > { %3770 = vst [vmem:[%s6094_s24 + $0x50] sm:$0xff] %v3738_v55  ;;  %v3589_v15 = vpop.permute.xlu1 %3588  ;;  %v3681_v20 = vsel %vm729_vm0, %v2889_v54, %v6451_v63 }
 0x7e0   : > { %v3706_v24 = vsel %vm3694_vm3, %v3673_v56, %v3589_v15  ;;  %v3583_v35 = vpop.permute.xlu0 %3582  ;;  %v2881_v56 = vadd.f32 %v6079_v17, %v5995_v33 }
 0x7e1   : > { %v3739_v57 = vsel %vm3727_vm4, %v3706_v24, 0.0  ;;  %v3703_v46 = vsel %vm3694_vm3, %v3670_v19, %v3583_v35  ;;  %v2902_v24 = vadd.f32 %v6010_v30, %v6079_v17  ;;  %v6452_v19 = vld [vmem:[#allocation22_spill] sm:$0xff] }
 0x7e2   : > { %3771 = vst [vmem:[%s6094_s24 + $0x58] sm:$0xff] %v3739_v57  ;;  %v3736_v49 = vsel %vm3727_vm4, %v3703_v46, 0.0  ;;  %v3678_v57 = vsel %vm729_vm0, %v2878_v40, %v6452_v19  ;;  %v6459_v40 = vld [vmem:[#allocation27_spill] sm:$0xff]  ;;  %v2934_v19 = vadd.f32 %v6058_v34, %v6079_v17 }
 0x7e3   : > { %3768 = vst [vmem:[%s6094_s24 + $0x40] sm:$0xff] %v3736_v49  ;;  %v3585_v58 = vpop.permute.xlu1 %3584 }
 0x7e4   : > { %v3704_v13 = vsel %vm3694_vm3, %v3671_v50, %v3585_v58  ;;  %v3595_v25 = vpop.permute.xlu0 %3594  ;;  %v3679_v58 = vsel %vm729_vm0, %v2881_v56, %v6453_v39 }
 0x7e5   : > { %v3737_v4 = vsel %vm3727_vm4, %v3704_v13, 0.0  ;;  %v3709_v7 = vsel %vm3694_vm3, %v3676_v60, %v3595_v25  ;;  %v3684_v13 = vsel %vm729_vm0, %v2902_v24, %v6454_v45  ;;  %v2897_v60 = vadd.f32 %v6079_v17, %v6019_v52  ;;  %v6466_v45 = vld [vmem:[#allocation31_spill] sm:$0xff] }
 0x7e6   : > { %3769 = vst [vmem:[%s6094_s24 + $0x48] sm:$0xff] %v3737_v4  ;;  %v3742_v0 = vsel %vm3727_vm4, %v3709_v7, 0.0  ;;  %v6455_v4 = vld [vmem:[#allocation23_spill] sm:$0xff] }
 0x7e7   : > { %3774 = vst [vmem:[%s6094_s24 + $0x70] sm:$0xff] %v3742_v0  ;;  %v3597_v38 = vpop.permute.xlu1 %3596  ;;  %v3685_v7 = vsel %vm729_vm0, %v2905_v41, %v6455_v4  ;;  %v2918_v0 = vadd.f32 %v6034_v43, %v6079_v17 }
 0x7e8   : > { %v3710_v42 = vsel %vm3694_vm3, %v3677_v26, %v3597_v38  ;;  %v3591_v53 = vpop.permute.xlu0 %3590  ;;  %v6456_v38 = vld [vmem:[#allocation26_spill] sm:$0xff] }
 0x7e9   : > { %v3743_v62 = vsel %vm3727_vm4, %v3710_v42, 0.0  ;;  %v3707_v23 = vsel %vm3694_vm3, %v3674_v16, %v3591_v53  ;;  %v3682_v47 = vsel %vm729_vm0, %v2894_v21, %v6456_v38  ;;  %v2921_v42 = vadd.f32 %v6039_v36, %v6079_v17  ;;  %v6457_v53 = vld [vmem:[#allocation25_spill] sm:$0xff] }
 0x7ea   : > { %3775 = vst [vmem:[%s6094_s24 + $0x78] sm:$0xff] %v3743_v62  ;;  %v3740_v29 = vsel %vm3727_vm4, %v3707_v23, 0.0  ;;  %v3683_v32 = vsel %vm729_vm0, %v2897_v60, %v6457_v53  ;;  %v2910_v16 = vadd.f32 %v6079_v17, %v6036_v59 }
 0x7eb   : > { %3772 = vst [vmem:[%s6094_s24 + $0x60] sm:$0xff] %v3740_v29  ;;  %v3593_v11 = vpop.permute.xlu1 %3592  ;;  %v6458_v29 = vld [vmem:[#allocation28_spill] sm:$0xff] }
 0x7ec   : > { %v3708_v3 = vsel %vm3694_vm3, %v3675_v31, %v3593_v11  ;;  %v3603_v55 = vpop.permute.xlu0 %3602  ;;  %v3688_v54 = vsel %vm729_vm0, %v2918_v0, %v6458_v29  ;;  %v2913_v31 = vadd.f32 %v6079_v17, %v6043_v27 }
 0x7ed   : > { %v3741_v15 = vsel %vm3727_vm4, %v3708_v3, 0.0  ;;  %v3713_v14 = vsel %vm3694_vm3, %v3680_v48, %v3603_v55  ;;  %v3689_v3 = vsel %vm729_vm0, %v2921_v42, %v6459_v40  ;;  %v6460_v48 = vld [vmem:[#allocation30_spill] sm:$0xff] }
 0x7ee   : > { %3773 = vst [vmem:[%s6094_s24 + $0x68] sm:$0xff] %v3741_v15  ;;  %v3746_v28 = vsel %vm3727_vm4, %v3713_v14, 0.0  ;;  %v3686_v15 = vsel %vm729_vm0, %v2910_v16, %v6460_v48 }
 0x7ef   : > { %3778 = vst [vmem:[%s6094_s24 + $0x90] sm:$0xff] %v3746_v28  ;;  %v3605_v9 = vpop.permute.xlu1 %3604 }
 0x7f0   : > { %v3714_v35 = vsel %vm3694_vm3, %v3681_v20, %v3605_v9  ;;  %v3599_v8 = vpop.permute.xlu0 %3598  ;;  %v6461_v9 = vld [vmem:[#allocation29_spill] sm:$0xff]  ;;  %v2926_v20 = vadd.f32 %v6079_v17, %v6060_v51  ;;  %v2937_v51 = vadd.f32 %v6063_v10, %v6079_v17 }
 0x7f1   : > { %v3747_v46 = vsel %vm3727_vm4, %v3714_v35, 0.0  ;;  %v3711_v49 = vsel %vm3694_vm3, %v3678_v57, %v3599_v8  ;;  %v3687_v63 = vsel %vm729_vm0, %v2913_v31, %v6461_v9  ;;  %v2929_v35 = vadd.f32 %v6079_v17, %v6066_v22  ;;  %v6465_v17 = vld [vmem:[#allocation33_spill] sm:$0xff] }
 0x7f2   : > { %3779 = vst [vmem:[%s6094_s24 + $0x98] sm:$0xff] %v3747_v46  ;;  %v3744_v33 = vsel %vm3727_vm4, %v3711_v49, 0.0  ;;  %v6462_v46 = vld [vmem:[#allocation35_spill] sm:$0xff]  ;;  %v3692_v21 = vsel %vm729_vm0, %v2934_v19, %v6465_v17 }
 0x7f3   : > { %3776 = vst [vmem:[%s6094_s24 + $0x80] sm:$0xff] %v3744_v33  ;;  %v3601_v30 = vpop.permute.xlu1 %3600  ;;  %v3690_v49 = vsel %vm729_vm0, %v2926_v20, %v6462_v46 }
 0x7f4   : > { %v3712_v50 = vsel %vm3694_vm3, %v3679_v58, %v3601_v30  ;;  %v3611_v12 = vpop.permute.xlu0 %3610  ;;  %v6463_v30 = vld [vmem:[#allocation34_spill] sm:$0xff] }
 0x7f5   : > { %v3745_v25 = vsel %vm3727_vm4, %v3712_v50, 0.0  ;;  %v3717_v5 = vsel %vm3694_vm3, %v3684_v13, %v3611_v12  ;;  %v3691_v22 = vsel %vm729_vm0, %v2929_v35, %v6463_v30  ;;  %v3693_v13 = vsel %vm729_vm0, %v2937_v51, %v6466_v45 }
 0x7f6   : > { %3777 = vst [vmem:[%s6094_s24 + $0x88] sm:$0xff] %v3745_v25  ;;  %v3750_v18 = vsel %vm3727_vm4, %v3717_v5, 0.0 }
 0x7f7   : > { %3782 = vst [vmem:[%s6094_s24 + $0xb0] sm:$0xff] %v3750_v18  ;;  %v3613_v6 = vpop.permute.xlu1 %3612 }
 0x7f8   : > { %v3718_v2 = vsel %vm3694_vm3, %v3685_v7, %v3613_v6  ;;  %v3607_v1 = vpop.permute.xlu0 %3606 }
 0x7f9   : > { %v3751_v26 = vsel %vm3727_vm4, %v3718_v2, 0.0  ;;  %v3715_v37 = vsel %vm3694_vm3, %v3682_v47, %v3607_v1 }
 0x7fa   : > { %3783 = vst [vmem:[%s6094_s24 + $0xb8] sm:$0xff] %v3751_v26  ;;  %v3748_v52 = vsel %vm3727_vm4, %v3715_v37, 0.0 }
 0x7fb   : > { %3780 = vst [vmem:[%s6094_s24 + $0xa0] sm:$0xff] %v3748_v52  ;;  %v3609_v43 = vpop.permute.xlu1 %3608 }
 0x7fc   : > { %v3716_v62 = vsel %vm3694_vm3, %v3683_v32, %v3609_v43  ;;  %v3619_v23 = vpop.permute.xlu0 %3618 }
 0x7fd   : > { %v3749_v11 = vsel %vm3727_vm4, %v3716_v62, 0.0  ;;  %v3721_v36 = vsel %vm3694_vm3, %v3688_v54, %v3619_v23 }
 0x7fe   : > { %3781 = vst [vmem:[%s6094_s24 + $0xa8] sm:$0xff] %v3749_v11  ;;  %v3754_v61 = vsel %vm3727_vm4, %v3721_v36, 0.0 }
 0x7ff   : > { %3786 = vst [vmem:[%s6094_s24 + $0xd0] sm:$0xff] %v3754_v61  ;;  %v3621_v59 = vpop.permute.xlu1 %3620 }
 0x800   : > { %v3722_v55 = vsel %vm3694_vm3, %v3689_v3, %v3621_v59  ;;  %v3615_v44 = vpop.permute.xlu0 %3614 }
 0x801   : > { %v3755_v14 = vsel %vm3727_vm4, %v3722_v55, 0.0  ;;  %v3719_v28 = vsel %vm3694_vm3, %v3686_v15, %v3615_v44 }
 0x802   : > { %3787 = vst [vmem:[%s6094_s24 + $0xd8] sm:$0xff] %v3755_v14  ;;  %v3752_v56 = vsel %vm3727_vm4, %v3719_v28, 0.0 }
 0x803   : > { %3784 = vst [vmem:[%s6094_s24 + $0xc0] sm:$0xff] %v3752_v56  ;;  %v3617_v27 = vpop.permute.xlu1 %3616 }
 0x804   : > { %v3720_v24 = vsel %vm3694_vm3, %v3687_v63, %v3617_v27 }
 0x805   : > { %v3753_v8 = vsel %vm3727_vm4, %v3720_v24, 0.0 }
 0x806   : > { %3785 = vst [vmem:[%s6094_s24 + $0xc8] sm:$0xff] %v3753_v8 }
 0x808   : > { %v3623_v57 = vpop.permute.xlu0 %3622 }
 0x809   : > { %v3723_v33 = vsel %vm3694_vm3, %v3690_v49, %v3623_v57  ;;  %v3625_v41 = vpop.permute.xlu1 %3624 }
 0x80a   : > { %v3756_v39 = vsel %vm3727_vm4, %v3723_v33, 0.0  ;;  %v3724_v58 = vsel %vm3694_vm3, %v3691_v22, %v3625_v41 }
 0x80b   : > { %3788 = vst [vmem:[%s6094_s24 + $0xe0] sm:$0xff] %v3756_v39  ;;  %v3757_v34 = vsel %vm3727_vm4, %v3724_v58, 0.0 }
 0x80c   : > { %3789 = vst [vmem:[%s6094_s24 + $0xe8] sm:$0xff] %v3757_v34  ;;  %v3627_v10 = vpop.permute.xlu0 %3626 }
 0x80d   : > { %v3725_v50 = vsel %vm3694_vm3, %v3692_v21, %v3627_v10  ;;  %v3629_v12 = vpop.permute.xlu1 %3628 }
 0x80e   : > { %v3758_v25 = vsel %vm3727_vm4, %v3725_v50, 0.0  ;;  %v3726_v5 = vsel %vm3694_vm3, %v3693_v13, %v3629_v12 }
 0x80f   : > { %3790 = vst [vmem:[%s6094_s24 + $0xf0] sm:$0xff] %v3758_v25  ;;  %v3759_v18 = vsel %vm3727_vm4, %v3726_v5, 0.0 }
 0x810   : > { %3791 = vst [vmem:[%s6094_s24 + $0xf8] sm:$0xff] %v3759_v18 }
 0x811   : > { %4770 = shalt.err (!%p4767_p3)
}
 0x812   : > { %s4771_s23 = scalar_lea.hbm %s6310_s18, 4096  ;;  %s4775_s27 = scalar_lea.hbm %s6467_s1, 8192 }
 0x813   : > { %p4772_p4 = scmp.ne.s32.totalorder %s6310_s18, %s4771_s23  ;;  %p4776_p9 = scmp.lt.u32.totalorder %s6310_s18, %s6467_s1 }
 0x814   : > { %p4777_p10 = scmp.lt.u32.totalorder %s4775_s27, %s4771_s23  ;;  %p4779_p12 = scmp.lt.u32.totalorder %s4771_s23, %s6310_s18 }
 0x815   : > { %p4773_p7 = pnand %p4772_p4, %p4960_p5 }
 0x816   : > { %p4778_p11 = por %p4777_p10, %p4776_p9 }
 0x817   : > { %p4774_p8 = pneg %p4773_p7 }
 0x818   : > { %p4780_p13 = por %p4779_p12, %p4778_p11 }
 0x81a   : > { %p4781_p0 = pnand %p4780_p13, %p4774_p8 }
 0x81c   : > { %4784 = shalt.err (!%p4781_p0)
}
 0x81d   : > { %s4825_s30 = smov 128   ;;  %s4826_s2 = smov 8  }
 0x81e   : > { %4573 = dma.vmem_to_hbm [thread:$0]  (%p4960_p5), %s6312_s20, 4096, %s6310_s18, %s6321_s29, %s4825_s30, %s4825_s30, %s4826_s2  }
 0x81f PF: > { %s6468_s19 = sld [smem:[#allocation7_spill]]  ;;  %s6469_s24 = sld [smem:[#allocation5_spill]] }
 0x825   : > { %p4579_p1 = scmp.ge.s32.totalorder %s6468_s19, 2  ;;  %s3821_s0 = sand.u32 1, %s6469_s24  }
 0x826   : > { %s3822_s23 = scalar_lea.sflag [#allocation3], %s3821_s0 }
 0x827   : > { %p4576_p2 = pnand %p4579_p1, %p4964_p6 }
 0x829   : > { %4802 = dma.done.wait (!%p4576_p2), %s3822_s23, 4096  }
 0x82a   : > { %4804 = vsyncadd (!%p4576_p2), %s3822_s23, 4294963200  ;;  %s6471_s30 = sld [smem:[#allocation8_spill]]  ;;  %s6472_s22 = sld [smem:[#allocation6_spill]] }
 0x82b   : > { %s6473_s29 = sld [smem:[#allocation9_spill]]  ;;  %s6474_s27 = smov %s4811_s28 }
 0x830   : > { %p28_p3 = scmp.ge.s32.totalorder %s6471_s30, 4   ;;  %s6475_s28 = smov %s6472_s22 }
 0x832   :  { %30 = sbr.rel (!%p28_p3) target bundleno = 8 (0x8), region = 127 }
 0x839   :  { %3827 = vsyncpa [#allocation3], 1 }
 0x83a   :  { %3829 = vsyncpa [#allocation3 + $0x1], 1 }

</bundles_post_ra>
